<compile_context>
chip_gen: v5e
topology: v5e:2x2
jax: 0.10.0
libtpu: 0.0.40
codegen_flags: <defaults>
</compile_context>

<pallas_src>
import jax
import jax.numpy as jnp
from jax import lax
from jax.experimental import pallas as pl
from jax.experimental.pallas import tpu as pltpu

IN_DIM = 28 * 28          # 784
H1, K1 = 256, 5           # Maxout(784, 256, k=5)  -> Linear(784, 1280)
H2, K2 = 128, 5           # Maxout(256, 128, k=5)  -> Linear(256, 640)
OUT_DIM = 1


def _disc_kernel(x_ref, w1_ref, b1_ref, w2_ref, b2_ref, w3_ref, b3_ref, o_ref):
    # Cast the f32 input tile to bf16 in-kernel (no separate host astype pass).
    x = x_ref[...].astype(jnp.bfloat16)                       # (B_t, 784)

    # ---- Maxout 1: per-k slab matmul (784 -> 256) fused with running max.
    # Each slab is N=256 wide -> exactly fills the 256-wide MXU on v6e/v7x. ----
    m1 = (jnp.dot(x, w1_ref[:, 0:H1], preferred_element_type=jnp.float32)
          + b1_ref[:, 0:H1])
    for k in range(1, K1):
        hk = (jnp.dot(x, w1_ref[:, k * H1:(k + 1) * H1],
                      preferred_element_type=jnp.float32)
              + b1_ref[:, k * H1:(k + 1) * H1])
        m1 = jnp.maximum(m1, hk)                              # (B_t, 256) f32
    # bf16 activation for the next MXU pass (covered by the test tolerance).
    m1 = m1.astype(jnp.bfloat16)

    # ---- Maxout 2: ONE (B_t,256)@(256,640) matmul, then max over the 5
    # contiguous 128-wide column slabs (fewer MXU passes than 5x N=128). ----
    h2 = (jnp.dot(m1, w2_ref[...], preferred_element_type=jnp.float32)
          + b2_ref[...])                                      # (B_t, 640) f32
    m2 = h2[:, 0:H2]
    for k in range(1, K2):
        m2 = jnp.maximum(m2, h2[:, k * H2:(k + 1) * H2])      # (B_t, 128) f32

    # ---- Final Linear(128 -> 1) + Sigmoid, computed directly in lane-dense
    # row layout: (1,128) x (B_t,128)^T -> (1,B_t). Output store is an
    # unmasked, lane-dense vst instead of B_t single-lane masked stores. ----
    logit = lax.dot_general(w3_ref[...], m2, (((1,), (1,)), ((), ())),
                            preferred_element_type=jnp.float32) + b3_ref[...]
    o_ref[...] = jax.nn.sigmoid(logit)                        # (1, B_t)


def _round_up(n, m):
    return ((n + m - 1) // m) * m


def _choose_tile(B):
    """Batch-tile size.

    - Large B: 1024-row tiles (~2.4 GFLOP each) so the ~0.35 µs grid-step
      overhead is <10% of wall clock (vs 25-35% at 256-row tiles).
    - Medium B: split into 2 even tiles so the "parallel" batch axis shards
      across both v7x TensorCores (no effect on single-TC v5e/v6e).
    - Small B: one tile (weight-DMA bound anyway), rounded to the f32
      sublane multiple of 8.
    """
    if B > 2048:
        return 1024
    if B >= 512:
        return _round_up((B + 1) // 2, 8)
    return _round_up(B, 8)


@jax.jit
def discriminator_forward(x, w1, b1, w2, b2, w3, b3):
    B = x.shape[0]
    B_T = _choose_tile(B)
    B_pad = _round_up(B, B_T)

    # x stays f32 in HBM; bf16 cast happens on the tile inside the kernel.
    # Pad only when the tile does not divide the batch.
    if B_pad != B:
        x = jnp.pad(x, ((0, B_pad - B), (0, 0)))

    n_tiles = B_pad // B_T

    cost = pl.CostEstimate(
        flops=2 * B_pad * (IN_DIM * H1 * K1 + H1 * H2 * K2 + H2),
        transcendentals=2 * B_pad,                 # sigmoid ~ exp + reciprocal
        bytes_accessed=(x.size * 4                 # f32 input
                        + w1.size * 2 + w2.size * 2
                        + b1.size * 4 + b2.size * 4
                        + w3.size * 4 + b3.size * 4
                        + B_pad * OUT_DIM * 4),    # f32 output
    )

    const = lambda i: (0, 0)   # weight/bias tiles: resident across the grid

    out = pl.pallas_call(
        _disc_kernel,
        out_shape=jax.ShapeDtypeStruct((n_tiles, B_T), jnp.float32),
        grid=(n_tiles,),
        in_specs=[
            pl.BlockSpec((B_T, IN_DIM), lambda i: (i, 0)),     # x tile (f32)
            pl.BlockSpec((IN_DIM, H1 * K1), const),            # w1 (bf16)
            pl.BlockSpec((1, H1 * K1), const),                 # b1
            pl.BlockSpec((H1, H2 * K2), const),                # w2 (bf16)
            pl.BlockSpec((1, H2 * K2), const),                 # b2
            pl.BlockSpec((1, H2), const),                      # w3 as row (1, 128)
            pl.BlockSpec((1, OUT_DIM), const),                 # b3
        ],
        out_specs=pl.BlockSpec((1, B_T), lambda i: (i, 0)),    # lane-dense row
        compiler_params=pltpu.CompilerParams(
            dimension_semantics=("parallel",),
            vmem_limit_bytes=48 << 20,
        ),
        cost_estimate=cost,
    )(x, w1, b1, w2, b2, w3, b3)

    # (n_tiles, B_T) row-major == batch order; back to the module's (B, 1).
    return out.reshape(B_pad, OUT_DIM)[:B]


def _init_linear(key, fan_in, fan_out):
    """PyTorch nn.Linear default init: U(-1/sqrt(fan_in), 1/sqrt(fan_in))."""
    kw, kb = jax.random.split(key)
    bound = 1.0 / (fan_in ** 0.5)
    # weight stored as (in, out) so the kernel does x @ W
    w = jax.random.uniform(kw, (fan_in, fan_out), jnp.float32, -bound, bound)
    b = jax.random.uniform(kb, (fan_out,), jnp.float32, -bound, bound)
    return w, b


def _permute_maxout_params(w, b, out_features, k):
    """Reorder columns from PyTorch's [out, k] grouping to [k, out] grouping.

    new_col(j, i) = old_col(i * k + j).  Maxing over the k contiguous slabs of
    width `out_features` is then exactly PyTorch's .view(B, out, k).max(-1).
    """
    perm = (jnp.arange(out_features)[None, :] * k
            + jnp.arange(k)[:, None]).reshape(-1)             # (k*out,)
    return w[:, perm], b[perm]


def make_params(seed=0):
    key = jax.random.PRNGKey(seed)
    k1, k2, k3 = jax.random.split(key, 3)

    w1, b1 = _init_linear(k1, IN_DIM, H1 * K1)       # (784, 1280), (1280,)
    w2, b2 = _init_linear(k2, H1, H2 * K2)           # (256, 640),  (640,)
    w3, b3 = _init_linear(k3, H2, OUT_DIM)           # (128, 1),    (1,)

    w1p, b1p = _permute_maxout_params(w1, b1, H1, K1)
    w2p, b2p = _permute_maxout_params(w2, b2, H2, K2)

    kernel_params = dict(
        w1=w1p.astype(jnp.bfloat16), b1=b1p.reshape(1, H1 * K1),
        w2=w2p.astype(jnp.bfloat16), b2=b2p.reshape(1, H2 * K2),
        w3=w3.T.reshape(1, H2),       b3=b3.reshape(1, OUT_DIM),
    )
    # Reference uses the same bf16-rounded weights (cast back to f32), un-permuted.
    ref_params = (
        w1.astype(jnp.bfloat16).astype(jnp.float32), b1,
        w2.astype(jnp.bfloat16).astype(jnp.float32), b2,
        w3, b3,
    )
    return kernel_params, ref_params


def reference_forward(x, w1, b1, w2, b2, w3, b3):
    """Pure-JAX replica of the PyTorch forward (eval mode), bf16-rounded inputs."""
    B = x.shape[0]
    x = x.astype(jnp.bfloat16).astype(jnp.float32)
    h1 = x @ w1 + b1
    h1 = h1.reshape(B, H1, K1).max(-1)
    h2 = h1 @ w2 + b2
    h2 = h2.reshape(B, H2, K2).max(-1)
    return jax.nn.sigmoid(h2 @ w3 + b3)


if __name__ == "__main__":
    B = 8
    key = jax.random.PRNGKey(0)
    x = jax.random.normal(key, (B, IN_DIM), jnp.float32)   # flattened (B,1,28,28)

    params, ref_params = make_params(seed=0)

    out = discriminator_forward(
        x,
        params["w1"], params["b1"],
        params["w2"], params["b2"],
        params["w3"], params["b3"],
    )
    out = jax.block_until_ready(out)

    ref = reference_forward(x, *ref_params)
    assert out.shape == (B, OUT_DIM), out.shape
    # bf16 weights/activations in the kernel vs f32 math on bf16-rounded weights
    # in the reference -> loosened tolerance.
    assert jnp.allclose(out, ref, atol=1e-2, rtol=1e-2), (out, ref)

    print("KERNEL_OK")
</pallas_src>

<mosaic_0001>
module attributes {stable_mosaic.version = 11 : i64} {
  func.func @_disc_kernel(%arg0: i32, %arg1: memref<8x784xf32, #tpu.memory_space<vmem>>, %arg2: memref<784x1280xbf16, #tpu.memory_space<vmem>>, %arg3: memref<1x1280xf32, #tpu.memory_space<vmem>>, %arg4: memref<256x640xbf16, #tpu.memory_space<vmem>>, %arg5: memref<1x640xf32, #tpu.memory_space<vmem>>, %arg6: memref<1x128xf32, #tpu.memory_space<vmem>>, %arg7: memref<1x1xf32, #tpu.memory_space<vmem>>, %arg8: memref<1x8xf32, #tpu.memory_space<vmem>>) attributes {dimension_semantics = [#tpu.dimension_semantics<parallel>], iteration_bounds = array<i64: 1>, scalar_prefetch = 0 : i64, scratch_operands = 0 : i64, tpu.core_type = #tpu.core_type<tc>, window_params = [{transform_indices = @transform_0, window_bounds = array<i64: 8, 784>}, {pipeline_mode = #tpu.pipeline_mode<synchronous>, transform_indices = @transform_1, window_bounds = array<i64: 784, 1280>}, {pipeline_mode = #tpu.pipeline_mode<synchronous>, transform_indices = @transform_2, window_bounds = array<i64: 1, 1280>}, {pipeline_mode = #tpu.pipeline_mode<synchronous>, transform_indices = @transform_3, window_bounds = array<i64: 256, 640>}, {pipeline_mode = #tpu.pipeline_mode<synchronous>, transform_indices = @transform_4, window_bounds = array<i64: 1, 640>}, {pipeline_mode = #tpu.pipeline_mode<synchronous>, transform_indices = @transform_5, window_bounds = array<i64: 1, 128>}, {pipeline_mode = #tpu.pipeline_mode<synchronous>, transform_indices = @transform_6, window_bounds = array<i64: 1, 1>}, {transform_indices = @transform_7, window_bounds = array<i64: 1, 8>}]} {
    %c0 = arith.constant 0 : index
    %c0_0 = arith.constant 0 : index
    %0 = vector.load %arg1[%c0, %c0_0] : memref<8x784xf32, #tpu.memory_space<vmem>>, vector<8x784xf32>
    %1 = arith.truncf %0 : vector<8x784xf32> to vector<8x784xbf16>
    %c0_1 = arith.constant 0 : index
    %c0_2 = arith.constant 0 : index
    %2 = vector.load %arg2[%c0_1, %c0_2] : memref<784x1280xbf16, #tpu.memory_space<vmem>>, vector<784x256xbf16>
    %cst = arith.constant dense<0.000000e+00> : vector<8x256xf32>
    %3 = tpu.matmul %1, %2, %cst {dimension_numbers = #tpu.dot_dimension_numbers<[1], [0], [0], [1], [0, 0, 1, 1], [], []>} : vector<8x784xbf16>, vector<784x256xbf16>, vector<8x256xf32> -> vector<8x256xf32>
    %c0_3 = arith.constant 0 : index
    %c0_4 = arith.constant 0 : index
    %4 = vector.load %arg3[%c0_3, %c0_4] : memref<1x1280xf32, #tpu.memory_space<vmem>>, vector<1x256xf32>
    %5 = vector.broadcast %4 : vector<1x256xf32> to vector<8x256xf32>
    %6 = arith.addf %3, %5 : vector<8x256xf32>
    %c0_5 = arith.constant 0 : index
    %c256 = arith.constant 256 : index
    %7 = vector.load %arg2[%c0_5, %c256] : memref<784x1280xbf16, #tpu.memory_space<vmem>>, vector<784x256xbf16>
    %cst_6 = arith.constant dense<0.000000e+00> : vector<8x256xf32>
    %8 = tpu.matmul %1, %7, %cst_6 {dimension_numbers = #tpu.dot_dimension_numbers<[1], [0], [0], [1], [0, 0, 1, 1], [], []>} : vector<8x784xbf16>, vector<784x256xbf16>, vector<8x256xf32> -> vector<8x256xf32>
    %c0_7 = arith.constant 0 : index
    %c256_8 = arith.constant 256 : index
    %9 = vector.load %arg3[%c0_7, %c256_8] : memref<1x1280xf32, #tpu.memory_space<vmem>>, vector<1x256xf32>
    %10 = vector.broadcast %9 : vector<1x256xf32> to vector<8x256xf32>
    %11 = arith.addf %8, %10 : vector<8x256xf32>
    %12 = arith.maximumf %6, %11 : vector<8x256xf32>
    %c0_9 = arith.constant 0 : index
    %c512 = arith.constant 512 : index
    %13 = vector.load %arg2[%c0_9, %c512] : memref<784x1280xbf16, #tpu.memory_space<vmem>>, vector<784x256xbf16>
    %cst_10 = arith.constant dense<0.000000e+00> : vector<8x256xf32>
    %14 = tpu.matmul %1, %13, %cst_10 {dimension_numbers = #tpu.dot_dimension_numbers<[1], [0], [0], [1], [0, 0, 1, 1], [], []>} : vector<8x784xbf16>, vector<784x256xbf16>, vector<8x256xf32> -> vector<8x256xf32>
    %c0_11 = arith.constant 0 : index
    %c512_12 = arith.constant 512 : index
    %15 = vector.load %arg3[%c0_11, %c512_12] : memref<1x1280xf32, #tpu.memory_space<vmem>>, vector<1x256xf32>
    %16 = vector.broadcast %15 : vector<1x256xf32> to vector<8x256xf32>
    %17 = arith.addf %14, %16 : vector<8x256xf32>
    %18 = arith.maximumf %12, %17 : vector<8x256xf32>
    %c0_13 = arith.constant 0 : index
    %c768 = arith.constant 768 : index
    %19 = vector.load %arg2[%c0_13, %c768] : memref<784x1280xbf16, #tpu.memory_space<vmem>>, vector<784x256xbf16>
    %cst_14 = arith.constant dense<0.000000e+00> : vector<8x256xf32>
    %20 = tpu.matmul %1, %19, %cst_14 {dimension_numbers = #tpu.dot_dimension_numbers<[1], [0], [0], [1], [0, 0, 1, 1], [], []>} : vector<8x784xbf16>, vector<784x256xbf16>, vector<8x256xf32> -> vector<8x256xf32>
    %c0_15 = arith.constant 0 : index
    %c768_16 = arith.constant 768 : index
    %21 = vector.load %arg3[%c0_15, %c768_16] : memref<1x1280xf32, #tpu.memory_space<vmem>>, vector<1x256xf32>
    %22 = vector.broadcast %21 : vector<1x256xf32> to vector<8x256xf32>
    %23 = arith.addf %20, %22 : vector<8x256xf32>
    %24 = arith.maximumf %18, %23 : vector<8x256xf32>
    %c0_17 = arith.constant 0 : index
    %c1024 = arith.constant 1024 : index
    %25 = vector.load %arg2[%c0_17, %c1024] : memref<784x1280xbf16, #tpu.memory_space<vmem>>, vector<784x256xbf16>
    %cst_18 = arith.constant dense<0.000000e+00> : vector<8x256xf32>
    %26 = tpu.matmul %1, %25, %cst_18 {dimension_numbers = #tpu.dot_dimension_numbers<[1], [0], [0], [1], [0, 0, 1, 1], [], []>} : vector<8x784xbf16>, vector<784x256xbf16>, vector<8x256xf32> -> vector<8x256xf32>
    %c0_19 = arith.constant 0 : index
    %c1024_20 = arith.constant 1024 : index
    %27 = vector.load %arg3[%c0_19, %c1024_20] : memref<1x1280xf32, #tpu.memory_space<vmem>>, vector<1x256xf32>
    %28 = vector.broadcast %27 : vector<1x256xf32> to vector<8x256xf32>
    %29 = arith.addf %26, %28 : vector<8x256xf32>
    %30 = arith.maximumf %24, %29 : vector<8x256xf32>
    %31 = arith.truncf %30 : vector<8x256xf32> to vector<8x256xbf16>
    %c0_21 = arith.constant 0 : index
    %c0_22 = arith.constant 0 : index
    %32 = vector.load %arg4[%c0_21, %c0_22] : memref<256x640xbf16, #tpu.memory_space<vmem>>, vector<256x640xbf16>
    %cst_23 = arith.constant dense<0.000000e+00> : vector<8x640xf32>
    %33 = tpu.matmul %31, %32, %cst_23 {dimension_numbers = #tpu.dot_dimension_numbers<[1], [0], [0], [1], [0, 0, 1, 1], [], []>} : vector<8x256xbf16>, vector<256x640xbf16>, vector<8x640xf32> -> vector<8x640xf32>
    %c0_24 = arith.constant 0 : index
    %c0_25 = arith.constant 0 : index
    %34 = vector.load %arg5[%c0_24, %c0_25] : memref<1x640xf32, #tpu.memory_space<vmem>>, vector<1x640xf32>
    %35 = vector.broadcast %34 : vector<1x640xf32> to vector<8x640xf32>
    %36 = arith.addf %33, %35 : vector<8x640xf32>
    %37 = vector.extract_strided_slice %36 {offsets = [0, 0], sizes = [8, 128], strides = [1, 1]} : vector<8x640xf32> to vector<8x128xf32>
    %38 = vector.extract_strided_slice %36 {offsets = [0, 128], sizes = [8, 128], strides = [1, 1]} : vector<8x640xf32> to vector<8x128xf32>
    %39 = arith.maximumf %37, %38 : vector<8x128xf32>
    %40 = vector.extract_strided_slice %36 {offsets = [0, 256], sizes = [8, 128], strides = [1, 1]} : vector<8x640xf32> to vector<8x128xf32>
    %41 = arith.maximumf %39, %40 : vector<8x128xf32>
    %42 = vector.extract_strided_slice %36 {offsets = [0, 384], sizes = [8, 128], strides = [1, 1]} : vector<8x640xf32> to vector<8x128xf32>
    %43 = arith.maximumf %41, %42 : vector<8x128xf32>
    %44 = vector.extract_strided_slice %36 {offsets = [0, 512], sizes = [8, 128], strides = [1, 1]} : vector<8x640xf32> to vector<8x128xf32>
    %45 = arith.maximumf %43, %44 : vector<8x128xf32>
    %c0_26 = arith.constant 0 : index
    %c0_27 = arith.constant 0 : index
    %46 = vector.load %arg6[%c0_26, %c0_27] : memref<1x128xf32, #tpu.memory_space<vmem>>, vector<1x128xf32>
    %cst_28 = arith.constant dense<0.000000e+00> : vector<1x8xf32>
    %47 = tpu.matmul %46, %45, %cst_28 {dimension_numbers = #tpu.dot_dimension_numbers<[1], [1], [0], [0], [0, 0, 1, 0], [], []>} : vector<1x128xf32>, vector<8x128xf32>, vector<1x8xf32> -> vector<1x8xf32>
    %c0_29 = arith.constant 0 : index
    %c0_30 = arith.constant 0 : index
    %48 = vector.load %arg7[%c0_29, %c0_30] : memref<1x1xf32, #tpu.memory_space<vmem>>, vector<1x1xf32>
    %49 = vector.broadcast %48 : vector<1x1xf32> to vector<1x8xf32>
    %50 = arith.addf %47, %49 : vector<1x8xf32>
    %51 = arith.negf %50 : vector<1x8xf32>
    %52 = math.exp %51 : vector<1x8xf32>
    %cst_31 = arith.constant 1.000000e+00 : f32
    %53 = vector.broadcast %cst_31 : f32 to vector<1x8xf32>
    %54 = arith.addf %53, %52 : vector<1x8xf32>
    %55 = arith.divf %53, %54 : vector<1x8xf32>
    %c0_32 = arith.constant 0 : index
    %c0_33 = arith.constant 0 : index
    %56 = vector.load %arg8[%c0_32, %c0_33] : memref<1x8xf32, #tpu.memory_space<vmem>>, vector<1x8xf32>
    tpu.vector_store %arg8[%c0_32, %c0_33], %55 {strides = array<i32>} : memref<1x8xf32, #tpu.memory_space<vmem>>, vector<1x8xf32>,
    return
  }
  func.func @transform_0(%arg0: i32) -> (i32, i32) {
    %c0_i32 = arith.constant 0 : i32
    %c0_i32_0 = arith.constant 0 : i32
    return %arg0, %c0_i32 : i32, i32
  }
  func.func @transform_1(%arg0: i32) -> (i32, i32) {
    %c0_i32 = arith.constant 0 : i32
    %c0_i32_0 = arith.constant 0 : i32
    %c0_i32_1 = arith.constant 0 : i32
    return %c0_i32, %c0_i32_0 : i32, i32
  }
  func.func @transform_2(%arg0: i32) -> (i32, i32) {
    %c0_i32 = arith.constant 0 : i32
    %c0_i32_0 = arith.constant 0 : i32
    %c0_i32_1 = arith.constant 0 : i32
    return %c0_i32, %c0_i32_0 : i32, i32
  }
  func.func @transform_3(%arg0: i32) -> (i32, i32) {
    %c0_i32 = arith.constant 0 : i32
    %c0_i32_0 = arith.constant 0 : i32
    %c0_i32_1 = arith.constant 0 : i32
    return %c0_i32, %c0_i32_0 : i32, i32
  }
  func.func @transform_4(%arg0: i32) -> (i32, i32) {
    %c0_i32 = arith.constant 0 : i32
    %c0_i32_0 = arith.constant 0 : i32
    %c0_i32_1 = arith.constant 0 : i32
    return %c0_i32, %c0_i32_0 : i32, i32
  }
  func.func @transform_5(%arg0: i32) -> (i32, i32) {
    %c0_i32 = arith.constant 0 : i32
    %c0_i32_0 = arith.constant 0 : i32
    %c0_i32_1 = arith.constant 0 : i32
    return %c0_i32, %c0_i32_0 : i32, i32
  }
  func.func @transform_6(%arg0: i32) -> (i32, i32) {
    %c0_i32 = arith.constant 0 : i32
    %c0_i32_0 = arith.constant 0 : i32
    %c0_i32_1 = arith.constant 0 : i32
    return %c0_i32, %c0_i32_0 : i32, i32
  }
  func.func @transform_7(%arg0: i32) -> (i32, i32) {
    %c0_i32 = arith.constant 0 : i32
    %c0_i32_0 = arith.constant 0 : i32
    return %arg0, %c0_i32 : i32, i32
  }
}

</mosaic_0001>

<bundles_post_ra>
// kernel: discriminator_forward.1
= control target key start
LH: loop header
LB: loop body
LE: loop exit
PB: predicated region body
PF: predicated region fallthrough
CT: control target
= control target key end

     0   :  { %s8085_s0 = inlined_call_operand.hbm [shape: f32[8,784], index: 0, kind: input, shape index: {}]   ;;  %s8086_s1 = inlined_call_operand.hbm [shape: bf16[784,1280], index: 1, kind: input, shape index: {}]   ;;  %s8087_s2 = inlined_call_operand.hbm [shape: f32[1,1280], index: 2, kind: input, shape index: {}]   ;;  %s8088_s3 = inlined_call_operand.hbm [shape: bf16[256,640], index: 3, kind: input, shape index: {}]   ;;  %s8089_s4 = inlined_call_operand.hbm [shape: f32[1,640], index: 4, kind: input, shape index: {}]   ;;  %s8090_s5 = inlined_call_operand.hbm [shape: f32[1,128], index: 5, kind: input, shape index: {}]   ;;  %s8091_s6 = inlined_call_operand.<no memory space> [shape: f32[1,1], index: 6, kind: input, shape index: {}]   ;;  %s8092_s7 = inlined_call_operand.hbm [shape: f32[1,8], index: 7, kind: output, shape index: {}]  }
   0x1   :  { %v12_v0 = vstv %s8091_s6 }
   0x2   :  { %13 = vst [vmem:[#allocation2] sm:$0x1] %v12_v0 }
   0x3   :  { %14 = vsyncpa [#allocation4], 0 }
   0x4   :  { %15 = vsyncpa [#allocation7], 0 }
   0x5   :  { %16 = vsyncpa [#allocation10], 0 }
   0x6   :  { %17 = vsyncpa [#allocation13], 0  ;;  %s34_s28 = sshll.u32 %s8086_s1, 4  ;;  %s35_s28 = int_to_ptr.hbm [resolvable:$true] %s34_s28 }
   0x7   :  { %18 = vsyncpa [#allocation5], 0  ;;  %s7807_s29 = smov [#allocation6]   ;;  %s58_s10 = sshll.u32 %s8088_s3, 4  ;;  %s59_s10 = int_to_ptr.hbm [resolvable:$true] %s58_s10 }
   0x8   :  { %s36_s30 = sshll.u32 %s7807_s29, 4  ;;  %s7808_s11 = smov 640   ;;  %s37_s30 = int_to_ptr.vmem [resolvable:$true] %s36_s30 }
   0x9   :  { %s7809_s6 = smov 40   ;;  %s7810_s12 = smov [#allocation9]  }
   0xa   :  { %42 = dma.hbm_to_vmem [thread:$0]  %s35_s28, 62720, %s37_s30, [#allocation7], %s7808_s11, %s7808_s11, %s7809_s6  }
   0xb   :  { %s60_s13 = sshll.u32 %s7810_s12, 4  ;;  %s7811_s14 = smov 320   ;;  %s61_s13 = int_to_ptr.vmem [resolvable:$true] %s60_s13 }
   0xc   :  { %s7812_s15 = smov 20   ;;  %s24_s17 = sshll.u32 %s8085_s0, 4  ;;  %s25_s17 = int_to_ptr.hbm [resolvable:$true] %s24_s17 }
   0xd   :  { %66 = dma.hbm_to_vmem [thread:$0]  %s59_s10, 10240, %s61_s13, [#allocation10], %s7811_s14, %s7811_s14, %s7812_s15  }
   0xe   :  { %s7813_s18 = smov [#allocation3]   ;;  %s48_s21 = sshll.u32 %s8087_s2, 4  ;;  %s49_s21 = int_to_ptr.hbm [resolvable:$true] %s48_s21 }
   0xf   :  { %s26_s19 = sshll.u32 %s7813_s18, 4  ;;  %s7814_s22 = smov [#allocation8]   ;;  %s27_s19 = int_to_ptr.vmem [resolvable:$true] %s26_s19 }
  0x10   :  { %29 = dma.hbm_to_vmem [thread:$0]  %s25_s17, 896, %s27_s19, [#allocation4]  }
  0x11   :  { %s50_s23 = sshll.u32 %s7814_s22, 4  ;;  %s72_s26 = sshll.u32 %s8089_s4, 4  ;;  %s51_s23 = int_to_ptr.vmem [resolvable:$true] %s50_s23  ;;  %s73_s26 = int_to_ptr.hbm [resolvable:$true] %s72_s26 }
  0x12   :  { %53 = dma.hbm_to_vmem [thread:$0]  %s49_s21, 160, %s51_s23, [#allocation7]  }
  0x13   :  { %s83_s28 = sshll.u32 %s8090_s5, 4  ;;  %s7815_s29 = smov [#allocation11]   ;;  %s84_s28 = int_to_ptr.hbm [resolvable:$true] %s83_s28 }
  0x14   :  { %s74_s30 = sshll.u32 %s7815_s29, 4  ;;  %s7816_s2 = smov [#allocation12]   ;;  %s75_s30 = int_to_ptr.vmem [resolvable:$true] %s74_s30 }
  0x15   :  { %77 = dma.hbm_to_vmem [thread:$0]  %s73_s26, 80, %s75_s30, [#allocation10]  }
  0x16   :  { %s85_s8 = sshll.u32 %s7816_s2, 4  ;;  %s86_s8 = int_to_ptr.vmem [resolvable:$true] %s85_s8 }
  0x17   :  { %88 = dma.hbm_to_vmem [thread:$0]  %s84_s28, 16, %s86_s8, [#allocation13]  }
  0x18   :  { %7797 = dma.done.wait [#allocation4], 896  }
  0x19   :  { %7798 = vsyncadd [#allocation4], 4294966400 }
  0x1a   :  { %7799 = dma.done.wait [#allocation7], 62880  }
  0x1b   :  { %7800 = vsyncadd [#allocation7], 4294904416 }
  0x1c   :  { %7801 = dma.done.wait [#allocation10], 10320  }
  0x1d   :  { %7802 = vsyncadd [#allocation10], 4294956976 }
  0x1e   :  { %7803 = dma.done.wait [#allocation13], 16  }
  0x1f   :  { %7804 = vsyncadd [#allocation13], 4294967280  ;;  %v4809_v1 = vld [vmem:[#allocation6 + $0x230] sm:$0xf]  ;;  %v7057_v2 = vld [vmem:[#allocation6 + $0x254] sm:$0xf0] }
  0x20   :  { %v4873_v3 = vld [vmem:[#allocation6 + $0x4b0] sm:$0xf]  ;;  %v4810_v4 = vor.u32 %v7057_v2, %v4809_v1  ;;  %v7073_v5 = vld [vmem:[#allocation6 + $0x4d4] sm:$0xf0]  ;;  %v4801_v12 = vld [vmem:[#allocation6 + $0x1e0] sm:$0xf] }
  0x21   :  { %v4937_v6 = vld [vmem:[#allocation6 + $0x730] sm:$0xf]  ;;  %v7089_v7 = vld [vmem:[#allocation6 + $0x754] sm:$0xf0]  ;;  %v4874_v8 = vor.u32 %v7073_v5, %v4873_v3  ;;  %v7055_v14 = vld [vmem:[#allocation6 + $0x204] sm:$0xf0] }
  0x22   :  { %v4938_v9 = vor.u32 %v7089_v7, %v4937_v6  ;;  %v5001_v10 = vld [vmem:[#allocation6 + $0x9b0] sm:$0xf]  ;;  %v7105_v11 = vld [vmem:[#allocation6 + $0x9d4] sm:$0xf0]  ;;  %728 = vmatpush.bf16.msra.mxu0 %v4810_v4  ;;  %v4865_v15 = vld [vmem:[#allocation6 + $0x460] sm:$0xf]  ;;  %v4802_v17 = vor.u32 %v7055_v14, %v4801_v12 }
  0x23   :  { %v5002_v13 = vor.u32 %v7105_v11, %v5001_v10  ;;  %v7071_v16 = vld [vmem:[#allocation6 + $0x484] sm:$0xf0]  ;;  %741 = vmatpush.bf16.msra.mxu1 %v4874_v8  ;;  %v4929_v19 = vld [vmem:[#allocation6 + $0x6e0] sm:$0xf]  ;;  %v4793_v24 = vld [vmem:[#allocation6 + $0x190] sm:$0xf] }
  0x24   :  { %754 = vmatpush.bf16.msra.mxu2 %v4938_v9  ;;  %v4866_v18 = vor.u32 %v7071_v16, %v4865_v15  ;;  %v7087_v20 = vld [vmem:[#allocation6 + $0x704] sm:$0xf0]  ;;  %v4993_v21 = vld [vmem:[#allocation6 + $0x960] sm:$0xf]  ;;  %v7053_v25 = vld [vmem:[#allocation6 + $0x1b4] sm:$0xf0] }
  0x25   :  { %767 = vmatpush.bf16.msra.mxu3 %v5002_v13  ;;  %v4930_v22 = vor.u32 %v7087_v20, %v4929_v19  ;;  %v7103_v23 = vld [vmem:[#allocation6 + $0x984] sm:$0xf0]  ;;  %v4857_v27 = vld [vmem:[#allocation6 + $0x410] sm:$0xf]  ;;  %v7069_v28 = vld [vmem:[#allocation6 + $0x434] sm:$0xf0]  ;;  %v4794_v30 = vor.u32 %v7053_v25, %v4793_v24 }
  0x26   :  { %v4994_v26 = vor.u32 %v7103_v23, %v4993_v21  ;;  %v4921_v29 = vld [vmem:[#allocation6 + $0x690] sm:$0xf]  ;;  %729 = vmatpush.bf16.msra.mxu0 %v4802_v17  ;;  %v7085_v31 = vld [vmem:[#allocation6 + $0x6b4] sm:$0xf0]  ;;  %v4858_v34 = vor.u32 %v7069_v28, %v4857_v27  ;;  %v4785_v36 = vld [vmem:[#allocation6 + $0x140] sm:$0xf] }
  0x27   :  { %v4985_v32 = vld [vmem:[#allocation6 + $0x910] sm:$0xf]  ;;  %v7101_v33 = vld [vmem:[#allocation6 + $0x934] sm:$0xf0]  ;;  %742 = vmatpush.bf16.msra.mxu1 %v4866_v18  ;;  %v4922_v35 = vor.u32 %v7085_v31, %v4921_v29  ;;  %v7051_v37 = vld [vmem:[#allocation6 + $0x164] sm:$0xf0] }
  0x28   :  { %755 = vmatpush.bf16.msra.mxu2 %v4930_v22  ;;  %v4849_v38 = vld [vmem:[#allocation6 + $0x3c0] sm:$0xf]  ;;  %v4986_v39 = vor.u32 %v7101_v33, %v4985_v32  ;;  %v7067_v40 = vld [vmem:[#allocation6 + $0x3e4] sm:$0xf0]  ;;  %v4786_v45 = vor.u32 %v7051_v37, %v4785_v36  ;;  %v4777_v48 = vld [vmem:[#allocation6 + $0xf0] sm:$0xf] }
  0x29   :  { %768 = vmatpush.bf16.msra.mxu3 %v4994_v26  ;;  %v4913_v41 = vld [vmem:[#allocation6 + $0x640] sm:$0xf]  ;;  %v7083_v42 = vld [vmem:[#allocation6 + $0x664] sm:$0xf0]  ;;  %v4850_v46 = vor.u32 %v7067_v40, %v4849_v38  ;;  %v7049_v49 = vld [vmem:[#allocation6 + $0x114] sm:$0xf0] }
  0x2a   :  { %v4977_v43 = vld [vmem:[#allocation6 + $0x8c0] sm:$0xf]  ;;  %v7099_v44 = vld [vmem:[#allocation6 + $0x8e4] sm:$0xf0]  ;;  %730 = vmatpush.bf16.msra.mxu0 %v4794_v30  ;;  %v4914_v47 = vor.u32 %v7083_v42, %v4913_v41  ;;  %v4841_v50 = vld [vmem:[#allocation6 + $0x370] sm:$0xf]  ;;  %v4778_v57 = vor.u32 %v7049_v49, %v4777_v48 }
  0x2b   :  { %743 = vmatpush.bf16.msra.mxu1 %v4858_v34  ;;  %v4978_v51 = vor.u32 %v7099_v44, %v4977_v43  ;;  %v7065_v52 = vld [vmem:[#allocation6 + $0x394] sm:$0xf0]  ;;  %v4905_v53 = vld [vmem:[#allocation6 + $0x5f0] sm:$0xf]  ;;  %v4769_v60 = vld [vmem:[#allocation6 + $0xa0] sm:$0xf] }
  0x2c   :  { %756 = vmatpush.bf16.msra.mxu2 %v4922_v35  ;;  %v7081_v54 = vld [vmem:[#allocation6 + $0x614] sm:$0xf0]  ;;  %v4969_v55 = vld [vmem:[#allocation6 + $0x870] sm:$0xf]  ;;  %v4842_v58 = vor.u32 %v7065_v52, %v4841_v50  ;;  %v7047_v61 = vld [vmem:[#allocation6 + $0xc4] sm:$0xf0] }
  0x2d   :  { %769 = vmatpush.bf16.msra.mxu3 %v4986_v39  ;;  %v7097_v56 = vld [vmem:[#allocation6 + $0x894] sm:$0xf0]  ;;  %v4906_v59 = vor.u32 %v7081_v54, %v4905_v53  ;;  %v4833_v62 = vld [vmem:[#allocation6 + $0x320] sm:$0xf]  ;;  %v7063_v0 = vld [vmem:[#allocation6 + $0x344] sm:$0xf0]  ;;  %v4770_v5 = vor.u32 %v7047_v61, %v4769_v60 }
  0x2e   :  { %731 = vmatpush.bf16.msra.mxu0 %v4786_v45  ;;  %v4970_v63 = vor.u32 %v7097_v56, %v4969_v55  ;;  %v4897_v1 = vld [vmem:[#allocation6 + $0x5a0] sm:$0xf]  ;;  %v7079_v2 = vld [vmem:[#allocation6 + $0x5c4] sm:$0xf0]  ;;  %v4834_v6 = vor.u32 %v7063_v0, %v4833_v62  ;;  %v4761_v8 = vld [vmem:[#allocation6 + $0x50] sm:$0xf] }
  0x2f   :  { %744 = vmatpush.bf16.msra.mxu1 %v4850_v46  ;;  %v4961_v3 = vld [vmem:[#allocation6 + $0x820] sm:$0xf]  ;;  %v7095_v4 = vld [vmem:[#allocation6 + $0x844] sm:$0xf0]  ;;  %v4898_v7 = vor.u32 %v7079_v2, %v4897_v1  ;;  %v7045_v9 = vld [vmem:[#allocation6 + $0x74] sm:$0xf0] }
  0x30   :  { %757 = vmatpush.bf16.msra.mxu2 %v4914_v47  ;;  %v4825_v10 = vld [vmem:[#allocation6 + $0x2d0] sm:$0xf]  ;;  %v4962_v11 = vor.u32 %v7095_v4, %v4961_v3  ;;  %v7061_v12 = vld [vmem:[#allocation6 + $0x2f4] sm:$0xf0]  ;;  %v4762_v17 = vor.u32 %v7045_v9, %v4761_v8  ;;  %v4753_v18 = vld [vmem:[#allocation6] sm:$0xf] }
  0x31   :  { %770 = vmatpush.bf16.msra.mxu3 %v4978_v51  ;;  %v4889_v13 = vld [vmem:[#allocation6 + $0x550] sm:$0xf]  ;;  %v7077_v14 = vld [vmem:[#allocation6 + $0x574] sm:$0xf0]  ;;  %v7043_v19 = vld [vmem:[#allocation6 + $0x24] sm:$0xf0]  ;;  %v4826_v20 = vor.u32 %v7061_v12, %v4825_v10 }
  0x32   :  { %732 = vmatpush.bf16.msra.mxu0 %v4778_v57  ;;  %v4953_v15 = vld [vmem:[#allocation6 + $0x7d0] sm:$0xf]  ;;  %v7093_v16 = vld [vmem:[#allocation6 + $0x7f4] sm:$0xf0]  ;;  %v4890_v21 = vor.u32 %v7077_v14, %v4889_v13  ;;  %v4817_v22 = vld [vmem:[#allocation6 + $0x280] sm:$0xf]  ;;  %v4754_v32 = vor.u32 %v7043_v19, %v4753_v18 }
  0x33   :  { %745 = vmatpush.bf16.msra.mxu1 %v4842_v58  ;;  %v7059_v23 = vld [vmem:[#allocation6 + $0x2a4] sm:$0xf0]  ;;  %v4881_v24 = vld [vmem:[#allocation6 + $0x500] sm:$0xf]  ;;  %v4954_v25 = vor.u32 %v7093_v16, %v4953_v15  ;;  %v5065_v29 = vld [vmem:[#allocation6 + $0xc30] sm:$0xf] }
  0x34   :  { %758 = vmatpush.bf16.msra.mxu2 %v4906_v59  ;;  %v7075_v26 = vld [vmem:[#allocation6 + $0x524] sm:$0xf0]  ;;  %v4945_v27 = vld [vmem:[#allocation6 + $0x780] sm:$0xf]  ;;  %v7121_v30 = vld [vmem:[#allocation6 + $0xc54] sm:$0xf0]  ;;  %v4818_v36 = vor.u32 %v7059_v23, %v4817_v22 }
  0x35   :  { %771 = vmatpush.bf16.msra.mxu3 %v4970_v63  ;;  %v7091_v28 = vld [vmem:[#allocation6 + $0x7a4] sm:$0xf0]  ;;  %v5129_v31 = vld [vmem:[#allocation6 + $0xeb0] sm:$0xf]  ;;  %v7137_v33 = vld [vmem:[#allocation6 + $0xed4] sm:$0xf0]  ;;  %v4882_v37 = vor.u32 %v7075_v26, %v4881_v24  ;;  %v5066_v41 = vor.u32 %v7121_v30, %v5065_v29 }
  0x36   :  { %733 = vmatpush.bf16.msra.mxu0 %v4770_v5  ;;  %v7056_v34 = vld [vmem:[#allocation6 + $0x234] sm:$0xf]  ;;  %v4811_v35 = vld [vmem:[#allocation6 + $0x258] sm:$0xf0]  ;;  %v5137_v38 = vld [vmem:[#allocation6 + $0xf00] sm:$0xf]  ;;  %v4946_v40 = vor.u32 %v7091_v28, %v4945_v27  ;;  %v5130_v45 = vor.u32 %v7137_v33, %v5129_v31 }
  0x37   :  { %746 = vmatpush.bf16.msra.mxu1 %v4834_v6  ;;  %v7139_v39 = vld [vmem:[#allocation6 + $0xf24] sm:$0xf0]  ;;  %v118_v42 = vld [vmem:[#allocation3 + $0x10] sm:$0xff]  ;;  %v7072_v43 = vld [vmem:[#allocation6 + $0x4b4] sm:$0xf]  ;;  %v4814_v46 = vor.u32 %v7056_v34, %v4811_v35  ;;  %vm724_vm0 = vcmask 130048  }
  0x38   :  { %759 = vmatpush.bf16.msra.mxu2 %v4898_v7  ;;  %v4875_v44 = vld [vmem:[#allocation6 + $0x4d8] sm:$0xf0]  ;;  %v5057_v47 = vld [vmem:[#allocation6 + $0xbe0] sm:$0xf]  ;;  %v7119_v48 = vld [vmem:[#allocation6 + $0xc04] sm:$0xf0]  ;;  %v5138_v50 = vor.u32 %v7139_v39, %v5137_v38  ;;  %v7880_v54 = vpack.c.bf16 %v118_v42, %v118_v42 }
  0x39   :  { %772 = vmatpush.bf16.msra.mxu3 %v4962_v11  ;;  %v5121_v49 = vld [vmem:[#allocation6 + $0xe60] sm:$0xf]  ;;  %v7135_v51 = vld [vmem:[#allocation6 + $0xe84] sm:$0xf0]  ;;  %v7054_v52 = vld [vmem:[#allocation6 + $0x1e4] sm:$0xf]  ;;  %v4878_v55 = vor.u32 %v7072_v43, %v4875_v44  ;;  %v5058_v58 = vor.u32 %v7119_v48, %v5057_v47 }
  0x3a   :  { %734 = vmatpush.bf16.msra.mxu0 %v4762_v17  ;;  %v4803_v53 = vld [vmem:[#allocation6 + $0x208] sm:$0xf0]  ;;  %v119_v57 = vld [vmem:[#allocation3 + $0x18] sm:$0xff]  ;;  %v117_v63 = vld [vmem:[#allocation3 + $0x8] sm:$0xff]  ;;  %v5122_v0 = vor.u32 %v7135_v51, %v5121_v49  ;;  %s7818_s4 = smov [#allocation14]   ;;  %s4738_s11 = sshll.u32 %s8092_s7, 4  ;;  %s4739_s11 = int_to_ptr.hbm [resolvable:$true] %s4738_s11 }
  0x3b   :  { %747 = vmatpush.bf16.msra.mxu1 %v4826_v20  ;;  %v116_v56 = vld [vmem:[#allocation3] sm:$0xff]  ;;  %v7070_v59 = vld [vmem:[#allocation6 + $0x464] sm:$0xf]  ;;  %v7884_v62 = vpack.c.bf16 %v119_v57, %v119_v57  ;;  %v4806_v1 = vor.u32 %v7054_v52, %v4803_v53  ;;  %v5049_v2 = vld [vmem:[#allocation6 + $0xb90] sm:$0xf]  ;;  %v7887_v8 = vpack.c.bf16 %v117_v63, %v117_v63  ;;  %s4736_s5 = sshll.u32 %s7818_s4, 4  ;;  %s4737_s5 = int_to_ptr.vmem [resolvable:$true] %s4736_s5 }
  0x3c   :  { %760 = vmatpush.bf16.msra.mxu2 %v4890_v21  ;;  %v4867_v60 = vld [vmem:[#allocation6 + $0x488] sm:$0xf0]  ;;  %v7882_v61 = vpack.c.bf16 %v116_v56, %v116_v56  ;;  %v7117_v3 = vld [vmem:[#allocation6 + $0xbb4] sm:$0xf0]  ;;  %v5113_v4 = vld [vmem:[#allocation6 + $0xe10] sm:$0xf] }
  0x3d   :  { %773 = vmatpush.bf16.msra.mxu3 %v4954_v25  ;;  %v7133_v5 = vld [vmem:[#allocation6 + $0xe34] sm:$0xf0]  ;;  %v7052_v6 = vld [vmem:[#allocation6 + $0x194] sm:$0xf]  ;;  %v4795_v7 = vld [vmem:[#allocation6 + $0x1b8] sm:$0xf0]  ;;  %v4870_v9 = vor.u32 %v7070_v59, %v4867_v60  ;;  %v5050_v10 = vor.u32 %v7117_v3, %v5049_v2 }
  0x3e   :  { %735 = vmatpush.bf16.msra.mxu0 %v4754_v32  ;;  %v7068_v11 = vld [vmem:[#allocation6 + $0x414] sm:$0xf]  ;;  %v4859_v12 = vld [vmem:[#allocation6 + $0x438] sm:$0xf0]  ;;  %v5114_v13 = vor.u32 %v7133_v5, %v5113_v4  ;;  %v4798_v14 = vor.u32 %v7052_v6, %v4795_v7  ;;  %v5041_v15 = vld [vmem:[#allocation6 + $0xb40] sm:$0xf] }
  0x3f   :  { %748 = vmatpush.bf16.msra.mxu1 %v4818_v36  ;;  %v7115_v16 = vld [vmem:[#allocation6 + $0xb64] sm:$0xf0]  ;;  %v5105_v17 = vld [vmem:[#allocation6 + $0xdc0] sm:$0xf]  ;;  %v7050_v19 = vld [vmem:[#allocation6 + $0x144] sm:$0xf]  ;;  %v4862_v21 = vor.u32 %v7068_v11, %v4859_v12 }
  0x40   :  { %761 = vmatpush.bf16.msra.mxu2 %v4882_v37  ;;  %v7131_v18 = vld [vmem:[#allocation6 + $0xde4] sm:$0xf0]  ;;  %v4787_v20 = vld [vmem:[#allocation6 + $0x168] sm:$0xf0]  ;;  %v5042_v22 = vor.u32 %v7115_v16, %v5041_v15  ;;  %v7066_v23 = vld [vmem:[#allocation6 + $0x3c4] sm:$0xf] }
  0x41   :  { %774 = vmatpush.bf16.msra.mxu3 %v4946_v40  ;;  %736 = vmatmul.bf16.vlgmr.msra.gmra.mxu0 %v7882_v61  ;;  %v4851_v24 = vld [vmem:[#allocation6 + $0x3e8] sm:$0xf0]  ;;  %v5106_v25 = vor.u32 %v7131_v18, %v5105_v17  ;;  %v4790_v26 = vor.u32 %v7050_v19, %v4787_v20  ;;  %v5033_v27 = vld [vmem:[#allocation6 + $0xaf0] sm:$0xf]  ;;  %v7113_v28 = vld [vmem:[#allocation6 + $0xb14] sm:$0xf0] }
  0x42   :  { %780 = vmatpush.bf16.msrb.mxu0 %v5066_v41  ;;  %749 = vmatmul.bf16.vlgmr.msra.gmra.mxu1 %v7887_v8  ;;  %v5097_v29 = vld [vmem:[#allocation6 + $0xd70] sm:$0xf]  ;;  %v7129_v30 = vld [vmem:[#allocation6 + $0xd94] sm:$0xf0]  ;;  %v7048_v31 = vld [vmem:[#allocation6 + $0xf4] sm:$0xf]  ;;  %v4854_v33 = vor.u32 %v7066_v23, %v4851_v24  ;;  %v5034_v34 = vor.u32 %v7113_v28, %v5033_v27 }
  0x43   :  { %793 = vmatpush.bf16.msrb.mxu1 %v5130_v45  ;;  %762 = vmatmul.bf16.vlgmr.msra.gmra.mxu2 %v7880_v54  ;;  %v4779_v32 = vld [vmem:[#allocation6 + $0x118] sm:$0xf0]  ;;  %v7064_v35 = vld [vmem:[#allocation6 + $0x374] sm:$0xf]  ;;  %v5098_v38 = vor.u32 %v7129_v30, %v5097_v29  ;;  %v5025_v40 = vld [vmem:[#allocation6 + $0xaa0] sm:$0xf] }
  0x44   :  { %813 = vmatpush.bf16.msrb.mxu2 %v5138_v50  ;;  %775 = vmatmul.bf16.vlgmr.msra.gmra.mxu3 %v7884_v62  ;;  %v4843_v36 = vld [vmem:[#allocation6 + $0x398] sm:$0xf0]  ;;  %v4782_v39 = vor.u32 %v7048_v31, %v4779_v32  ;;  %v7111_v41 = vld [vmem:[#allocation6 + $0xac4] sm:$0xf0]  ;;  %v5089_v42 = vld [vmem:[#allocation6 + $0xd20] sm:$0xf] }
  0x45   :  { %819 = vmatpush.bf16.msrb.mxu3 %v4814_v46  ;;  %v122_v37 = vld [vmem:[#allocation3 + $0x30] sm:$0xff]  ;;  %v7127_v43 = vld [vmem:[#allocation6 + $0xd44] sm:$0xf0]  ;;  %v7046_v44 = vld [vmem:[#allocation6 + $0xa4] sm:$0xf]  ;;  %v4846_v47 = vor.u32 %v7064_v35, %v4843_v36  ;;  %v5026_v48 = vor.u32 %v7111_v41, %v5025_v40  ;;  %vm4729_vm4 = vcmask 57344  }
  0x46   :  { %781 = vmatpush.bf16.msrb.mxu0 %v5058_v58  ;;  %v4771_v45 = vld [vmem:[#allocation6 + $0xc8] sm:$0xf0]  ;;  %v7892_v46 = vpack.c.bf16 %v122_v37, %v122_v37  ;;  %v7062_v49 = vld [vmem:[#allocation6 + $0x324] sm:$0xf]  ;;  %v5090_v51 = vor.u32 %v7127_v43, %v5089_v42  ;;  %v5017_v53 = vld [vmem:[#allocation6 + $0xa50] sm:$0xf] }
  0x47   :  { %794 = vmatpush.bf16.msrb.mxu1 %v5122_v0  ;;  %v4835_v50 = vld [vmem:[#allocation6 + $0x348] sm:$0xf0]  ;;  %v4774_v52 = vor.u32 %v7046_v44, %v4771_v45  ;;  %v5081_v56 = vld [vmem:[#allocation6 + $0xcd0] sm:$0xf]  ;;  %v7125_v57 = vld [vmem:[#allocation6 + $0xcf4] sm:$0xf0] }
  0x48   :  { %832 = vmatpush.bf16.msra.mxu2 %v4878_v55  ;;  %v7109_v55 = vld [vmem:[#allocation6 + $0xa74] sm:$0xf0]  ;;  %v7044_v58 = vld [vmem:[#allocation6 + $0x54] sm:$0xf]  ;;  %v4763_v59 = vld [vmem:[#allocation6 + $0x78] sm:$0xf0]  ;;  %v4838_v60 = vor.u32 %v7062_v49, %v4835_v50  ;;  %v5082_v3 = vor.u32 %v7125_v57, %v5081_v56 }
  0x49   :  { %820 = vmatpush.bf16.msrb.mxu3 %v4806_v1  ;;  %v5018_v63 = vor.u32 %v7109_v55, %v5017_v53  ;;  %v7060_v0 = vld [vmem:[#allocation6 + $0x2d4] sm:$0xf]  ;;  %v4827_v1 = vld [vmem:[#allocation6 + $0x2f8] sm:$0xf0]  ;;  %v5009_v2 = vld [vmem:[#allocation6 + $0xa00] sm:$0xf]  ;;  %v4766_v4 = vor.u32 %v7044_v58, %v4763_v59 }
  0x4a   :  { %782 = vmatpush.bf16.msrb.mxu0 %v5050_v10  ;;  %v7107_v5 = vld [vmem:[#allocation6 + $0xa24] sm:$0xf0]  ;;  %v5073_v6 = vld [vmem:[#allocation6 + $0xc80] sm:$0xf]  ;;  %v4755_v10 = vld [vmem:[#allocation6 + $0x28] sm:$0xf0]  ;;  %v4830_v15 = vor.u32 %v7060_v0, %v4827_v1 }
  0x4b   :  { %795 = vmatpush.bf16.msrb.mxu1 %v5114_v13  ;;  %v7123_v7 = vld [vmem:[#allocation6 + $0xca4] sm:$0xf0]  ;;  %v7088_v11 = vld [vmem:[#allocation6 + $0x734] sm:$0xf]  ;;  %v4939_v12 = vld [vmem:[#allocation6 + $0x758] sm:$0xf0]  ;;  %v5010_v16 = vor.u32 %v7107_v5, %v5009_v2 }
  0x4c   :  { %833 = vmatpush.bf16.msra.mxu2 %v4870_v9  ;;  %v7042_v9 = vld [vmem:[#allocation6 + $0x4] sm:$0xf]  ;;  %v7104_v13 = vld [vmem:[#allocation6 + $0x9b4] sm:$0xf]  ;;  %v5067_v18 = vld [vmem:[#allocation6 + $0xc58] sm:$0xf0]  ;;  %v5074_v20 = vor.u32 %v7123_v7, %v5073_v6 }
  0x4d   :  { %821 = vmatpush.bf16.msrb.mxu3 %v4798_v14  ;;  %v5003_v14 = vld [vmem:[#allocation6 + $0x9d8] sm:$0xf0]  ;;  %v7120_v17 = vld [vmem:[#allocation6 + $0xc34] sm:$0xf]  ;;  %v120_v19 = vld [vmem:[#allocation3 + $0x20] sm:$0xff] }
  0x4e   :  { %783 = vmatpush.bf16.msrb.mxu0 %v5042_v22  ;;  %v7058_v22 = vld [vmem:[#allocation6 + $0x284] sm:$0xf]  ;;  %v4819_v23 = vld [vmem:[#allocation6 + $0x2a8] sm:$0xf0]  ;;  %v121_v24 = vld [vmem:[#allocation3 + $0x28] sm:$0xff]  ;;  %v5070_v30 = vor.u32 %v7120_v17, %v5067_v18  ;;  %v7896_v31 = vpack.c.bf16 %v120_v19, %v120_v19 }
  0x4f   :  { %796 = vmatpush.bf16.msrb.mxu1 %v5106_v25  ;;  %v4942_v25 = vor.u32 %v7088_v11, %v4939_v12  ;;  %v7136_v27 = vld [vmem:[#allocation6 + $0xeb4] sm:$0xf]  ;;  %v5131_v28 = vld [vmem:[#allocation6 + $0xed8] sm:$0xf0]  ;;  %v7086_v29 = vld [vmem:[#allocation6 + $0x6e4] sm:$0xf]  ;;  %v4822_v35 = vor.u32 %v7058_v22, %v4819_v23  ;;  %v7898_v36 = vpack.c.bf16 %v121_v24, %v121_v24 }
  0x50   :  { %834 = vmatpush.bf16.msra.mxu2 %v4862_v21  ;;  %v4758_v21 = vor.u32 %v7042_v9, %v4755_v10  ;;  %v4931_v32 = vld [vmem:[#allocation6 + $0x708] sm:$0xf0]  ;;  %v7118_v37 = vld [vmem:[#allocation6 + $0xbe4] sm:$0xf]  ;;  %v7084_v44 = vld [vmem:[#allocation6 + $0x694] sm:$0xf] }
  0x51   :  { %822 = vmatpush.bf16.msrb.mxu3 %v4790_v26  ;;  %v5006_v26 = vor.u32 %v7104_v13, %v5003_v14  ;;  %v4934_v40 = vor.u32 %v7086_v29, %v4931_v32  ;;  %v7134_v42 = vld [vmem:[#allocation6 + $0xe64] sm:$0xf]  ;;  %v5123_v43 = vld [vmem:[#allocation6 + $0xe88] sm:$0xf0]  ;;  %v4987_v49 = vld [vmem:[#allocation6 + $0x938] sm:$0xf0] }
  0x52   :  { %784 = vmatpush.bf16.msrb.mxu0 %v5034_v34  ;;  %v4995_v34 = vld [vmem:[#allocation6 + $0x988] sm:$0xf0]  ;;  %v7116_v50 = vld [vmem:[#allocation6 + $0xb94] sm:$0xf]  ;;  %v5115_v57 = vld [vmem:[#allocation6 + $0xe38] sm:$0xf0] }
  0x53   :  { %797 = vmatpush.bf16.msrb.mxu1 %v5098_v38  ;;  %5143 = vmatmul.msk.bf16.vlgmr.msrb.gmra.mxu2 %vm724_vm0, %v7892_v46  ;;  %v5059_v38 = vld [vmem:[#allocation6 + $0xc08] sm:$0xf0]  ;;  %v7132_v56 = vld [vmem:[#allocation6 + $0xe14] sm:$0xf]  ;;  %v7082_v58 = vld [vmem:[#allocation6 + $0x644] sm:$0xf] }
  0x54   :  { %835 = vmatpush.bf16.msra.mxu2 %v4854_v33  ;;  %v7102_v33 = vld [vmem:[#allocation6 + $0x964] sm:$0xf]  ;;  %v5062_v45 = vor.u32 %v7118_v37, %v5059_v38  ;;  %v4979_v0 = vld [vmem:[#allocation6 + $0x8e8] sm:$0xf0]  ;;  %v7080_v9 = vld [vmem:[#allocation6 + $0x5f4] sm:$0xf] }
  0x55   :  { %823 = vmatpush.bf16.msrb.mxu3 %v4782_v39  ;;  %v5134_v39 = vor.u32 %v7136_v27, %v5131_v28  ;;  %v4998_v41 = vor.u32 %v7102_v33, %v4995_v34  ;;  %v7114_v1 = vld [vmem:[#allocation6 + $0xb44] sm:$0xf]  ;;  %v5043_v2 = vld [vmem:[#allocation6 + $0xb68] sm:$0xf0]  ;;  %v4907_v11 = vld [vmem:[#allocation6 + $0x618] sm:$0xf0] }
  0x56   :  { %785 = vmatpush.bf16.msrb.mxu0 %v5026_v48  ;;  %v7100_v48 = vld [vmem:[#allocation6 + $0x914] sm:$0xf]  ;;  %v7130_v6 = vld [vmem:[#allocation6 + $0xdc4] sm:$0xf]  ;;  %v5107_v7 = vld [vmem:[#allocation6 + $0xde8] sm:$0xf0]  ;;  %v5046_v10 = vor.u32 %v7114_v1, %v5043_v2  ;;  %v4910_v17 = vor.u32 %v7080_v9, %v4907_v11 }
  0x57   :  { %798 = vmatpush.bf16.msrb.mxu1 %v5090_v51  ;;  %v5051_v51 = vld [vmem:[#allocation6 + $0xbb8] sm:$0xf0]  ;;  %v4990_v55 = vor.u32 %v7100_v48, %v4987_v49  ;;  %v7096_v12 = vld [vmem:[#allocation6 + $0x874] sm:$0xf]  ;;  %v4899_v23 = vld [vmem:[#allocation6 + $0x5c8] sm:$0xf0] }
  0x58   :  { %836 = vmatpush.bf16.msra.mxu2 %v4846_v47  ;;  %v4923_v47 = vld [vmem:[#allocation6 + $0x6b8] sm:$0xf0]  ;;  %v5054_v59 = vor.u32 %v7116_v50, %v5051_v51  ;;  %v7112_v14 = vld [vmem:[#allocation6 + $0xaf4] sm:$0xf]  ;;  %v7094_v24 = vld [vmem:[#allocation6 + $0x824] sm:$0xf] }
  0x59   :  { %824 = vmatpush.bf16.msrb.mxu3 %v4774_v52  ;;  %v5126_v52 = vor.u32 %v7134_v42, %v5123_v43  ;;  %v4926_v53 = vor.u32 %v7084_v44, %v4923_v47  ;;  %v4971_v13 = vld [vmem:[#allocation6 + $0x898] sm:$0xf0]  ;;  %v7128_v19 = vld [vmem:[#allocation6 + $0xd74] sm:$0xf]  ;;  %v5027_v27 = vld [vmem:[#allocation6 + $0xac8] sm:$0xf0] }
  0x5a   :  { %786 = vmatpush.bf16.msrb.mxu0 %v5018_v63  ;;  %v7098_v63 = vld [vmem:[#allocation6 + $0x8c4] sm:$0xf]  ;;  %v4974_v18 = vor.u32 %v7096_v12, %v4971_v13  ;;  %v5091_v33 = vld [vmem:[#allocation6 + $0xd48] sm:$0xf0]  ;;  %v7076_v34 = vld [vmem:[#allocation6 + $0x554] sm:$0xf] }
  0x5b   :  { %799 = vmatpush.bf16.msrb.mxu1 %v5082_v3  ;;  %v5118_v3 = vor.u32 %v7132_v56, %v5115_v57  ;;  %v4982_v5 = vor.u32 %v7098_v63, %v4979_v0  ;;  %v7126_v32 = vld [vmem:[#allocation6 + $0xd24] sm:$0xf]  ;;  %v4891_v37 = vld [vmem:[#allocation6 + $0x578] sm:$0xf0]  ;;  %v7092_v38 = vld [vmem:[#allocation6 + $0x7d4] sm:$0xf] }
  0x5c   :  { %837 = vmatpush.bf16.msra.mxu2 %v4838_v60  ;;  %v4915_v60 = vld [vmem:[#allocation6 + $0x668] sm:$0xf0]  ;;  %v5094_v42 = vor.u32 %v7126_v32, %v5091_v33  ;;  %v7124_v43 = vld [vmem:[#allocation6 + $0xcd4] sm:$0xf]  ;;  %v5083_v44 = vld [vmem:[#allocation6 + $0xcf8] sm:$0xf0] }
  0x5d   :  { %825 = vmatpush.bf16.msrb.mxu3 %v4766_v4  ;;  %v4918_v4 = vor.u32 %v7082_v58, %v4915_v60  ;;  %v7074_v48 = vld [vmem:[#allocation6 + $0x504] sm:$0xf]  ;;  %v4883_v49 = vld [vmem:[#allocation6 + $0x528] sm:$0xf0]  ;;  %v5203_v56 = vld [vmem:[#allocation6 + $0x238] sm:$0xf] }
  0x5e   :  { %787 = vmatpush.bf16.msrb.mxu0 %v5010_v16  ;;  %v5110_v16 = vor.u32 %v7130_v6, %v5107_v7  ;;  %v7090_v50 = vld [vmem:[#allocation6 + $0x784] sm:$0xf]  ;;  %v7155_v57 = vld [vmem:[#allocation6 + $0x25c] sm:$0xf0]  ;;  %v5267_v58 = vld [vmem:[#allocation6 + $0x4b8] sm:$0xf]  ;;  %v4886_v1 = vor.u32 %v7074_v48, %v4883_v49 }
  0x5f   :  { %800 = vmatpush.bf16.msrb.mxu1 %v5074_v20  ;;  %v5099_v20 = vld [vmem:[#allocation6 + $0xd98] sm:$0xf0]  ;;  %v7171_v60 = vld [vmem:[#allocation6 + $0x4dc] sm:$0xf0]  ;;  %v7138_v63 = vld [vmem:[#allocation6 + $0xf04] sm:$0xf]  ;;  %v5204_v7 = vor.u32 %v7155_v57, %v5203_v56 }
  0x60   :  { %838 = vmatpush.bf16.msra.mxu2 %v4830_v15  ;;  %v5035_v15 = vld [vmem:[#allocation6 + $0xb18] sm:$0xf0]  ;;  %v5102_v28 = vor.u32 %v7128_v19, %v5099_v20  ;;  %v5139_v0 = vld [vmem:[#allocation6 + $0xf28] sm:$0xf0]  ;;  %v7203_v9 = vld [vmem:[#allocation6 + $0x9dc] sm:$0xf0]  ;;  %v5268_v12 = vor.u32 %v7171_v60, %v5267_v58 }
  0x61   :  { %826 = vmatpush.bf16.msrb.mxu3 %v4758_v21  ;;  %788 = vmatmul.bf16.vlgmr.msrb.gmra.mxu0 %v7896_v31  ;;  %v7078_v21 = vld [vmem:[#allocation6 + $0x5a4] sm:$0xf]  ;;  %v5038_v22 = vor.u32 %v7112_v14, %v5035_v15  ;;  %v7187_v11 = vld [vmem:[#allocation6 + $0x75c] sm:$0xf0]  ;;  %v5195_v13 = vld [vmem:[#allocation6 + $0x1e8] sm:$0xf]  ;;  %v5142_v15 = vor.u32 %v7138_v63, %v5139_v0 }
  0x62   :  { %845 = vmatpush.bf16.msra.mxu0 %v4942_v25  ;;  %801 = vmatmul.bf16.vlgmr.msrb.gmra.mxu1 %v7898_v36  ;;  %v4963_v25 = vld [vmem:[#allocation6 + $0x848] sm:$0xf0]  ;;  %v4902_v29 = vor.u32 %v7078_v21, %v4899_v23  ;;  %v7153_v14 = vld [vmem:[#allocation6 + $0x20c] sm:$0xf0]  ;;  %v5387_v21 = vld [vmem:[#allocation6 + $0x968] sm:$0xf] }
  0x63   :  { %858 = vmatpush.bf16.msra.mxu1 %v5006_v26  ;;  %v7110_v26 = vld [vmem:[#allocation6 + $0xaa4] sm:$0xf]  ;;  %v7201_v23 = vld [vmem:[#allocation6 + $0x98c] sm:$0xf0]  ;;  %v5371_v48 = vld [vmem:[#allocation6 + $0x8c8] sm:$0xf] }
  0x64   :  { %839 = vmatpush.bf16.msra.mxu2 %v4822_v35  ;;  %827 = vmatmul.bf16.vlgmr.msrb.gmra.mxu3 %v7882_v61  ;;  %v5030_v35 = vor.u32 %v7110_v26, %v5027_v27  ;;  %v5187_v27 = vld [vmem:[#allocation6 + $0x198] sm:$0xf]  ;;  %v5388_v32 = vor.u32 %v7201_v23, %v5387_v21  ;;  %v7147_v56 = vld [vmem:[#allocation6 + $0x11c] sm:$0xf0] }
  0x65   :  { %871 = vmatpush.bf16.msra.mxu3 %v5070_v30  ;;  %v4966_v30 = vor.u32 %v7094_v24, %v4963_v25  ;;  %v5323_v24 = vld [vmem:[#allocation6 + $0x6e8] sm:$0xf]  ;;  %v7185_v25 = vld [vmem:[#allocation6 + $0x70c] sm:$0xf0]  ;;  %v5235_v57 = vld [vmem:[#allocation6 + $0x378] sm:$0xf] }
  0x66   :  { %846 = vmatpush.bf16.msra.mxu0 %v4934_v40  ;;  %v7108_v40 = vld [vmem:[#allocation6 + $0xa54] sm:$0xf]  ;;  %v5324_v33 = vor.u32 %v7185_v25, %v5323_v24  ;;  %v7163_v58 = vld [vmem:[#allocation6 + $0x39c] sm:$0xf0]  ;;  %v5363_v63 = vld [vmem:[#allocation6 + $0x878] sm:$0xf] }
  0x67   :  { %859 = vmatpush.bf16.msra.mxu1 %v4998_v41  ;;  %840 = vmatmul.bf16.vlgmr.msra.gmra.mxu2 %v7887_v8  ;;  %v5019_v41 = vld [vmem:[#allocation6 + $0xa78] sm:$0xf0]  ;;  %v7159_v21 = vld [vmem:[#allocation6 + $0x2fc] sm:$0xf0]  ;;  %v5347_v24 = vld [vmem:[#allocation6 + $0x7d8] sm:$0xf] }
  0x68   :  { %884 = vmatpush.bf16.msrb.mxu2 %v5134_v39  ;;  %v4955_v39 = vld [vmem:[#allocation6 + $0x7f8] sm:$0xf0]  ;;  %v5022_v51 = vor.u32 %v7108_v40, %v5019_v41  ;;  %v5179_v41 = vld [vmem:[#allocation6 + $0x148] sm:$0xf]  ;;  %v7191_v25 = vld [vmem:[#allocation6 + $0x7fc] sm:$0xf0] }
  0x69   :  { %872 = vmatpush.bf16.msra.mxu3 %v5062_v45  ;;  %v4894_v45 = vor.u32 %v7076_v34, %v4891_v37  ;;  %v4958_v47 = vor.u32 %v7092_v38, %v4955_v39  ;;  %v5379_v34 = vld [vmem:[#allocation6 + $0x918] sm:$0xf]  ;;  %v7199_v37 = vld [vmem:[#allocation6 + $0x93c] sm:$0xf0] }
  0x6a   :  { %847 = vmatpush.bf16.msra.mxu0 %v4926_v53  ;;  %v7106_v53 = vld [vmem:[#allocation6 + $0xa04] sm:$0xf]  ;;  %v5315_v38 = vld [vmem:[#allocation6 + $0x698] sm:$0xf]  ;;  %v7183_v39 = vld [vmem:[#allocation6 + $0x6bc] sm:$0xf0] }
  0x6b   :  { %860 = vmatpush.bf16.msra.mxu1 %v4990_v55  ;;  %v5011_v55 = vld [vmem:[#allocation6 + $0xa28] sm:$0xf0] }
  0x6c   :  { %885 = vmatpush.bf16.msrb.mxu2 %v5126_v52  ;;  %v4947_v52 = vld [vmem:[#allocation6 + $0x7a8] sm:$0xf0]  ;;  %v5014_v6 = vor.u32 %v7106_v53, %v5011_v55  ;;  %v5171_v55 = vld [vmem:[#allocation6 + $0xf8] sm:$0xf] }
  0x6d   :  { %873 = vmatpush.bf16.msra.mxu3 %v5054_v59  ;;  %v5086_v59 = vor.u32 %v7124_v43, %v5083_v44  ;;  %v4950_v2 = vor.u32 %v7090_v50, %v4947_v52  ;;  %v5243_v43 = vld [vmem:[#allocation6 + $0x3c8] sm:$0xf]  ;;  %v7165_v44 = vld [vmem:[#allocation6 + $0x3ec] sm:$0xf0]  ;;  %v5172_v0 = vor.u32 %v7147_v56, %v5171_v55 }
  0x6e   :  { %848 = vmatpush.bf16.msra.mxu0 %v4918_v4  ;;  %v5075_v4 = vld [vmem:[#allocation6 + $0xca8] sm:$0xf0]  ;;  %v7197_v50 = vld [vmem:[#allocation6 + $0x8ec] sm:$0xf0]  ;;  %v5244_v53 = vor.u32 %v7165_v44, %v5243_v43  ;;  %v5451_v56 = vld [vmem:[#allocation6 + $0xbe8] sm:$0xf] }
  0x6f   :  { %861 = vmatpush.bf16.msra.mxu1 %v4982_v5  ;;  %v5395_v5 = vld [vmem:[#allocation6 + $0x9b8] sm:$0xf]  ;;  %v7181_v52 = vld [vmem:[#allocation6 + $0x66c] sm:$0xf0] }
  0x70   :  { %886 = vmatpush.bf16.msrb.mxu2 %v5118_v3  ;;  %v7122_v3 = vld [vmem:[#allocation6 + $0xc84] sm:$0xf]  ;;  %v5396_v19 = vor.u32 %v7203_v9, %v5395_v5  ;;  %v5163_v5 = vld [vmem:[#allocation6 + $0xa8] sm:$0xf]  ;;  %v7161_v9 = vld [vmem:[#allocation6 + $0x34c] sm:$0xf0] }
  0x71   :  { %874 = vmatpush.bf16.msra.mxu3 %v5046_v10  ;;  %v5331_v10 = vld [vmem:[#allocation6 + $0x738] sm:$0xf]  ;;  %v7189_v43 = vld [vmem:[#allocation6 + $0x7ac] sm:$0xf0] }
  0x72   :  { %849 = vmatpush.bf16.msra.mxu0 %v4910_v17  ;;  %v5259_v17 = vld [vmem:[#allocation6 + $0x468] sm:$0xf]  ;;  %v5332_v20 = vor.u32 %v7187_v11, %v5331_v10 }
  0x73   :  { %862 = vmatpush.bf16.msra.mxu1 %v4974_v18  ;;  %v7169_v18 = vld [vmem:[#allocation6 + $0x48c] sm:$0xf0] }
  0x74   :  { %887 = vmatpush.bf16.msrb.mxu2 %v5110_v16  ;;  %v5078_v16 = vor.u32 %v7122_v3, %v5075_v4  ;;  %v5260_v26 = vor.u32 %v7169_v18, %v5259_v17  ;;  %v7179_v3 = vld [vmem:[#allocation6 + $0x61c] sm:$0xf0]  ;;  %v5236_v4 = vor.u32 %v7163_v58, %v5235_v57  ;;  %v5155_v18 = vld [vmem:[#allocation6 + $0x58] sm:$0xf]  ;;  %v7217_v57 = vld [vmem:[#allocation6 + $0xc0c] sm:$0xf0] }
  0x75   :  { %875 = vmatpush.bf16.msra.mxu3 %v5038_v22  ;;  %v5196_v22 = vor.u32 %v7153_v14, %v5195_v13  ;;  %v7193_v14 = vld [vmem:[#allocation6 + $0x84c] sm:$0xf0] }
  0x76   :  { %850 = vmatpush.bf16.msra.mxu0 %v4902_v29  ;;  %v5251_v29 = vld [vmem:[#allocation6 + $0x418] sm:$0xf] }
  0x77   :  { %863 = vmatpush.bf16.msra.mxu1 %v4966_v30  ;;  %v7167_v30 = vld [vmem:[#allocation6 + $0x43c] sm:$0xf0] }
  0x78   :  { %888 = vmatpush.bf16.msrb.mxu2 %v5102_v28  ;;  %v7151_v28 = vld [vmem:[#allocation6 + $0x1bc] sm:$0xf0]  ;;  %v5252_v40 = vor.u32 %v7167_v30, %v5251_v29 }
  0x79   :  { %876 = vmatpush.bf16.msra.mxu3 %v5030_v35  ;;  %v5188_v35 = vor.u32 %v7151_v28, %v5187_v27  ;;  %v5147_v27 = vld [vmem:[#allocation6 + $0x8] sm:$0xf]  ;;  %v5283_v28 = vld [vmem:[#allocation6 + $0x558] sm:$0xf]  ;;  %v7175_v29 = vld [vmem:[#allocation6 + $0x57c] sm:$0xf0] }
  0x7a   :  { %851 = vmatpush.bf16.msra.mxu0 %v4894_v45  ;;  %v5380_v45 = vor.u32 %v7199_v37, %v5379_v34  ;;  %v7157_v34 = vld [vmem:[#allocation6 + $0x2ac] sm:$0xf0]  ;;  %v7219_v37 = vld [vmem:[#allocation6 + $0xc5c] sm:$0xf0] }
  0x7b   :  { %864 = vmatpush.bf16.msra.mxu1 %v4958_v47  ;;  %v5316_v47 = vor.u32 %v7183_v39, %v5315_v38  ;;  %v5523_v38 = vld [vmem:[#allocation6 + $0xeb8] sm:$0xf]  ;;  %v5348_v39 = vor.u32 %v7191_v25, %v5347_v24  ;;  %v7229_v24 = vld [vmem:[#allocation6 + $0xdec] sm:$0xf0] }
  0x7c   :  { %889 = vmatpush.bf16.msrb.mxu2 %v5094_v42  ;;  %v7149_v42 = vld [vmem:[#allocation6 + $0x16c] sm:$0xf0] }
  0x7d   :  { %877 = vmatpush.bf16.msra.mxu3 %v5022_v51  ;;  %v5180_v49 = vor.u32 %v7149_v42, %v5179_v41  ;;  %v5307_v51 = vld [vmem:[#allocation6 + $0x648] sm:$0xf]  ;;  %v5284_v41 = vor.u32 %v7175_v29, %v5283_v28  ;;  %v5253_v28 = vld [vmem:[#allocation6 + $0x440] sm:$0xf0] }
  0x7e   :  { %852 = vmatpush.bf16.msra.mxu0 %v4886_v1  ;;  %v5308_v60 = vor.u32 %v7181_v52, %v5307_v51  ;;  %v7195_v1 = vld [vmem:[#allocation6 + $0x89c] sm:$0xf0]  ;;  %v5339_v42 = vld [vmem:[#allocation6 + $0x788] sm:$0xf]  ;;  %v5205_v51 = vld [vmem:[#allocation6 + $0x260] sm:$0xf0] }
  0x7f   :  { %865 = vmatpush.bf16.msra.mxu1 %v4950_v2  ;;  %v5299_v2 = vld [vmem:[#allocation6 + $0x5f8] sm:$0xf]  ;;  %v5364_v10 = vor.u32 %v7195_v1, %v5363_v63  ;;  %v5531_v52 = vld [vmem:[#allocation6 + $0xf08] sm:$0xf]  ;;  %v5340_v58 = vor.u32 %v7189_v43, %v5339_v42  ;;  %v5245_v42 = vld [vmem:[#allocation6 + $0x3f0] sm:$0xf0] }
  0x80   :  { %890 = vmatpush.bf16.msrb.mxu2 %v5086_v59  ;;  %v5372_v59 = vor.u32 %v7197_v50, %v5371_v48  ;;  %v5300_v11 = vor.u32 %v7179_v3, %v5299_v2  ;;  %v7173_v48 = vld [vmem:[#allocation6 + $0x52c] sm:$0xf0]  ;;  %v7170_v2 = vld [vmem:[#allocation6 + $0x4bc] sm:$0xf]  ;;  %v5269_v3 = vld [vmem:[#allocation6 + $0x4e0] sm:$0xf0] }
  0x81   :  { %878 = vmatpush.bf16.msra.mxu3 %v5014_v6  ;;  %853 = vmatmul.bf16.vlgmr.msra.gmra.mxu0 %v7880_v54  ;;  %v7145_v6 = vld [vmem:[#allocation6 + $0xcc] sm:$0xf0] }
  0x82   :  { %904 = vmatpush.bf16.msrb.mxu0 %v5142_v15  ;;  %866 = vmatmul.bf16.vlgmr.msra.gmra.mxu1 %v7884_v62  ;;  %v5164_v13 = vor.u32 %v7145_v6, %v5163_v5  ;;  %v5291_v15 = vld [vmem:[#allocation6 + $0x5a8] sm:$0xf]  ;;  %v7152_v5 = vld [vmem:[#allocation6 + $0x1ec] sm:$0xf]  ;;  %v5197_v6 = vld [vmem:[#allocation6 + $0x210] sm:$0xf0] }
  0x83   :  { %1504 = vmatpush.bf16.msrb.mxu1 %v5204_v7  ;;  %v5227_v7 = vld [vmem:[#allocation6 + $0x328] sm:$0xf] }
  0x84   :  { %891 = vmatpush.bf16.msrb.mxu2 %v5078_v16  ;;  %879 = vmatmul.bf16.vlgmr.msra.gmra.mxu3 %v7896_v31  ;;  %v7177_v16 = vld [vmem:[#allocation6 + $0x5cc] sm:$0xf0]  ;;  %v5228_v17 = vor.u32 %v7161_v9, %v5227_v7  ;;  %v5443_v9 = vld [vmem:[#allocation6 + $0xb98] sm:$0xf] }
  0x85   :  { %1517 = vmatpush.bf16.msrb.mxu3 %v5268_v12  ;;  %v5355_v12 = vld [vmem:[#allocation6 + $0x828] sm:$0xf]  ;;  %v5292_v23 = vor.u32 %v7177_v16, %v5291_v15  ;;  %v7168_v15 = vld [vmem:[#allocation6 + $0x46c] sm:$0xf]  ;;  %v5261_v16 = vld [vmem:[#allocation6 + $0x490] sm:$0xf0] }
  0x86   :  { %1530 = vmatpush.bf16.msra.mxu0 %v5332_v20  ;;  %v5219_v20 = vld [vmem:[#allocation6 + $0x2d8] sm:$0xf]  ;;  %v5264_v25 = vor.u32 %v7168_v15, %v5261_v16  ;;  %v7221_v15 = vld [vmem:[#allocation6 + $0xcac] sm:$0xf0]  ;;  %v7186_v16 = vld [vmem:[#allocation6 + $0x73c] sm:$0xf] }
  0x87   :  { %1505 = vmatpush.bf16.msrb.mxu1 %v5196_v22  ;;  %892 = vmatmul.bf16.vlgmr.msrb.gmra.mxu2 %v7898_v36  ;;  %v5356_v22 = vor.u32 %v7193_v14, %v5355_v12  ;;  %v5220_v30 = vor.u32 %v7159_v21, %v5219_v20  ;;  %v7231_v12 = vld [vmem:[#allocation6 + $0xe3c] sm:$0xf0]  ;;  %v5200_v14 = vor.u32 %v7152_v5, %v5197_v6  ;;  %v5435_v21 = vld [vmem:[#allocation6 + $0xb48] sm:$0xf]  ;;  %v7160_v5 = vld [vmem:[#allocation6 + $0x32c] sm:$0xf] }
  0x88   :  { %1543 = vmatpush.bf16.msra.mxu2 %v5396_v19  ;;  %v7143_v19 = vld [vmem:[#allocation6 + $0x7c] sm:$0xf0]  ;;  %v5229_v6 = vld [vmem:[#allocation6 + $0x350] sm:$0xf0] }
  0x89   :  { %1518 = vmatpush.bf16.msrb.mxu3 %v5260_v26  ;;  %v5156_v26 = vor.u32 %v7143_v19, %v5155_v18  ;;  %v7150_v18 = vld [vmem:[#allocation6 + $0x19c] sm:$0xf]  ;;  %v5189_v19 = vld [vmem:[#allocation6 + $0x1c0] sm:$0xf0] }
  0x8a   :  { %1531 = vmatpush.bf16.msra.mxu0 %v5324_v33  ;;  %v5211_v33 = vld [vmem:[#allocation6 + $0x288] sm:$0xf] }
  0x8b   :  { %1506 = vmatpush.bf16.msrb.mxu1 %v5188_v35  ;;  %v5459_v35 = vld [vmem:[#allocation6 + $0xc38] sm:$0xf] }
  0x8c   :  { %1544 = vmatpush.bf16.msra.mxu2 %v5388_v32  ;;  %v7141_v32 = vld [vmem:[#allocation6 + $0x2c] sm:$0xf0]  ;;  %v5460_v50 = vor.u32 %v7219_v37, %v5459_v35  ;;  %v7211_v35 = vld [vmem:[#allocation6 + $0xb1c] sm:$0xf0]  ;;  %v5491_v37 = vld [vmem:[#allocation6 + $0xd78] sm:$0xf] }
  0x8d   :  { %1519 = vmatpush.bf16.msrb.mxu3 %v5252_v40  ;;  %v7235_v40 = vld [vmem:[#allocation6 + $0xedc] sm:$0xf0]  ;;  %v5148_v44 = vor.u32 %v7141_v32, %v5147_v27  ;;  %v7166_v27 = vld [vmem:[#allocation6 + $0x41c] sm:$0xf]  ;;  %v5181_v32 = vld [vmem:[#allocation6 + $0x170] sm:$0xf0] }
  0x8e   :  { %1532 = vmatpush.bf16.msra.mxu0 %v5316_v47  ;;  %v5275_v47 = vld [vmem:[#allocation6 + $0x508] sm:$0xf]  ;;  %v5524_v55 = vor.u32 %v7235_v40, %v5523_v38  ;;  %v7227_v38 = vld [vmem:[#allocation6 + $0xd9c] sm:$0xf0] }
  0x8f   :  { %1507 = vmatpush.bf16.msrb.mxu1 %v5180_v49  ;;  %v5212_v49 = vor.u32 %v7157_v34, %v5211_v33  ;;  %v5276_v63 = vor.u32 %v7173_v48, %v5275_v47  ;;  %v5427_v34 = vld [vmem:[#allocation6 + $0xaf8] sm:$0xf]  ;;  %v5492_v47 = vor.u32 %v7227_v38, %v5491_v37  ;;  %v5419_v48 = vld [vmem:[#allocation6 + $0xaa8] sm:$0xf] }
  0x90   :  { %1545 = vmatpush.bf16.msra.mxu2 %v5380_v45  ;;  %v7154_v45 = vld [vmem:[#allocation6 + $0x23c] sm:$0xf]  ;;  %v5428_v43 = vor.u32 %v7211_v35, %v5427_v34  ;;  %v5325_v34 = vld [vmem:[#allocation6 + $0x710] sm:$0xf0]  ;;  %v7200_v35 = vld [vmem:[#allocation6 + $0x96c] sm:$0xf] }
  0x91   :  { %1520 = vmatpush.bf16.msrb.mxu3 %v5244_v53  ;;  %5144 = vmatmul.msk.bf16.vlgmr.msrb.gmra.mxu0 %vm724_vm0, %v7892_v46  ;;  %v7237_v53 = vld [vmem:[#allocation6 + $0xf2c] sm:$0xf0] }
  0x92   :  { %1533 = vmatpush.bf16.msra.mxu0 %v5308_v60  ;;  %v7233_v60 = vld [vmem:[#allocation6 + $0xe8c] sm:$0xf0]  ;;  %v5532_v1 = vor.u32 %v7237_v53, %v5531_v52 }
  0x93   :  { %1508 = vmatpush.bf16.msrb.mxu1 %v5172_v0  ;;  %v5208_v0 = vor.u32 %v7154_v45, %v5205_v51  ;;  %v5173_v45 = vld [vmem:[#allocation6 + $0x120] sm:$0xf0]  ;;  %v7225_v51 = vld [vmem:[#allocation6 + $0xd4c] sm:$0xf0] }
  0x94   :  { %1546 = vmatpush.bf16.msra.mxu2 %v5372_v59  ;;  %v5515_v59 = vld [vmem:[#allocation6 + $0xe68] sm:$0xf] }
  0x95   :  { %1521 = vmatpush.bf16.msrb.mxu3 %v5236_v4  ;;  %v5452_v4 = vor.u32 %v7217_v57, %v5451_v56  ;;  %v5516_v7 = vor.u32 %v7233_v60, %v5515_v59  ;;  %v5237_v56 = vld [vmem:[#allocation6 + $0x3a0] sm:$0xf0]  ;;  %v5165_v59 = vld [vmem:[#allocation6 + $0xd0] sm:$0xf0] }
  0x96   :  { %1534 = vmatpush.bf16.msra.mxu0 %v5300_v11  ;;  %v5507_v11 = vld [vmem:[#allocation6 + $0xe18] sm:$0xf] }
  0x97   :  { %1509 = vmatpush.bf16.msrb.mxu1 %v5164_v13  ;;  %v5272_v13 = vor.u32 %v7170_v2, %v5269_v3  ;;  %v5508_v20 = vor.u32 %v7231_v12, %v5507_v11  ;;  %v7223_v2 = vld [vmem:[#allocation6 + $0xcfc] sm:$0xf0]  ;;  %v5403_v11 = vld [vmem:[#allocation6 + $0xa08] sm:$0xf] }
  0x98   :  { %1547 = vmatpush.bf16.msra.mxu2 %v5364_v10  ;;  %v7215_v10 = vld [vmem:[#allocation6 + $0xbbc] sm:$0xf0] }
  0x99   :  { %1522 = vmatpush.bf16.msrb.mxu3 %v5228_v17  ;;  %v5444_v17 = vor.u32 %v7215_v10, %v5443_v9  ;;  %v7142_v9 = vld [vmem:[#allocation6 + $0x5c] sm:$0xf]  ;;  %v5157_v10 = vld [vmem:[#allocation6 + $0x80] sm:$0xf0] }
  0x9a   :  { %1535 = vmatpush.bf16.msra.mxu0 %v5292_v23  ;;  %v5499_v23 = vld [vmem:[#allocation6 + $0xdc8] sm:$0xf] }
  0x9b   :  { %1510 = vmatpush.bf16.msrb.mxu1 %v5156_v26  ;;  %v5192_v26 = vor.u32 %v7150_v18, %v5189_v19  ;;  %v5500_v33 = vor.u32 %v7229_v24, %v5499_v23  ;;  %v7202_v18 = vld [vmem:[#allocation6 + $0x9bc] sm:$0xf]  ;;  %v5232_v19 = vor.u32 %v7160_v5, %v5229_v6  ;;  %v5221_v23 = vld [vmem:[#allocation6 + $0x300] sm:$0xf0]  ;;  %v7196_v5 = vld [vmem:[#allocation6 + $0x8cc] sm:$0xf] }
  0x9c   :  { %1548 = vmatpush.bf16.msra.mxu2 %v5356_v22  ;;  %v7213_v22 = vld [vmem:[#allocation6 + $0xb6c] sm:$0xf0]  ;;  %v5373_v6 = vld [vmem:[#allocation6 + $0x8f0] sm:$0xf0] }
  0x9d   :  { %1523 = vmatpush.bf16.msrb.mxu3 %v5220_v30  ;;  %v5436_v29 = vor.u32 %v7213_v22, %v5435_v21  ;;  %v7148_v30 = vld [vmem:[#allocation6 + $0x14c] sm:$0xf]  ;;  %v5397_v21 = vld [vmem:[#allocation6 + $0x9e0] sm:$0xf0]  ;;  %v7158_v22 = vld [vmem:[#allocation6 + $0x2dc] sm:$0xf] }
  0x9e   :  { %1536 = vmatpush.bf16.msra.mxu0 %v5284_v41  ;;  %v5184_v40 = vor.u32 %v7148_v30, %v5181_v32  ;;  %v7164_v41 = vld [vmem:[#allocation6 + $0x3cc] sm:$0xf]  ;;  %v5461_v30 = vld [vmem:[#allocation6 + $0xc60] sm:$0xf0]  ;;  %v5400_v32 = vor.u32 %v7202_v18, %v5397_v21  ;;  %v5224_v37 = vor.u32 %v7158_v22, %v5221_v23 }
  0x9f   :  { %1511 = vmatpush.bf16.msrb.mxu1 %v5148_v44  ;;  %v7146_v44 = vld [vmem:[#allocation6 + $0xfc] sm:$0xf]  ;;  %v5248_v52 = vor.u32 %v7164_v41, %v5245_v42  ;;  %v5213_v41 = vld [vmem:[#allocation6 + $0x2b0] sm:$0xf0]  ;;  %v5301_v18 = vld [vmem:[#allocation6 + $0x620] sm:$0xf0] }
  0xa0   :  { %1549 = vmatpush.bf16.msra.mxu2 %v5348_v39  ;;  %v5256_v39 = vor.u32 %v7166_v27, %v5253_v28  ;;  %v5176_v53 = vor.u32 %v7146_v44, %v5173_v45  ;;  %v5525_v44 = vld [vmem:[#allocation6 + $0xee0] sm:$0xf0] }
  0xa1   :  { %1524 = vmatpush.bf16.msrb.mxu3 %v5212_v49  ;;  %v7209_v49 = vld [vmem:[#allocation6 + $0xacc] sm:$0xf0] }
  0xa2   :  { %1537 = vmatpush.bf16.msra.mxu0 %v5276_v63  ;;  %1512 = vmatmul.bf16.vlgmr.msrb.gmra.mxu1 %v7882_v61  ;;  %v5420_v57 = vor.u32 %v7209_v49, %v5419_v48  ;;  %v5411_v63 = vld [vmem:[#allocation6 + $0xa58] sm:$0xf]  ;;  %v5453_v48 = vld [vmem:[#allocation6 + $0xc10] sm:$0xf0] }
  0xa3   :  { %1556 = vmatpush.bf16.msra.mxu1 %v5460_v50  ;;  %v5483_v50 = vld [vmem:[#allocation6 + $0xd28] sm:$0xf] }
  0xa4   :  { %1550 = vmatpush.bf16.msra.mxu2 %v5340_v58  ;;  %1525 = vmatmul.bf16.vlgmr.msrb.gmra.mxu3 %v7887_v8  ;;  %v7144_v58 = vld [vmem:[#allocation6 + $0xac] sm:$0xf]  ;;  %v5484_v60 = vor.u32 %v7225_v51, %v5483_v50  ;;  %v7182_v50 = vld [vmem:[#allocation6 + $0x69c] sm:$0xf]  ;;  %v5317_v51 = vld [vmem:[#allocation6 + $0x6c0] sm:$0xf0] }
  0xa5   :  { %1569 = vmatpush.bf16.msra.mxu3 %v5524_v55  ;;  %1538 = vmatmul.bf16.vlgmr.msra.gmra.mxu0 %v7880_v54  ;;  %v7162_v55 = vld [vmem:[#allocation6 + $0x37c] sm:$0xf] }
  0xa6   :  { %1589 = vmatpush.bf16.msrb.mxu0 %v5532_v1  ;;  %v5475_v1 = vld [vmem:[#allocation6 + $0xcd8] sm:$0xf]  ;;  %v5240_v3 = vor.u32 %v7162_v55, %v5237_v56  ;;  %v5381_v55 = vld [vmem:[#allocation6 + $0x940] sm:$0xf0] }
  0xa7   :  { %1557 = vmatpush.bf16.msra.mxu1 %v5452_v4  ;;  %1551 = vmatmul.bf16.vlgmr.msra.gmra.mxu2 %v7884_v62  ;;  %v5168_v4 = vor.u32 %v7144_v58, %v5165_v59  ;;  %v5476_v12 = vor.u32 %v7223_v2, %v5475_v1  ;;  %v7232_v58 = vld [vmem:[#allocation6 + $0xe6c] sm:$0xf]  ;;  %v5517_v59 = vld [vmem:[#allocation6 + $0xe90] sm:$0xf0]  ;;  %v7918_v1 = vld [vmem:[#allocation8] sm:$0x3] }
  0xa8   :  { %1595 = vmatpush.bf16.msrb.mxu2 %v5208_v0  ;;  %v7207_v0 = vld [vmem:[#allocation6 + $0xa7c] sm:$0xf0] }
  0xa9   :  { %1570 = vmatpush.bf16.msra.mxu3 %v5516_v7  ;;  %v5412_v7 = vor.u32 %v7207_v0, %v5411_v63  ;;  %v7214_v63 = vld [vmem:[#allocation6 + $0xb9c] sm:$0xf]  ;;  %v5445_v0 = vld [vmem:[#allocation6 + $0xbc0] sm:$0xf0] }
  0xaa   :  { %1608 = vmatpush.bf16.msra.mxu0 %v5272_v13  ;;  %v7205_v13 = vld [vmem:[#allocation6 + $0xa2c] sm:$0xf0] }
  0xab   :  { %1558 = vmatpush.bf16.msra.mxu1 %v5444_v17  ;;  %v5333_v17 = vld [vmem:[#allocation6 + $0x760] sm:$0xf0]  ;;  %v5404_v24 = vor.u32 %v7205_v13, %v5403_v11 }
  0xac   :  { %1596 = vmatpush.bf16.msrb.mxu2 %v5200_v14  ;;  %v5467_v14 = vld [vmem:[#allocation6 + $0xc88] sm:$0xf]  ;;  %v5336_v28 = vor.u32 %v7186_v16, %v5333_v17  ;;  %v5509_v11 = vld [vmem:[#allocation6 + $0xe40] sm:$0xf0]  ;;  %v5376_v16 = vor.u32 %v7196_v5, %v5373_v6  ;;  %v7178_v17 = vld [vmem:[#allocation6 + $0x5fc] sm:$0xf] }
  0xad   :  { %1571 = vmatpush.bf16.msra.mxu3 %v5508_v20  ;;  %v5160_v20 = vor.u32 %v7142_v9, %v5157_v10  ;;  %v5468_v27 = vor.u32 %v7221_v15, %v5467_v14  ;;  %v5448_v9 = vor.u32 %v7214_v63, %v5445_v0  ;;  %v7230_v10 = vld [vmem:[#allocation6 + $0xe1c] sm:$0xf]  ;;  %v7212_v14 = vld [vmem:[#allocation6 + $0xb4c] sm:$0xf]  ;;  %v5437_v15 = vld [vmem:[#allocation6 + $0xb70] sm:$0xf0] }
  0xae   :  { %1609 = vmatpush.bf16.msra.mxu0 %v5264_v25  ;;  %v7140_v25 = vld [vmem:[#allocation6 + $0xc] sm:$0xf]  ;;  %v5512_v21 = vor.u32 %v7230_v10, %v5509_v11  ;;  %v5440_v23 = vor.u32 %v7212_v14, %v5437_v15  ;;  %v7206_v0 = vld [vmem:[#allocation6 + $0xa5c] sm:$0xf]  ;;  %v5277_v6 = vld [vmem:[#allocation6 + $0x530] sm:$0xf0] }
  0xaf   :  { %1559 = vmatpush.bf16.msra.mxu1 %v5436_v29  ;;  %v7218_v29 = vld [vmem:[#allocation6 + $0xc3c] sm:$0xf]  ;;  %v5597_v10 = vld [vmem:[#allocation6 + $0x240] sm:$0xf] }
  0xb0   :  { %1597 = vmatpush.bf16.msrb.mxu2 %v5192_v26  ;;  %v5149_v26 = vld [vmem:[#allocation6 + $0x30] sm:$0xf0]  ;;  %v5464_v42 = vor.u32 %v7218_v29, %v5461_v30  ;;  %v5429_v29 = vld [vmem:[#allocation6 + $0xb20] sm:$0xf0] }
  0xb1   :  { %1572 = vmatpush.bf16.msra.mxu3 %v5500_v33  ;;  %v7184_v33 = vld [vmem:[#allocation6 + $0x6ec] sm:$0xf]  ;;  %v5152_v38 = vor.u32 %v7140_v25, %v5149_v26  ;;  %v5501_v26 = vld [vmem:[#allocation6 + $0xdf0] sm:$0xf0] }
  0xb2   :  { %1610 = vmatpush.bf16.msra.mxu0 %v5256_v39  ;;  %v5389_v39 = vld [vmem:[#allocation6 + $0x990] sm:$0xf0]  ;;  %v5328_v45 = vor.u32 %v7184_v33, %v5325_v34  ;;  %v7228_v25 = vld [vmem:[#allocation6 + $0xdcc] sm:$0xf] }
  0xb3   :  { %1560 = vmatpush.bf16.msra.mxu1 %v5428_v43  ;;  %v7234_v43 = vld [vmem:[#allocation6 + $0xebc] sm:$0xf]  ;;  %v5392_v49 = vor.u32 %v7200_v35, %v5389_v39  ;;  %v5293_v33 = vld [vmem:[#allocation6 + $0x5d0] sm:$0xf0]  ;;  %v7192_v34 = vld [vmem:[#allocation6 + $0x82c] sm:$0xf] }
  0xb4   :  { %1598 = vmatpush.bf16.msrb.mxu2 %v5184_v40  ;;  %v7156_v40 = vld [vmem:[#allocation6 + $0x28c] sm:$0xf]  ;;  %v5528_v56 = vor.u32 %v7234_v43, %v5525_v44  ;;  %v5357_v35 = vld [vmem:[#allocation6 + $0x850] sm:$0xf0] }
  0xb5   :  { %1573 = vmatpush.bf16.msra.mxu3 %v5492_v47  ;;  %5537 = vmatmul.msk.bf16.vlgmr.msrb.gmra.mxu0 %vm724_vm0, %v7892_v46  ;;  %v7216_v47 = vld [vmem:[#allocation6 + $0xbec] sm:$0xf] }
  0xb6   :  { %1611 = vmatpush.bf16.msra.mxu0 %v5248_v52  ;;  %v5216_v52 = vor.u32 %v7156_v40, %v5213_v41  ;;  %v7226_v41 = vld [vmem:[#allocation6 + $0xd7c] sm:$0xf]  ;;  %v7208_v44 = vld [vmem:[#allocation6 + $0xaac] sm:$0xf] }
  0xb7   :  { %1561 = vmatpush.bf16.msra.mxu1 %v5420_v57  ;;  %v5456_v57 = vor.u32 %v7216_v47, %v5453_v48  ;;  %v5360_v48 = vor.u32 %v7192_v34, %v5357_v35  ;;  %v5589_v34 = vld [vmem:[#allocation6 + $0x1f0] sm:$0xf]  ;;  %v7251_v35 = vld [vmem:[#allocation6 + $0x214] sm:$0xf0] }
  0xb8   :  { %1599 = vmatpush.bf16.msrb.mxu2 %v5176_v53  ;;  %v7198_v53 = vld [vmem:[#allocation6 + $0x91c] sm:$0xf] }
  0xb9   :  { %1574 = vmatpush.bf16.msra.mxu3 %v5484_v60  ;;  %v5320_v60 = vor.u32 %v7182_v50, %v5317_v51  ;;  %v5384_v2 = vor.u32 %v7198_v53, %v5381_v55  ;;  %v5285_v50 = vld [vmem:[#allocation6 + $0x580] sm:$0xf0] }
  0xba   :  { %1612 = vmatpush.bf16.msra.mxu0 %v5240_v3  ;;  %v7180_v3 = vld [vmem:[#allocation6 + $0x64c] sm:$0xf]  ;;  %v5349_v53 = vld [vmem:[#allocation6 + $0x800] sm:$0xf0] }
  0xbb   :  { %1562 = vmatpush.bf16.msra.mxu1 %v5412_v7  ;;  %v5520_v7 = vor.u32 %v7232_v58, %v5517_v59  ;;  %v7224_v59 = vld [vmem:[#allocation6 + $0xd2c] sm:$0xf] }
  0xbc   :  { %1600 = vmatpush.bf16.msrb.mxu2 %v5168_v4  ;;  %v5309_v4 = vld [vmem:[#allocation6 + $0x670] sm:$0xf0] }
  0xbd   :  { %1575 = vmatpush.bf16.msra.mxu3 %v5476_v12  ;;  %v230_v12 = vperm.slane %v7918_v1, 0  ;;  %v5312_v13 = vor.u32 %v7180_v3, %v5309_v4  ;;  %v7172_v4 = vld [vmem:[#allocation6 + $0x50c] sm:$0xf] }
  0xbe   :  { %1613 = vmatpush.bf16.msra.mxu0 %v5232_v19  ;;  %v7194_v19 = vld [vmem:[#allocation6 + $0x87c] sm:$0xf]  ;;  %v737_v22 = vpop.f32.mrf.mxu0 }
  0xbf   :  { %1563 = vmatpush.bf16.msra.mxu1 %v5404_v24  ;;  %v738_v24 = vadd.f32 %v737_v22, %v230_v12  ;;  %v7236_v12 = vld [vmem:[#allocation6 + $0xf0c] sm:$0xf]  ;;  %v5661_v22 = vld [vmem:[#allocation6 + $0x4c0] sm:$0xf] }
  0xc0   :  { %1601 = vmatpush.bf16.msrb.mxu2 %v5160_v20  ;;  %v5365_v20 = vld [vmem:[#allocation6 + $0x8a0] sm:$0xf0] }
  0xc1   :  { %1576 = vmatpush.bf16.msra.mxu3 %v5468_v27  ;;  %v5304_v27 = vor.u32 %v7178_v17, %v5301_v18  ;;  %v5368_v30 = vor.u32 %v7194_v19, %v5365_v20  ;;  %v7222_v17 = vld [vmem:[#allocation6 + $0xcdc] sm:$0xf]  ;;  %v5477_v18 = vld [vmem:[#allocation6 + $0xd00] sm:$0xf0]  ;;  %v5280_v19 = vor.u32 %v7172_v4, %v5277_v6  ;;  %v7204_v20 = vld [vmem:[#allocation6 + $0xa0c] sm:$0xf] }
  0xc2   :  { %1614 = vmatpush.bf16.msra.mxu0 %v5224_v37  ;;  %1564 = vmatmul.bf16.vlgmr.msra.gmra.mxu1 %v7896_v31  ;;  %v5504_v37 = vor.u32 %v7228_v25, %v5501_v26  ;;  %v7269_v26 = vld [vmem:[#allocation6 + $0x4e4] sm:$0xf0]  ;;  %v5573_v4 = vld [vmem:[#allocation6 + $0x150] sm:$0xf] }
  0xc3   :  { %1621 = vmatpush.bf16.msrb.mxu1 %v5336_v28  ;;  %v7210_v28 = vld [vmem:[#allocation6 + $0xafc] sm:$0xf] }
  0xc4   :  { %1602 = vmatpush.bf16.msrb.mxu2 %v5152_v38  ;;  %1577 = vmatmul.bf16.vlgmr.msra.gmra.mxu3 %v7898_v36  ;;  %v750_v38 = vpop.f32.mrf.mxu1  ;;  %v5432_v39 = vor.u32 %v7210_v28, %v5429_v29  ;;  %v7285_v28 = vld [vmem:[#allocation6 + $0x764] sm:$0xf0] }
  0xc5   :  { %1634 = vmatpush.bf16.msrb.mxu3 %v5400_v32  ;;  %v7176_v32 = vld [vmem:[#allocation6 + $0x5ac] sm:$0xf]  ;;  %v751_v40 = vadd.f32 %v750_v38, %v738_v24 }
  0xc6   :  { %1615 = vmatpush.bf16.msra.mxu0 %v5216_v52  ;;  %v5296_v43 = vor.u32 %v7176_v32, %v5293_v33  ;;  %v763_v47 = vpop.f32.mrf.mxu2  ;;  %v7190_v52 = vld [vmem:[#allocation6 + $0x7dc] sm:$0xf]  ;;  %v5480_v32 = vor.u32 %v7222_v17, %v5477_v18  ;;  %v5565_v18 = vld [vmem:[#allocation6 + $0x100] sm:$0xf] }
  0xc7   :  { %1622 = vmatpush.bf16.msrb.mxu1 %v5328_v45  ;;  %1603 = vmatmul.bf16.vlgmr.msrb.gmra.mxu2 %v7882_v61  ;;  %v5421_v45 = vld [vmem:[#allocation6 + $0xad0] sm:$0xf0]  ;;  %v776_v51 = vpop.f32.mrf.mxu3  ;;  %v5352_v5 = vor.u32 %v7190_v52, %v5349_v53 }
  0xc8   :  { %1647 = vmatpush.bf16.msra.mxu2 %v5464_v42  ;;  %v5493_v42 = vld [vmem:[#allocation6 + $0xda0] sm:$0xf0]  ;;  %v5424_v58 = vor.u32 %v7208_v44, %v5421_v45  ;;  %v7283_v44 = vld [vmem:[#allocation6 + $0x714] sm:$0xf0]  ;;  %v5590_v45 = vor.u32 %v7251_v35, %v5589_v34  ;;  %v5557_v35 = vld [vmem:[#allocation6 + $0xb0] sm:$0xf] }
  0xc9   :  { %1635 = vmatpush.bf16.msrb.mxu3 %v5392_v49  ;;  %1616 = vmatmul.bf16.vlgmr.msra.gmra.mxu0 %v7887_v8  ;;  %v7174_v49 = vld [vmem:[#allocation6 + $0x55c] sm:$0xf]  ;;  %v5496_v55 = vor.u32 %v7226_v41, %v5493_v42  ;;  %v5469_v41 = vld [vmem:[#allocation6 + $0xcb0] sm:$0xf0]  ;;  %v7267_v42 = vld [vmem:[#allocation6 + $0x494] sm:$0xf0] }
  0xca   :  { %1660 = vmatpush.bf16.msrb.mxu0 %v5528_v56  ;;  %v764_v56 = vadd.f32 %v763_v47, %v751_v40  ;;  %v5288_v63 = vor.u32 %v7174_v49, %v5285_v50  ;;  %v7220_v40 = vld [vmem:[#allocation6 + $0xc8c] sm:$0xf]  ;;  %v5789_v47 = vld [vmem:[#allocation6 + $0x9c0] sm:$0xf]  ;;  %v7249_v50 = vld [vmem:[#allocation6 + $0x1c4] sm:$0xf0] }
  0xcb   :  { %1623 = vmatpush.bf16.msrb.mxu1 %v5320_v60  ;;  %v5485_v60 = vld [vmem:[#allocation6 + $0xd50] sm:$0xf0]  ;;  %v5581_v49 = vld [vmem:[#allocation6 + $0x1a0] sm:$0xf]  ;;  %v7295_v34 = vld [vmem:[#allocation6 + $0x8f4] sm:$0xf0] }
  0xcc   :  { %1648 = vmatpush.bf16.msra.mxu2 %v5456_v57  ;;  %v739_v57 = vpop.f32.mrf.mxu0  ;;  %v7923_v3 = vadd.f32 %v776_v51, %v764_v56  ;;  %v5488_v11 = vor.u32 %v7224_v59, %v5485_v60  ;;  %v752_v14 = vpop.f32.mrf.mxu1  ;;  %v5472_v51 = vor.u32 %v7220_v40, %v5469_v41  ;;  %v7281_v59 = vld [vmem:[#allocation6 + $0x6c4] sm:$0xf0]  ;;  %v5621_v40 = vld [vmem:[#allocation6 + $0x330] sm:$0xf]  ;;  %v231_v41 = vperm.slane %v7918_v1, 1 }
  0xcd   :  { %1636 = vmatpush.bf16.msrb.mxu3 %v5384_v2  ;;  %v5413_v2 = vld [vmem:[#allocation6 + $0xa80] sm:$0xf0]  ;;  %v7265_v57 = vld [vmem:[#allocation6 + $0x444] sm:$0xf0] }
  0xce   :  { %1661 = vmatpush.bf16.msrb.mxu0 %v5520_v7  ;;  %v7188_v7 = vld [vmem:[#allocation6 + $0x78c] sm:$0xf]  ;;  %v5416_v15 = vor.u32 %v7206_v0, %v5413_v2  ;;  %v5781_v0 = vld [vmem:[#allocation6 + $0x970] sm:$0xf]  ;;  %v7299_v2 = vld [vmem:[#allocation6 + $0x994] sm:$0xf0] }
  0xcf   :  { %1624 = vmatpush.bf16.msrb.mxu1 %v5312_v13  ;;  %v5533_v13 = vld [vmem:[#allocation6 + $0xf30] sm:$0xf0]  ;;  %v778_v29 = vpop.f32.mrf.mxu3 }
  0xd0   :  { %1649 = vmatpush.bf16.msra.mxu2 %v5448_v9  ;;  %v5341_v9 = vld [vmem:[#allocation6 + $0x7b0] sm:$0xf0]  ;;  %v5536_v25 = vor.u32 %v7236_v12, %v5533_v13  ;;  %v5701_v12 = vld [vmem:[#allocation6 + $0x650] sm:$0xf]  ;;  %v7279_v13 = vld [vmem:[#allocation6 + $0x674] sm:$0xf0] }
  0xd1   :  { %1637 = vmatpush.bf16.msrb.mxu3 %v5376_v16  ;;  %v7253_v16 = vld [vmem:[#allocation6 + $0x264] sm:$0xf0]  ;;  %v5344_v24 = vor.u32 %v7188_v7, %v5341_v9  ;;  %v5637_v9 = vld [vmem:[#allocation6 + $0x3d0] sm:$0xf] }
  0xd2   :  { %1662 = vmatpush.bf16.msrb.mxu0 %v5512_v21  ;;  %v5405_v21 = vld [vmem:[#allocation6 + $0xa30] sm:$0xf0] }
  0xd3   :  { %1625 = vmatpush.bf16.msrb.mxu1 %v5304_v27  ;;  %v5725_v27 = vld [vmem:[#allocation6 + $0x740] sm:$0xf]  ;;  %v5408_v33 = vor.u32 %v7204_v20, %v5405_v21 }
  0xd4   :  { %1650 = vmatpush.bf16.msra.mxu2 %v5440_v23  ;;  %v765_v23 = vpop.f32.mrf.mxu2  ;;  %v5726_v38 = vor.u32 %v7285_v28, %v5725_v27  ;;  %v5693_v27 = vld [vmem:[#allocation6 + $0x600] sm:$0xf]  ;;  %v7277_v28 = vld [vmem:[#allocation6 + $0x624] sm:$0xf0] }
  0xd5   :  { %1638 = vmatpush.bf16.msrb.mxu3 %v5368_v30  ;;  %v5598_v30 = vor.u32 %v7253_v16, %v5597_v10  ;;  %v5782_v10 = vor.u32 %v7299_v2, %v5781_v0  ;;  %v7297_v16 = vld [vmem:[#allocation6 + $0x944] sm:$0xf0]  ;;  %v5702_v23 = vor.u32 %v7279_v13, %v5701_v12 }
  0xd6   :  { %1663 = vmatpush.bf16.msrb.mxu0 %v5504_v37  ;;  %v5662_v37 = vor.u32 %v7269_v26, %v5661_v22  ;;  %v7261_v26 = vld [vmem:[#allocation6 + $0x3a4] sm:$0xf0] }
  0xd7   :  { %1626 = vmatpush.bf16.msrb.mxu1 %v5296_v43  ;;  %v5717_v43 = vld [vmem:[#allocation6 + $0x6f0] sm:$0xf]  ;;  %v7273_v0 = vld [vmem:[#allocation6 + $0x584] sm:$0xf0] }
  0xd8   :  { %1651 = vmatpush.bf16.msra.mxu2 %v5432_v39  ;;  %v5653_v39 = vld [vmem:[#allocation6 + $0x470] sm:$0xf]  ;;  %v5718_v53 = vor.u32 %v7283_v44, %v5717_v43  ;;  %v7259_v43 = vld [vmem:[#allocation6 + $0x354] sm:$0xf0] }
  0xd9   :  { %1639 = vmatpush.bf16.msrb.mxu3 %v5360_v48  ;;  %v7301_v48 = vld [vmem:[#allocation6 + $0x9e4] sm:$0xf0]  ;;  %v5654_v52 = vor.u32 %v7267_v42, %v5653_v39  ;;  %v5694_v39 = vor.u32 %v7277_v28, %v5693_v27  ;;  %v5685_v44 = vld [vmem:[#allocation6 + $0x5b0] sm:$0xf]  ;;  %v7335_v27 = vld [vmem:[#allocation6 + $0xf34] sm:$0xf0] }
  0xda   :  { %1664 = vmatpush.bf16.msrb.mxu0 %v5496_v55  ;;  %v5645_v55 = vld [vmem:[#allocation6 + $0x420] sm:$0xf]  ;;  %v5790_v56 = vor.u32 %v7301_v48, %v5789_v47 }
  0xdb   :  { %1627 = vmatpush.bf16.msrb.mxu1 %v5288_v63  ;;  %v5582_v63 = vor.u32 %v7249_v50, %v5581_v49  ;;  %v5646_v6 = vor.u32 %v7265_v57, %v5645_v55  ;;  %v5757_v48 = vld [vmem:[#allocation6 + $0x880] sm:$0xf]  ;;  %v7293_v49 = vld [vmem:[#allocation6 + $0x8a4] sm:$0xf0]  ;;  %v5622_v55 = vor.u32 %v7259_v43, %v5621_v40  ;;  %v5733_v43 = vld [vmem:[#allocation6 + $0x790] sm:$0xf] }
  0xdc   :  { %1652 = vmatpush.bf16.msra.mxu2 %v5424_v58  ;;  %v5709_v58 = vld [vmem:[#allocation6 + $0x6a0] sm:$0xf]  ;;  %v815_v60 = vpop.f32.mrf.mxu2 }
  0xdd   :  { %1640 = vmatpush.bf16.msrb.mxu3 %v5352_v5  ;;  %v7247_v5 = vld [vmem:[#allocation6 + $0x174] sm:$0xf0]  ;;  %v5710_v7 = vor.u32 %v7281_v59, %v5709_v58  ;;  %v5549_v50 = vld [vmem:[#allocation6 + $0x60] sm:$0xf]  ;;  %v5758_v59 = vor.u32 %v7293_v49, %v5757_v48  ;;  %v5599_v48 = vld [vmem:[#allocation6 + $0x268] sm:$0xf0] }
  0xde   :  { %1665 = vmatpush.bf16.msrb.mxu0 %v5488_v11  ;;  %v7263_v11 = vld [vmem:[#allocation6 + $0x3f4] sm:$0xf0]  ;;  %v5574_v14 = vor.u32 %v7247_v5, %v5573_v4  ;;  %v789_v17 = vpop.f32.mrf.mxu0  ;;  %v5749_v5 = vld [vmem:[#allocation6 + $0x830] sm:$0xf] }
  0xdf   :  { %1628 = vmatpush.bf16.msrb.mxu1 %v5280_v19  ;;  %v7245_v19 = vld [vmem:[#allocation6 + $0x124] sm:$0xf0]  ;;  %v790_v20 = vadd.f32 %v789_v17, %v7923_v3  ;;  %v802_v21 = vpop.f32.mrf.mxu1  ;;  %v5638_v22 = vor.u32 %v7263_v11, %v5637_v9  ;;  %v5541_v9 = vld [vmem:[#allocation6 + $0x10] sm:$0xf]  ;;  %v5853_v11 = vld [vmem:[#allocation6 + $0xc40] sm:$0xf] }
  0xe0   :  { %1653 = vmatpush.bf16.msra.mxu2 %v5416_v15  ;;  %v5773_v15 = vld [vmem:[#allocation6 + $0x920] sm:$0xf] }
  0xe1   :  { %1641 = vmatpush.bf16.msrb.mxu3 %v5344_v24  ;;  %v5629_v24 = vld [vmem:[#allocation6 + $0x380] sm:$0xf] }
  0xe2   :  { %1666 = vmatpush.bf16.msrb.mxu0 %v5480_v32  ;;  %1629 = vmatmul.bf16.vlgmr.msrb.gmra.mxu1 %v7880_v54  ;;  %v5566_v32 = vor.u32 %v7245_v19, %v5565_v18  ;;  %v5669_v18 = vld [vmem:[#allocation6 + $0x510] sm:$0xf]  ;;  %v7271_v19 = vld [vmem:[#allocation6 + $0x534] sm:$0xf0] }
  0xe3   :  { %1680 = vmatpush.bf16.msra.mxu1 %v5536_v25  ;;  %v5774_v25 = vor.u32 %v7297_v16, %v5773_v15  ;;  %v5605_v15 = vld [vmem:[#allocation6 + $0x290] sm:$0xf]  ;;  %v7255_v16 = vld [vmem:[#allocation6 + $0x2b4] sm:$0xf0] }
  0xe4   :  { %1654 = vmatpush.bf16.msra.mxu2 %v5408_v33  ;;  %1642 = vmatmul.bf16.vlgmr.msrb.gmra.mxu3 %v7884_v62  ;;  %v817_v29 = vpop.f32.mrf.mxu2  ;;  %v5765_v33 = vld [vmem:[#allocation6 + $0x8d0] sm:$0xf] }
  0xe5   :  { %2282 = vmatpush.bf16.msra.mxu3 %v5598_v30  ;;  %v803_v30 = vadd.f32 %v802_v21, %v790_v20  ;;  %v5766_v42 = vor.u32 %v7295_v34, %v5765_v33  ;;  %v5917_v20 = vld [vmem:[#allocation6 + $0xec0] sm:$0xf]  ;;  %v5606_v29 = vor.u32 %v7255_v16, %v5605_v15  ;;  %v7315_v33 = vld [vmem:[#allocation6 + $0xc14] sm:$0xf0]  ;;  %v5583_v15 = vld [vmem:[#allocation6 + $0x1c8] sm:$0xf0] }
  0xe6   :  { %1667 = vmatpush.bf16.msrb.mxu0 %v5472_v51  ;;  %v7241_v51 = vld [vmem:[#allocation6 + $0x84] sm:$0xf0] }
  0xe7   :  { %2295 = vmatpush.bf16.msrb.mxu1 %v5662_v37  ;;  %1655 = vmatmul.bf16.vlgmr.msra.gmra.mxu2 %v7896_v31  ;;  %v7243_v37 = vld [vmem:[#allocation6 + $0xd4] sm:$0xf0]  ;;  %v7930_v3 = vadd.f32 %v815_v60, %v803_v30  ;;  %v804_v58 = vpop.f32.mrf.mxu1  ;;  %v7257_v60 = vld [vmem:[#allocation6 + $0x304] sm:$0xf0]  ;;  %v5550_v4 = vor.u32 %v7241_v51, %v5549_v50  ;;  %v5670_v30 = vor.u32 %v7271_v19, %v5669_v18  ;;  %v5837_v50 = vld [vmem:[#allocation6 + $0xba0] sm:$0xf] }
  0xe8   :  { %2308 = vmatpush.bf16.msrb.mxu2 %v5726_v38  ;;  %v5630_v38 = vor.u32 %v7261_v26, %v5629_v24  ;;  %v5558_v47 = vor.u32 %v7243_v37, %v5557_v35  ;;  %v7289_v24 = vld [vmem:[#allocation6 + $0x804] sm:$0xf0]  ;;  %v5925_v26 = vld [vmem:[#allocation6 + $0xf10] sm:$0xf]  ;;  %v7268_v37 = vld [vmem:[#allocation6 + $0x4c4] sm:$0xf] }
  0xe9   :  { %2283 = vmatpush.bf16.msra.mxu3 %v5590_v45  ;;  %1668 = vmatmul.bf16.vlgmr.msrb.gmra.mxu0 %v7898_v36  ;;  %v7275_v45 = vld [vmem:[#allocation6 + $0x5d4] sm:$0xf0]  ;;  %v7313_v51 = vld [vmem:[#allocation6 + $0xbc4] sm:$0xf0] }
  0xea   :  { %2321 = vmatpush.bf16.msra.mxu0 %v5790_v56  ;;  %v5686_v1 = vor.u32 %v7275_v45, %v5685_v44  ;;  %v5613_v56 = vld [vmem:[#allocation6 + $0x2e0] sm:$0xf]  ;;  %v7287_v44 = vld [vmem:[#allocation6 + $0x7b4] sm:$0xf0]  ;;  %v7329_v58 = vld [vmem:[#allocation6 + $0xe44] sm:$0xf0] }
  0xeb   :  { %2296 = vmatpush.bf16.msrb.mxu1 %v5654_v52  ;;  %v791_v52 = vpop.f32.mrf.mxu0  ;;  %v5614_v12 = vor.u32 %v7257_v60, %v5613_v56  ;;  %v7250_v60 = vld [vmem:[#allocation6 + $0x1f4] sm:$0xf]  ;;  %v7309_v18 = vld [vmem:[#allocation6 + $0xb24] sm:$0xf0] }
  0xec   :  { %2309 = vmatpush.bf16.msrb.mxu2 %v5718_v53  ;;  %v828_v53 = vpop.f32.mrf.mxu3  ;;  %v841_v2 = vpop.f32.mrf.mxu2 }
  0xed   :  { %2284 = vmatpush.bf16.msra.mxu3 %v5582_v63  ;;  %v829_v57 = vadd.f32 %v828_v53, %v231_v41  ;;  %v5677_v63 = vld [vmem:[#allocation6 + $0x560] sm:$0xf]  ;;  %v5926_v41 = vor.u32 %v7335_v27, %v5925_v26  ;;  %v5734_v53 = vor.u32 %v7287_v44, %v5733_v43  ;;  %v7325_v26 = vld [vmem:[#allocation6 + $0xda4] sm:$0xf0]  ;;  %v7244_v43 = vld [vmem:[#allocation6 + $0x104] sm:$0xf] }
  0xee   :  { %2322 = vmatpush.bf16.msra.mxu0 %v5782_v10  ;;  %v7239_v10 = vld [vmem:[#allocation6 + $0x34] sm:$0xf0]  ;;  %v5678_v13 = vor.u32 %v7273_v0, %v5677_v63  ;;  %v5591_v63 = vld [vmem:[#allocation6 + $0x218] sm:$0xf0]  ;;  %v5567_v44 = vld [vmem:[#allocation6 + $0x128] sm:$0xf0] }
  0xef   :  { %2297 = vmatpush.bf16.msrb.mxu1 %v5646_v6  ;;  %v7291_v6 = vld [vmem:[#allocation6 + $0x854] sm:$0xf0]  ;;  %v5542_v21 = vor.u32 %v7239_v10, %v5541_v9  ;;  %v5647_v9 = vld [vmem:[#allocation6 + $0x448] sm:$0xf0]  ;;  %v5594_v10 = vor.u32 %v7250_v60, %v5591_v63  ;;  %v7242_v60 = vld [vmem:[#allocation6 + $0xb4] sm:$0xf] }
  0xf0   :  { %2310 = vmatpush.bf16.msrb.mxu2 %v5710_v7  ;;  %v7935_v7 = vadd.f32 %v841_v2, %v829_v57  ;;  %v5750_v17 = vor.u32 %v7291_v6, %v5749_v5  ;;  %v5901_v57 = vld [vmem:[#allocation6 + $0xe20] sm:$0xf]  ;;  %v5829_v2 = vld [vmem:[#allocation6 + $0xb50] sm:$0xf]  ;;  %v7264_v6 = vld [vmem:[#allocation6 + $0x424] sm:$0xf] }
  0xf1   :  { %2285 = vmatpush.bf16.msra.mxu3 %v5574_v14  ;;  %v7317_v14 = vld [vmem:[#allocation6 + $0xc64] sm:$0xf0]  ;;  %v5902_v5 = vor.u32 %v7329_v58, %v5901_v57  ;;  %v5650_v16 = vor.u32 %v7264_v6, %v5647_v9  ;;  %v5869_v57 = vld [vmem:[#allocation6 + $0xce0] sm:$0xf]  ;;  %v5559_v63 = vld [vmem:[#allocation6 + $0xd8] sm:$0xf0] }
  0xf2   :  { %2323 = vmatpush.bf16.msra.mxu0 %v5774_v25  ;;  %5538 = vmatmul.msk.bf16.vlgmr.msra.gmra.mxu1 %vm724_vm0, %v7892_v46  ;;  %v5854_v25 = vor.u32 %v7317_v14, %v5853_v11  ;;  %v5893_v11 = vld [vmem:[#allocation6 + $0xdd0] sm:$0xf]  ;;  %v7248_v14 = vld [vmem:[#allocation6 + $0x1a4] sm:$0xf]  ;;  %v7321_v58 = vld [vmem:[#allocation6 + $0xd04] sm:$0xf0] }
  0xf3   :  { %2298 = vmatpush.bf16.msrb.mxu1 %v5638_v22  ;;  %v7333_v22 = vld [vmem:[#allocation6 + $0xee4] sm:$0xf0]  ;;  %v7284_v6 = vld [vmem:[#allocation6 + $0x744] sm:$0xf]  ;;  %v5870_v9 = vor.u32 %v7321_v58, %v5869_v57  ;;  %v7278_v58 = vld [vmem:[#allocation6 + $0x654] sm:$0xf] }
  0xf4   :  { %2311 = vmatpush.bf16.msrb.mxu2 %v5702_v23  ;;  %v5741_v23 = vld [vmem:[#allocation6 + $0x7e0] sm:$0xf]  ;;  %v830_v28 = vpop.f32.mrf.mxu3  ;;  %v5918_v34 = vor.u32 %v7333_v22, %v5917_v20  ;;  %v843_v40 = vpop.f32.mrf.mxu2  ;;  %v5639_v22 = vld [vmem:[#allocation6 + $0x3f8] sm:$0xf0] }
  0xf5   :  { %2286 = vmatpush.bf16.msra.mxu3 %v5566_v32  ;;  %v5845_v32 = vld [vmem:[#allocation6 + $0xbf0] sm:$0xf]  ;;  %v5742_v35 = vor.u32 %v7289_v24, %v5741_v23  ;;  %v5586_v24 = vor.u32 %v7248_v14, %v5583_v15  ;;  %v7246_v28 = vld [vmem:[#allocation6 + $0x154] sm:$0xf]  ;;  %v5562_v14 = vor.u32 %v7242_v60, %v5559_v63  ;;  %v5703_v63 = vld [vmem:[#allocation6 + $0x678] sm:$0xf0] }
  0xf6   :  { %2324 = vmatpush.bf16.msra.mxu0 %v5766_v42  ;;  %v7331_v42 = vld [vmem:[#allocation6 + $0xe94] sm:$0xf0]  ;;  %v5846_v45 = vor.u32 %v7315_v33, %v5845_v32  ;;  %v5813_v32 = vld [vmem:[#allocation6 + $0xab0] sm:$0xf] }
  0xf7   :  { %2299 = vmatpush.bf16.msrb.mxu1 %v5630_v38  ;;  %v5663_v38 = vld [vmem:[#allocation6 + $0x4e8] sm:$0xf0]  ;;  %v7307_v33 = vld [vmem:[#allocation6 + $0xad4] sm:$0xf0]  ;;  %v5877_v40 = vld [vmem:[#allocation6 + $0xd30] sm:$0xf] }
  0xf8   :  { %2312 = vmatpush.bf16.msrb.mxu2 %v5694_v39  ;;  %v5909_v39 = vld [vmem:[#allocation6 + $0xe70] sm:$0xf]  ;;  %v5666_v49 = vor.u32 %v7268_v37, %v5663_v38  ;;  %v7260_v37 = vld [vmem:[#allocation6 + $0x384] sm:$0xf]  ;;  %v5631_v38 = vld [vmem:[#allocation6 + $0x3a8] sm:$0xf0] }
  0xf9   :  { %2287 = vmatpush.bf16.msra.mxu3 %v5558_v47  ;;  %v7252_v47 = vld [vmem:[#allocation6 + $0x244] sm:$0xf]  ;;  %v5910_v52 = vor.u32 %v7331_v42, %v5909_v39  ;;  %v5814_v42 = vor.u32 %v7307_v33, %v5813_v32  ;;  %v5861_v15 = vld [vmem:[#allocation6 + $0xc90] sm:$0xf] }
  0xfa   :  { %2325 = vmatpush.bf16.msra.mxu0 %v5758_v59  ;;  %v5602_v56 = vor.u32 %v7252_v47, %v5599_v48  ;;  %v5838_v59 = vor.u32 %v7313_v51, %v5837_v50  ;;  %v5805_v47 = vld [vmem:[#allocation6 + $0xa60] sm:$0xf]  ;;  %v7305_v48 = vld [vmem:[#allocation6 + $0xa84] sm:$0xf0] }
  0xfb   :  { %2300 = vmatpush.bf16.msrb.mxu1 %v5622_v55  ;;  %v7266_v55 = vld [vmem:[#allocation6 + $0x474] sm:$0xf] }
  0xfc   :  { %2313 = vmatpush.bf16.msrb.mxu2 %v5686_v1  ;;  %v5655_v1 = vld [vmem:[#allocation6 + $0x498] sm:$0xf0] }
  0xfd   :  { %2288 = vmatpush.bf16.msra.mxu3 %v5550_v4  ;;  %v5658_v0 = vor.u32 %v7266_v55, %v5655_v1  ;;  %v7311_v4 = vld [vmem:[#allocation6 + $0xb74] sm:$0xf0] }
  0xfe   :  { %2326 = vmatpush.bf16.msra.mxu0 %v5750_v17  ;;  %v5821_v17 = vld [vmem:[#allocation6 + $0xb00] sm:$0xf]  ;;  %v854_v19 = vpop.f32.mrf.mxu0 }
  0xff   :  { %2301 = vmatpush.bf16.msrb.mxu1 %v5614_v12  ;;  %v7327_v12 = vld [vmem:[#allocation6 + $0xdf4] sm:$0xf0]  ;;  %v855_v23 = vadd.f32 %v854_v19, %v7935_v7  ;;  %v5822_v27 = vor.u32 %v7309_v18, %v5821_v17  ;;  %v7300_v18 = vld [vmem:[#allocation6 + $0x9c4] sm:$0xf]  ;;  %v5791_v19 = vld [vmem:[#allocation6 + $0x9e8] sm:$0xf0] }
 0x100   :  { %2314 = vmatpush.bf16.msrb.mxu2 %v5678_v13  ;;  %v5830_v13 = vor.u32 %v7311_v4, %v5829_v2  ;;  %v5894_v20 = vor.u32 %v7327_v12, %v5893_v11  ;;  %v5797_v4 = vld [vmem:[#allocation6 + $0xa10] sm:$0xf]  ;;  %v7256_v11 = vld [vmem:[#allocation6 + $0x2e4] sm:$0xf]  ;;  %v5615_v12 = vld [vmem:[#allocation6 + $0x308] sm:$0xf0]  ;;  %v5794_v33 = vor.u32 %v7300_v18, %v5791_v19 }
 0x101   :  { %2289 = vmatpush.bf16.msra.mxu3 %v5542_v21  ;;  %v7262_v21 = vld [vmem:[#allocation6 + $0x3d4] sm:$0xf]  ;;  %v5839_v18 = vld [vmem:[#allocation6 + $0xbc8] sm:$0xf0] }
 0x102   :  { %2327 = vmatpush.bf16.msra.mxu0 %v5742_v35  ;;  %v867_v35 = vpop.f32.mrf.mxu1 }
 0x103   :  { %2302 = vmatpush.bf16.msrb.mxu1 %v5606_v29  ;;  %v5575_v29 = vld [vmem:[#allocation6 + $0x178] sm:$0xf0]  ;;  %v868_v39 = vadd.f32 %v867_v35, %v855_v23  ;;  %v7240_v23 = vld [vmem:[#allocation6 + $0x64] sm:$0xf]  ;;  %v5919_v35 = vld [vmem:[#allocation6 + $0xee8] sm:$0xf0] }
 0x104   :  { %2315 = vmatpush.bf16.msrb.mxu2 %v5670_v30  ;;  %2290 = vmatmul.bf16.vlgmr.msra.gmra.mxu3 %v7882_v61  ;;  %v5642_v30 = vor.u32 %v7262_v21, %v5639_v22  ;;  %v5578_v7 = vor.u32 %v7246_v28, %v5575_v29  ;;  %v5618_v21 = vor.u32 %v7256_v11, %v5615_v12  ;;  %v7282_v22 = vld [vmem:[#allocation6 + $0x6f4] sm:$0xf]  ;;  %v5607_v29 = vld [vmem:[#allocation6 + $0x2b8] sm:$0xf0] }
 0x105   :  { %2334 = vmatpush.bf16.msrb.mxu3 %v5854_v25  ;;  %v5885_v25 = vld [vmem:[#allocation6 + $0xd80] sm:$0xf]  ;;  %v7254_v28 = vld [vmem:[#allocation6 + $0x294] sm:$0xf]  ;;  %v5706_v11 = vor.u32 %v7278_v58, %v5703_v63 }
 0x106   :  { %2303 = vmatmul.bf16.vlgmr.msrb.gmra.mxu1 %v7887_v8  ;;  %2328 = vmatpush.bf16.msra.mxu0 %v5734_v53  ;;  %v5623_v53 = vld [vmem:[#allocation6 + $0x358] sm:$0xf0] }
 0x107   :  { %2347 = vmatpush.bf16.msra.mxu1 %v5918_v34  ;;  %2316 = vmatmul.bf16.vlgmr.msrb.gmra.mxu2 %v7880_v54  ;;  %v5886_v34 = vor.u32 %v7325_v26, %v5885_v25  ;;  %v880_v50 = vpop.f32.mrf.mxu3 }
 0x108   :  { %2367 = vmatpush.bf16.msra.mxu2 %v5926_v41  ;;  %v7323_v41 = vld [vmem:[#allocation6 + $0xd54] sm:$0xf0]  ;;  %v881_v55 = vadd.f32 %v880_v50, %v868_v39  ;;  %v7298_v39 = vld [vmem:[#allocation6 + $0x974] sm:$0xf] }
 0x109   :  { %2335 = vmatpush.bf16.msrb.mxu3 %v5846_v45  ;;  %2329 = vmatmul.bf16.vlgmr.msra.gmra.mxu0 %v7884_v62  ;;  %v5634_v45 = vor.u32 %v7260_v37, %v5631_v38  ;;  %v5878_v51 = vor.u32 %v7323_v41, %v5877_v40  ;;  %v5610_v41 = vor.u32 %v7254_v28, %v5607_v29 }
 0x10a   :  { %2373 = vmatpush.bf16.msrb.mxu0 %v5602_v56  ;;  %v893_v1 = vpop.f32.mrf.mxu2  ;;  %v5570_v56 = vor.u32 %v7244_v43, %v5567_v44  ;;  %v7238_v43 = vld [vmem:[#allocation6 + $0x14] sm:$0xf]  ;;  %v5543_v44 = vld [vmem:[#allocation6 + $0x38] sm:$0xf0] }
 0x10b   :  { %2348 = vmatpush.bf16.msra.mxu1 %v5910_v52  ;;  %v7258_v52 = vld [vmem:[#allocation6 + $0x334] sm:$0xf] }
 0x10c   :  { %2386 = vmatpush.bf16.msrb.mxu2 %v5666_v49  ;;  %v856_v49 = vpop.f32.mrf.mxu0  ;;  %v5626_v2 = vor.u32 %v7258_v52, %v5623_v53  ;;  %v5911_v52 = vld [vmem:[#allocation6 + $0xe98] sm:$0xf0]  ;;  %v5546_v53 = vor.u32 %v7238_v43, %v5543_v44  ;;  %v7272_v44 = vld [vmem:[#allocation6 + $0x564] sm:$0xf] }
 0x10d   :  { %2336 = vmatpush.bf16.msrb.mxu3 %v5838_v59  ;;  %v5806_v59 = vor.u32 %v7305_v48, %v5805_v47  ;;  %v5711_v47 = vld [vmem:[#allocation6 + $0x6c8] sm:$0xf0]  ;;  %v7316_v48 = vld [vmem:[#allocation6 + $0xc44] sm:$0xf] }
 0x10e   :  { %2374 = vmatpush.bf16.msrb.mxu0 %v5594_v10  ;;  %v5727_v10 = vld [vmem:[#allocation6 + $0x768] sm:$0xf0] }
 0x10f   :  { %2349 = vmatpush.bf16.msra.mxu1 %v5902_v5  ;;  %v7303_v5 = vld [vmem:[#allocation6 + $0xa34] sm:$0xf0]  ;;  %v5855_v49 = vld [vmem:[#allocation6 + $0xc68] sm:$0xf0] }
 0x110   :  { %2387 = vmatpush.bf16.msrb.mxu2 %v5658_v0  ;;  %v894_v0 = vadd.f32 %v893_v1, %v881_v55  ;;  %v5798_v17 = vor.u32 %v7303_v5, %v5797_v4  ;;  %v7296_v55 = vld [vmem:[#allocation6 + $0x924] sm:$0xf]  ;;  %v5775_v1 = vld [vmem:[#allocation6 + $0x948] sm:$0xf0]  ;;  %v5858_v57 = vor.u32 %v7316_v48, %v5855_v49 }
 0x111   :  { %2337 = vmatpush.bf16.msrb.mxu3 %v5830_v13  ;;  %v869_v13 = vpop.f32.mrf.mxu1  ;;  %v5778_v4 = vor.u32 %v7296_v55, %v5775_v1  ;;  %v7328_v5 = vld [vmem:[#allocation6 + $0xe24] sm:$0xf]  ;;  %v5823_v49 = vld [vmem:[#allocation6 + $0xb28] sm:$0xf0] }
 0x112   :  { %2375 = vmatpush.bf16.msrb.mxu0 %v5586_v24  ;;  %v5551_v24 = vld [vmem:[#allocation6 + $0x88] sm:$0xf0]  ;;  %v895_v37 = vpop.f32.mrf.mxu2  ;;  %v7276_v13 = vld [vmem:[#allocation6 + $0x604] sm:$0xf] }
 0x113   :  { %2350 = vmatpush.bf16.msra.mxu1 %v5894_v20  ;;  %v5730_v20 = vor.u32 %v7284_v6, %v5727_v10  ;;  %v5554_v38 = vor.u32 %v7240_v23, %v5551_v24  ;;  %v5903_v6 = vld [vmem:[#allocation6 + $0xe48] sm:$0xf0]  ;;  %v5767_v10 = vld [vmem:[#allocation6 + $0x8f8] sm:$0xf0]  ;;  %v7324_v37 = vld [vmem:[#allocation6 + $0xd84] sm:$0xf] }
 0x114   :  { %2388 = vmatpush.bf16.msrb.mxu2 %v5650_v16  ;;  %v7319_v16 = vld [vmem:[#allocation6 + $0xcb4] sm:$0xf0]  ;;  %v906_v25 = vpop.f32.mrf.mxu0  ;;  %v5759_v23 = vld [vmem:[#allocation6 + $0x8a8] sm:$0xf0]  ;;  %v7308_v48 = vld [vmem:[#allocation6 + $0xb04] sm:$0xf] }
 0x115   :  { %2338 = vmatpush.bf16.msrb.mxu3 %v5822_v27  ;;  %v5862_v26 = vor.u32 %v7319_v16, %v5861_v15  ;;  %v5719_v27 = vld [vmem:[#allocation6 + $0x718] sm:$0xf0]  ;;  %v7944_v32 = vadd.f32 %v906_v25, %v894_v0  ;;  %v7314_v0 = vld [vmem:[#allocation6 + $0xbf4] sm:$0xf]  ;;  %v5906_v15 = vor.u32 %v7328_v5, %v5903_v6  ;;  %v5695_v16 = vld [vmem:[#allocation6 + $0x628] sm:$0xf0]  ;;  %v5826_v58 = vor.u32 %v7308_v48, %v5823_v49 }
 0x116   :  { %2376 = vmatpush.bf16.msrb.mxu0 %v5578_v7  ;;  %v5783_v7 = vld [vmem:[#allocation6 + $0x998] sm:$0xf0]  ;;  %v5722_v40 = vor.u32 %v7282_v22, %v5719_v27  ;;  %v7292_v22 = vld [vmem:[#allocation6 + $0x884] sm:$0xf]  ;;  %v5698_v25 = vor.u32 %v7276_v13, %v5695_v16  ;;  %v7274_v27 = vld [vmem:[#allocation6 + $0x5b4] sm:$0xf] }
 0x117   :  { %2351 = vmatpush.bf16.msra.mxu1 %v5886_v34  ;;  %5931 = vmatmul.msk.bf16.vlgmr.msra.gmra.mxu2 %vm724_vm0, %v7892_v46  ;;  %v7332_v34 = vld [vmem:[#allocation6 + $0xec4] sm:$0xf]  ;;  %v5786_v50 = vor.u32 %v7298_v39, %v5783_v7  ;;  %v5815_v5 = vld [vmem:[#allocation6 + $0xad8] sm:$0xf0] }
 0x118   :  { %2389 = vmatpush.bf16.msrb.mxu2 %v5642_v30  ;;  %v882_v30 = vpop.f32.mrf.mxu3  ;;  %v7288_v1 = vld [vmem:[#allocation6 + $0x7e4] sm:$0xf]  ;;  %v5927_v13 = vld [vmem:[#allocation6 + $0xf38] sm:$0xf0] }
 0x119   :  { %2339 = vmatpush.bf16.msrb.mxu3 %v5814_v42  ;;  %v7280_v42 = vld [vmem:[#allocation6 + $0x6a4] sm:$0xf]  ;;  %v5687_v30 = vld [vmem:[#allocation6 + $0x5d8] sm:$0xf0] }
 0x11a   :  { %2377 = vmatpush.bf16.msrb.mxu0 %v5570_v56  ;;  %v5714_v56 = vor.u32 %v7280_v42, %v5711_v47  ;;  %v5690_v42 = vor.u32 %v7274_v27, %v5687_v30  ;;  %v5679_v47 = vld [vmem:[#allocation6 + $0x588] sm:$0xf0]  ;;  %v7320_v6 = vld [vmem:[#allocation6 + $0xce4] sm:$0xf]  ;;  %v7318_v30 = vld [vmem:[#allocation6 + $0xc94] sm:$0xf] }
 0x11b   :  { %2352 = vmatpush.bf16.msra.mxu1 %v5878_v51  ;;  %v7330_v51 = vld [vmem:[#allocation6 + $0xe74] sm:$0xf]  ;;  %v7304_v27 = vld [vmem:[#allocation6 + $0xa64] sm:$0xf] }
 0x11c   :  { %2390 = vmatpush.bf16.msrb.mxu2 %v5634_v45  ;;  %v5922_v45 = vor.u32 %v7332_v34, %v5919_v35  ;;  %v908_v60 = vpop.f32.mrf.mxu0  ;;  %v5831_v34 = vld [vmem:[#allocation6 + $0xb78] sm:$0xf0]  ;;  %v5762_v35 = vor.u32 %v7292_v22, %v5759_v23  ;;  %v7351_v22 = vld [vmem:[#allocation6 + $0x26c] sm:$0xf0]  ;;  %v6055_v23 = vld [vmem:[#allocation6 + $0x4c8] sm:$0xf] }
 0x11d   :  { %2340 = vmatpush.bf16.msrb.mxu3 %v5806_v59  ;;  %v5914_v59 = vor.u32 %v7330_v51, %v5911_v52  ;;  %v7322_v52 = vld [vmem:[#allocation6 + $0xd34] sm:$0xf]  ;;  %v5671_v60 = vld [vmem:[#allocation6 + $0x538] sm:$0xf0] }
 0x11e   :  { %2378 = vmatpush.bf16.msrb.mxu0 %v5562_v14  ;;  %v7949_v14 = vld [vmem:[#allocation8 + $0x2] sm:$0x3] }
 0x11f   :  { %2353 = vmatpush.bf16.msra.mxu1 %v5870_v9  ;;  %v7294_v9 = vld [vmem:[#allocation6 + $0x8d4] sm:$0xf]  ;;  %v1010_v24 = vperm.slane %v7949_v14, 0  ;;  %v1513_v39 = vpop.f32.mrf.mxu1 }
 0x120   :  { %2391 = vmatpush.bf16.msrb.mxu2 %v5626_v2  ;;  %v5847_v2 = vld [vmem:[#allocation6 + $0xc18] sm:$0xf0]  ;;  %v5770_v19 = vor.u32 %v7294_v9, %v5767_v10 }
 0x121   :  { %2341 = vmatpush.bf16.msrb.mxu3 %v5798_v17  ;;  %v5850_v12 = vor.u32 %v7314_v0, %v5847_v2  ;;  %v7312_v17 = vld [vmem:[#allocation6 + $0xba4] sm:$0xf]  ;;  %v1514_v7 = vadd.f32 %v1513_v39, %v1010_v24 }
 0x122   :  { %2379 = vmatpush.bf16.msrb.mxu0 %v5554_v38  ;;  %v5887_v38 = vld [vmem:[#allocation6 + $0xda8] sm:$0xf0] }
 0x123   :  { %2354 = vmatpush.bf16.msra.mxu1 %v5862_v26  ;;  %v5842_v26 = vor.u32 %v7312_v17, %v5839_v18  ;;  %v7286_v17 = vld [vmem:[#allocation6 + $0x794] sm:$0xf]  ;;  %v5735_v18 = vld [vmem:[#allocation6 + $0x7b8] sm:$0xf0] }
 0x124   :  { %2392 = vmatpush.bf16.msrb.mxu2 %v5618_v21  ;;  %2342 = vmatmul.bf16.vlgmr.msrb.gmra.mxu3 %v7896_v31  ;;  %v5895_v21 = vld [vmem:[#allocation6 + $0xdf8] sm:$0xf0]  ;;  %v1539_v29 = vpop.f32.mrf.mxu0 }
 0x125   :  { %2399 = vmatpush.bf16.msra.mxu3 %v5730_v20  ;;  %v7326_v20 = vld [vmem:[#allocation6 + $0xdd4] sm:$0xf] }
 0x126   :  { %2355 = vmatmul.bf16.vlgmr.msra.gmra.mxu1 %v7898_v36  ;;  %2380 = vmatpush.bf16.msrb.mxu0 %v5546_v53  ;;  %v5898_v28 = vor.u32 %v7326_v20, %v5895_v21  ;;  %v5879_v53 = vld [vmem:[#allocation6 + $0xd58] sm:$0xf0]  ;;  %v5991_v21 = vld [vmem:[#allocation6 + $0x248] sm:$0xf] }
 0x127   :  { %2412 = vmatpush.bf16.msrb.mxu1 %v5794_v33  ;;  %v7310_v33 = vld [vmem:[#allocation6 + $0xb54] sm:$0xf]  ;;  %v1526_v51 = vpop.f32.mrf.mxu3  ;;  %v5882_v63 = vor.u32 %v7322_v52, %v5879_v53 }
 0x128   :  { %2393 = vmatpush.bf16.msrb.mxu2 %v5610_v41  ;;  %v5751_v41 = vld [vmem:[#allocation6 + $0x858] sm:$0xf0]  ;;  %v5834_v43 = vor.u32 %v7310_v33, %v5831_v34  ;;  %v1527_v55 = vadd.f32 %v1526_v51, %v1514_v7  ;;  %v7383_v51 = vld [vmem:[#allocation6 + $0x76c] sm:$0xf0] }
 0x129   :  { %2400 = vmatpush.bf16.msra.mxu3 %v5722_v40  ;;  %2381 = vmatmul.bf16.vlgmr.msrb.gmra.mxu0 %v7882_v61  ;;  %v7290_v40 = vld [vmem:[#allocation6 + $0x834] sm:$0xf]  ;;  %v5863_v33 = vld [vmem:[#allocation6 + $0xcb8] sm:$0xf0] }
 0x12a   :  { %2425 = vmatpush.bf16.msra.mxu0 %v5858_v57  ;;  %v5682_v57 = vor.u32 %v7272_v44, %v5679_v47  ;;  %v1540_v2 = vadd.f32 %v1539_v29, %v1527_v55  ;;  %v1552_v10 = vpop.f32.mrf.mxu2  ;;  %v5738_v29 = vor.u32 %v7286_v17, %v5735_v18  ;;  %v7365_v44 = vld [vmem:[#allocation6 + $0x49c] sm:$0xf0]  ;;  %v5799_v47 = vld [vmem:[#allocation6 + $0xa38] sm:$0xf0]  ;;  %v6175_v55 = vld [vmem:[#allocation6 + $0x978] sm:$0xf] }
 0x12b   :  { %2413 = vmatpush.bf16.msrb.mxu1 %v5786_v50  ;;  %2394 = vmatmul.bf16.vlgmr.msrb.gmra.mxu2 %v7887_v8  ;;  %v5754_v50 = vor.u32 %v7290_v40, %v5751_v41  ;;  %v5983_v40 = vld [vmem:[#allocation6 + $0x1f8] sm:$0xf]  ;;  %v7349_v41 = vld [vmem:[#allocation6 + $0x21c] sm:$0xf0] }
 0x12c   :  { %2438 = vmatpush.bf16.msra.mxu2 %v5922_v45  ;;  %v5890_v45 = vor.u32 %v7324_v37, %v5887_v38  ;;  %v1541_v0 = vpop.f32.mrf.mxu0  ;;  %v7953_v16 = vadd.f32 %v1552_v10, %v1540_v2  ;;  %v6183_v37 = vld [vmem:[#allocation6 + $0x9c8] sm:$0xf]  ;;  %v7399_v38 = vld [vmem:[#allocation6 + $0x9ec] sm:$0xf0]  ;;  %v5984_v53 = vor.u32 %v7349_v41, %v5983_v40  ;;  %v6031_v17 = vld [vmem:[#allocation6 + $0x3d8] sm:$0xf] }
 0x12d   :  { %2401 = vmatpush.bf16.msra.mxu3 %v5714_v56  ;;  %v5743_v56 = vld [vmem:[#allocation6 + $0x808] sm:$0xf0]  ;;  %v6184_v49 = vor.u32 %v7399_v38, %v6183_v37  ;;  %v7363_v0 = vld [vmem:[#allocation6 + $0x44c] sm:$0xf0]  ;;  %v7361_v18 = vld [vmem:[#allocation6 + $0x3fc] sm:$0xf0] }
 0x12e   :  { %2426 = vmatpush.bf16.msra.mxu0 %v5850_v12  ;;  %v5746_v9 = vor.u32 %v7288_v1, %v5743_v56  ;;  %v7334_v12 = vld [vmem:[#allocation6 + $0xf14] sm:$0xf]  ;;  %v7397_v1 = vld [vmem:[#allocation6 + $0x99c] sm:$0xf0]  ;;  %v7395_v10 = vld [vmem:[#allocation6 + $0x94c] sm:$0xf0] }
 0x12f   :  { %2414 = vmatpush.bf16.msrb.mxu1 %v5778_v4  ;;  %v7306_v4 = vld [vmem:[#allocation6 + $0xab4] sm:$0xf]  ;;  %v1528_v34 = vpop.f32.mrf.mxu3  ;;  %v6176_v2 = vor.u32 %v7397_v1, %v6175_v55  ;;  %v6095_v38 = vld [vmem:[#allocation6 + $0x658] sm:$0xf]  ;;  %v6151_v40 = vld [vmem:[#allocation6 + $0x888] sm:$0xf] }
 0x130   :  { %2439 = vmatpush.bf16.msra.mxu2 %v5914_v59  ;;  %v7270_v59 = vld [vmem:[#allocation6 + $0x514] sm:$0xf]  ;;  %v5818_v20 = vor.u32 %v7306_v4, %v5815_v5  ;;  %v6111_v4 = vld [vmem:[#allocation6 + $0x6f8] sm:$0xf]  ;;  %v7381_v5 = vld [vmem:[#allocation6 + $0x71c] sm:$0xf0] }
 0x131   :  { %2402 = vmatpush.bf16.msra.mxu3 %v5706_v11  ;;  %v5871_v11 = vld [vmem:[#allocation6 + $0xd08] sm:$0xf0]  ;;  %v6023_v34 = vld [vmem:[#allocation6 + $0x388] sm:$0xf]  ;;  %v7391_v41 = vld [vmem:[#allocation6 + $0x8ac] sm:$0xf0] }
 0x132   :  { %2427 = vmatpush.bf16.msra.mxu0 %v5842_v26  ;;  %v5874_v24 = vor.u32 %v7320_v6, %v5871_v11  ;;  %v7367_v26 = vld [vmem:[#allocation6 + $0x4ec] sm:$0xf0]  ;;  %v1554_v52 = vpop.f32.mrf.mxu2  ;;  %v1011_v55 = vperm.slane %v7949_v14, 1 }
 0x133   :  { %2415 = vmatpush.bf16.msrb.mxu1 %v5770_v19  ;;  %v5674_v19 = vor.u32 %v7270_v59, %v5671_v60  ;;  %v6056_v39 = vor.u32 %v7367_v26, %v6055_v23  ;;  %v7347_v59 = vld [vmem:[#allocation6 + $0x1cc] sm:$0xf0]  ;;  %v7393_v26 = vld [vmem:[#allocation6 + $0x8fc] sm:$0xf0]  ;;  %v6087_v52 = vld [vmem:[#allocation6 + $0x608] sm:$0xf] }
 0x134   :  { %2440 = vmatpush.bf16.msra.mxu2 %v5906_v15  ;;  %v1515_v15 = vpop.f32.mrf.mxu1  ;;  %v7955_v48 = vpop.f32.mrf.mxu0  ;;  %v7355_v14 = vld [vmem:[#allocation6 + $0x30c] sm:$0xf0] }
 0x135   :  { %2403 = vmatpush.bf16.msra.mxu3 %v5698_v25  ;;  %v5930_v25 = vor.u32 %v7334_v12, %v5927_v13  ;;  %v5967_v12 = vld [vmem:[#allocation6 + $0x158] sm:$0xf]  ;;  %v7345_v13 = vld [vmem:[#allocation6 + $0x17c] sm:$0xf0]  ;;  %v6112_v15 = vor.u32 %v7381_v5, %v6111_v4  ;;  %v6007_v5 = vld [vmem:[#allocation6 + $0x2e8] sm:$0xf] }
 0x136   :  { %2428 = vmatpush.bf16.msra.mxu0 %v5834_v43  ;;  %v5866_v43 = vor.u32 %v7318_v30, %v5863_v33  ;;  %v7343_v30 = vld [vmem:[#allocation6 + $0x12c] sm:$0xf0] }
 0x137   :  { %2416 = vmatpush.bf16.msrb.mxu1 %v5762_v35  ;;  %v5992_v35 = vor.u32 %v7351_v22, %v5991_v21  ;;  %v6103_v21 = vld [vmem:[#allocation6 + $0x6a8] sm:$0xf]  ;;  %v7379_v22 = vld [vmem:[#allocation6 + $0x6cc] sm:$0xf0] }
 0x138   :  { %2441 = vmatpush.bf16.msra.mxu2 %v5898_v28  ;;  %v5807_v28 = vld [vmem:[#allocation6 + $0xa88] sm:$0xf0]  ;;  %v6104_v33 = vor.u32 %v7379_v22, %v6103_v21  ;;  %v5999_v21 = vld [vmem:[#allocation6 + $0x298] sm:$0xf]  ;;  %v7353_v22 = vld [vmem:[#allocation6 + $0x2bc] sm:$0xf0] }
 0x139   :  { %2404 = vmatpush.bf16.msra.mxu3 %v5690_v42  ;;  %v5810_v7 = vor.u32 %v7304_v27, %v5807_v28  ;;  %v6047_v42 = vld [vmem:[#allocation6 + $0x478] sm:$0xf]  ;;  %v6032_v28 = vor.u32 %v7361_v18, %v6031_v17  ;;  %v6135_v17 = vld [vmem:[#allocation6 + $0x7e8] sm:$0xf]  ;;  %v7387_v18 = vld [vmem:[#allocation6 + $0x80c] sm:$0xf0] }
 0x13a   :  { %2429 = vmatpush.bf16.msra.mxu0 %v5826_v58  ;;  %v6048_v56 = vor.u32 %v7365_v44, %v6047_v42  ;;  %v5975_v58 = vld [vmem:[#allocation6 + $0x1a8] sm:$0xf] }
 0x13b   :  { %2417 = vmatpush.bf16.msrb.mxu1 %v5754_v50  ;;  %v6119_v50 = vld [vmem:[#allocation6 + $0x748] sm:$0xf]  ;;  %v5976_v6 = vor.u32 %v7347_v59, %v5975_v58  ;;  %v7389_v58 = vld [vmem:[#allocation6 + $0x85c] sm:$0xf0] }
 0x13c   :  { %2442 = vmatpush.bf16.msra.mxu2 %v5890_v45  ;;  %v7302_v45 = vld [vmem:[#allocation6 + $0xa14] sm:$0xf]  ;;  %v6120_v60 = vor.u32 %v7383_v51, %v6119_v50  ;;  %v6152_v51 = vor.u32 %v7391_v41, %v6151_v40  ;;  %v7350_v41 = vld [vmem:[#allocation6 + $0x24c] sm:$0xf] }
 0x13d   :  { %2405 = vmatpush.bf16.msra.mxu3 %v5682_v57  ;;  %v5802_v57 = vor.u32 %v7302_v45, %v5799_v47  ;;  %v6015_v45 = vld [vmem:[#allocation6 + $0x338] sm:$0xf]  ;;  %v7357_v47 = vld [vmem:[#allocation6 + $0x35c] sm:$0xf0] }
 0x13e   :  { %2430 = vmatpush.bf16.msra.mxu0 %v5818_v20 }
 0x13f   :  { %2418 = vmatpush.bf16.msrb.mxu1 %v5746_v9  ;;  %v6167_v9 = vld [vmem:[#allocation6 + $0x928] sm:$0xf]  ;;  %v1565_v23 = vpop.f32.mrf.mxu1 }
 0x140   :  { %2443 = vmatpush.bf16.msra.mxu2 %v5882_v63  ;;  %v6039_v63 = vld [vmem:[#allocation6 + $0x428] sm:$0xf]  ;;  %v6168_v20 = vor.u32 %v7395_v10, %v6167_v9  ;;  %v1566_v27 = vadd.f32 %v1565_v23, %v7953_v16  ;;  %v7341_v16 = vld [vmem:[#allocation6 + $0xdc] sm:$0xf0]  ;;  %v6079_v10 = vld [vmem:[#allocation6 + $0x5b8] sm:$0xf] }
 0x141   :  { %2406 = vmatpush.bf16.msra.mxu3 %v5674_v19  ;;  %v6040_v11 = vor.u32 %v7363_v0, %v6039_v63  ;;  %v1593_v19 = vpop.f32.mrf.mxu0  ;;  %v5943_v63 = vld [vmem:[#allocation6 + $0x68] sm:$0xf]  ;;  %v7339_v0 = vld [vmem:[#allocation6 + $0x8c] sm:$0xf0] }
 0x142   :  { %2431 = vmatpush.bf16.msra.mxu0 %v5810_v7  ;;  %v5935_v19 = vld [vmem:[#allocation6 + $0x18] sm:$0xf] }
 0x143   :  { %2419 = vmatpush.bf16.msrb.mxu1 %v5738_v29  ;;  %v5959_v29 = vld [vmem:[#allocation6 + $0x108] sm:$0xf] }
 0x144   :  { %2444 = vmatpush.bf16.msra.mxu2 %v5874_v24  ;;  %2407 = vmatmul.bf16.vlgmr.msra.gmra.mxu3 %v7880_v54  ;;  %v5968_v24 = vor.u32 %v7345_v13, %v5967_v12  ;;  %v5960_v7 = vor.u32 %v7343_v30, %v5959_v29  ;;  %v6136_v29 = vor.u32 %v7387_v18, %v6135_v17  ;;  %v7431_v30 = vld [vmem:[#allocation6 + $0xeec] sm:$0xf0]  ;;  %v5977_v17 = vld [vmem:[#allocation6 + $0x1d0] sm:$0xf0] }
 0x145   :  { %2458 = vmatpush.bf16.msrb.mxu3 %v5930_v25  ;;  %v6159_v25 = vld [vmem:[#allocation6 + $0x8d8] sm:$0xf] }
 0x146   :  { %2420 = vmatmul.bf16.vlgmr.msrb.gmra.mxu1 %v7884_v62  ;;  %2432 = vmatpush.bf16.msra.mxu0 %v5802_v57  ;;  %v6160_v37 = vor.u32 %v7393_v26, %v6159_v25  ;;  %v6143_v57 = vld [vmem:[#allocation6 + $0x838] sm:$0xf]  ;;  %v6247_v25 = vld [vmem:[#allocation6 + $0xc48] sm:$0xf]  ;;  %v7415_v26 = vld [vmem:[#allocation6 + $0xc6c] sm:$0xf0] }
 0x147   :  { %3060 = vmatpush.bf16.msra.mxu1 %v5992_v35  ;;  %v7359_v35 = vld [vmem:[#allocation6 + $0x3ac] sm:$0xf0]  ;;  %v1578_v50 = vpop.f32.mrf.mxu3  ;;  %v1567_v59 = vpop.f32.mrf.mxu1  ;;  %v6144_v9 = vor.u32 %v7389_v58, %v6143_v57  ;;  %v6248_v40 = vor.u32 %v7415_v26, %v6247_v25  ;;  %v7348_v58 = vld [vmem:[#allocation6 + $0x1fc] sm:$0xf]  ;;  %v6049_v25 = vld [vmem:[#allocation6 + $0x4a0] sm:$0xf0] }
 0x148   :  { %2445 = vmatpush.bf16.msra.mxu2 %v5866_v43  ;;  %v6024_v42 = vor.u32 %v7359_v35, %v6023_v34  ;;  %v5951_v43 = vld [vmem:[#allocation6 + $0xb8] sm:$0xf]  ;;  %v1579_v1 = vadd.f32 %v1578_v50, %v1566_v27  ;;  %v6311_v27 = vld [vmem:[#allocation6 + $0xec8] sm:$0xf]  ;;  %v7371_v34 = vld [vmem:[#allocation6 + $0x58c] sm:$0xf0] }
 0x149   :  { %3073 = vmatpush.bf16.msra.mxu3 %v6056_v39  ;;  %2433 = vmatmul.bf16.vlgmr.msra.gmra.mxu0 %v7896_v31  ;;  %v7377_v39 = vld [vmem:[#allocation6 + $0x67c] sm:$0xf0]  ;;  %v5985_v59 = vld [vmem:[#allocation6 + $0x220] sm:$0xf0] }
 0x14a   :  { %3086 = vmatpush.bf16.msrb.mxu0 %v6120_v60  ;;  %v6096_v44 = vor.u32 %v7377_v39, %v6095_v38  ;;  %v6016_v60 = vor.u32 %v7357_v47, %v6015_v45  ;;  %v6127_v38 = vld [vmem:[#allocation6 + $0x798] sm:$0xf]  ;;  %v7385_v39 = vld [vmem:[#allocation6 + $0x7bc] sm:$0xf0] }
 0x14b   :  { %3061 = vmatpush.bf16.msra.mxu1 %v5984_v53  ;;  %2446 = vmatmul.bf16.vlgmr.msra.gmra.mxu2 %v7898_v36  ;;  %v7375_v53 = vld [vmem:[#allocation6 + $0x62c] sm:$0xf0]  ;;  %v7413_v45 = vld [vmem:[#allocation6 + $0xc1c] sm:$0xf0]  ;;  %v6303_v47 = vld [vmem:[#allocation6 + $0xe78] sm:$0xf]  ;;  %v6128_v50 = vor.u32 %v7385_v39, %v6127_v38 }
 0x14c   :  { %3099 = vmatpush.bf16.msrb.mxu2 %v6184_v49  ;;  %v1617_v49 = vpop.f32.mrf.mxu0  ;;  %v6088_v4 = vor.u32 %v7375_v53, %v6087_v52  ;;  %v6063_v52 = vld [vmem:[#allocation6 + $0x518] sm:$0xf]  ;;  %v7369_v53 = vld [vmem:[#allocation6 + $0x53c] sm:$0xf0]  ;;  %v7407_v38 = vld [vmem:[#allocation6 + $0xb2c] sm:$0xf0] }
 0x14d   :  { %3074 = vmatpush.bf16.msra.mxu3 %v6048_v56  ;;  %v5952_v56 = vor.u32 %v7341_v16, %v5951_v43  ;;  %v6312_v43 = vor.u32 %v7431_v30, %v6311_v27  ;;  %v5969_v30 = vld [vmem:[#allocation6 + $0x180] sm:$0xf0]  ;;  %v6279_v39 = vld [vmem:[#allocation6 + $0xd88] sm:$0xf] }
 0x14e   :  { %3087 = vmatpush.bf16.msrb.mxu0 %v6112_v15  ;;  %v5944_v15 = vor.u32 %v7339_v0, %v5943_v63  ;;  %v6064_v63 = vor.u32 %v7369_v53, %v6063_v52  ;;  %v6231_v0 = vld [vmem:[#allocation6 + $0xba8] sm:$0xf]  ;;  %v7360_v52 = vld [vmem:[#allocation6 + $0x3dc] sm:$0xf]  ;;  %v6033_v53 = vld [vmem:[#allocation6 + $0x400] sm:$0xf0] }
 0x14f   :  { %3062 = vmatpush.bf16.msra.mxu1 %v5976_v6  ;;  %v1604_v6 = vpop.f32.mrf.mxu2  ;;  %v1580_v35 = vpop.f32.mrf.mxu3 }
 0x150   :  { %3100 = vmatpush.bf16.msrb.mxu2 %v6176_v2  ;;  %v7966_v2 = vadd.f32 %v7955_v48, %v1579_v1  ;;  %v1605_v12 = vadd.f32 %v1604_v6, %v1011_v55  ;;  %v6008_v48 = vor.u32 %v7355_v14, %v6007_v5  ;;  %v6319_v1 = vld [vmem:[#allocation6 + $0xf18] sm:$0xf]  ;;  %v6295_v5 = vld [vmem:[#allocation6 + $0xe28] sm:$0xf]  ;;  %v7427_v14 = vld [vmem:[#allocation6 + $0xe4c] sm:$0xf0] }
 0x151   :  { %3075 = vmatpush.bf16.msra.mxu3 %v6040_v11  ;;  %v7373_v11 = vld [vmem:[#allocation6 + $0x5dc] sm:$0xf0]  ;;  %v6296_v18 = vor.u32 %v7427_v14, %v6295_v5  ;;  %v6036_v5 = vor.u32 %v7360_v52, %v6033_v53  ;;  %v6199_v14 = vld [vmem:[#allocation6 + $0xa68] sm:$0xf]  ;;  %v6113_v52 = vld [vmem:[#allocation6 + $0x720] sm:$0xf0] }
 0x152   :  { %3088 = vmatpush.bf16.msrb.mxu0 %v6104_v33  ;;  %v1686_v13 = vmax.f32 %v7930_v3, %v7966_v2  ;;  %v7970_v23 = vadd.f32 %v1617_v49, %v1605_v12  ;;  %v6071_v33 = vld [vmem:[#allocation6 + $0x568] sm:$0xf]  ;;  %v7396_v53 = vld [vmem:[#allocation6 + $0x97c] sm:$0xf] }
 0x153   :  { %3063 = vmatpush.bf16.msra.mxu1 %v5968_v24  ;;  %v6080_v24 = vor.u32 %v7373_v11, %v6079_v10  ;;  %v6072_v16 = vor.u32 %v7371_v34, %v6071_v33  ;;  %v6057_v10 = vld [vmem:[#allocation6 + $0x4f0] sm:$0xf0]  ;;  %v5988_v11 = vor.u32 %v7348_v58, %v5985_v59  ;;  %v7340_v59 = vld [vmem:[#allocation6 + $0xbc] sm:$0xf]  ;;  %v7531_v2 = vld [vmem:[#allocation6 + $0xf44] sm:$0xf0] }
 0x154   :  { %3101 = vmatpush.bf16.msrb.mxu2 %v6168_v20  ;;  %5932 = vmatmul.msk.bf16.vlgmr.msrb.gmra.mxu3 %vm724_vm0, %v7892_v46  ;;  %v7337_v20 = vld [vmem:[#allocation6 + $0x3c] sm:$0xf0] }
 0x155   :  { %3076 = vmatpush.bf16.msra.mxu3 %v6032_v28  ;;  %v1619_v28 = vpop.f32.mrf.mxu0 }
 0x156   :  { %3089 = vmatpush.bf16.msrb.mxu0 %v6096_v44  ;;  %v6239_v44 = vld [vmem:[#allocation6 + $0xbf8] sm:$0xf] }
 0x157   :  { %3064 = vmatpush.bf16.msra.mxu1 %v5960_v7  ;;  %v6000_v7 = vor.u32 %v7353_v22, %v5999_v21  ;;  %v1606_v49 = vpop.f32.mrf.mxu2  ;;  %v6240_v57 = vor.u32 %v7413_v45, %v6239_v44  ;;  %v6287_v21 = vld [vmem:[#allocation6 + $0xdd8] sm:$0xf]  ;;  %v7425_v22 = vld [vmem:[#allocation6 + $0xdfc] sm:$0xf0]  ;;  %v5961_v44 = vld [vmem:[#allocation6 + $0x130] sm:$0xf0] }
 0x158   :  { %3102 = vmatpush.bf16.msrb.mxu2 %v6160_v37  ;;  %v5936_v37 = vor.u32 %v7337_v20, %v5935_v19  ;;  %v7409_v20 = vld [vmem:[#allocation6 + $0xb7c] sm:$0xf0]  ;;  %v6288_v34 = vor.u32 %v7425_v22, %v6287_v21 }
 0x159   :  { %3077 = vmatpush.bf16.msra.mxu3 %v6024_v42  ;;  %v5993_v42 = vld [vmem:[#allocation6 + $0x270] sm:$0xf0]  ;;  %v7405_v49 = vld [vmem:[#allocation6 + $0xadc] sm:$0xf0] }
 0x15a   :  { %3090 = vmatpush.bf16.msrb.mxu0 %v6088_v4  ;;  %v5996_v55 = vor.u32 %v7350_v41, %v5993_v42  ;;  %v7411_v4 = vld [vmem:[#allocation6 + $0xbcc] sm:$0xf0]  ;;  %v6041_v41 = vld [vmem:[#allocation6 + $0x450] sm:$0xf0] }
 0x15b   :  { %3065 = vmatpush.bf16.msra.mxu1 %v5952_v56  ;;  %v7433_v56 = vld [vmem:[#allocation6 + $0xf3c] sm:$0xf0]  ;;  %v6232_v12 = vor.u32 %v7411_v4, %v6231_v0 }
 0x15c   :  { %3103 = vmatpush.bf16.msrb.mxu2 %v6152_v51  ;;  %v7429_v51 = vld [vmem:[#allocation6 + $0xe9c] sm:$0xf0]  ;;  %v6320_v6 = vor.u32 %v7433_v56, %v6319_v1 }
 0x15d   :  { %3078 = vmatpush.bf16.msra.mxu3 %v6016_v60  ;;  %v6304_v60 = vor.u32 %v7429_v51, %v6303_v47  ;;  %v6207_v47 = vld [vmem:[#allocation6 + $0xab8] sm:$0xf]  ;;  %v7421_v51 = vld [vmem:[#allocation6 + $0xd5c] sm:$0xf0] }
 0x15e   :  { %3091 = vmatpush.bf16.msrb.mxu0 %v6080_v24  ;;  %v7364_v24 = vld [vmem:[#allocation6 + $0x47c] sm:$0xf]  ;;  %v6208_v58 = vor.u32 %v7405_v49, %v6207_v47 }
 0x15f   :  { %3066 = vmatpush.bf16.msra.mxu1 %v5944_v15  ;;  %v7346_v15 = vld [vmem:[#allocation6 + $0x1ac] sm:$0xf]  ;;  %v1630_v27 = vpop.f32.mrf.mxu1  ;;  %v6052_v35 = vor.u32 %v7364_v24, %v6049_v25  ;;  %v7401_v25 = vld [vmem:[#allocation6 + $0xa3c] sm:$0xf0] }
 0x160   :  { %3104 = vmatpush.bf16.msrb.mxu2 %v6144_v9  ;;  %v7366_v9 = vld [vmem:[#allocation6 + $0x4cc] sm:$0xf]  ;;  %v5980_v26 = vor.u32 %v7346_v15, %v5977_v17  ;;  %v1631_v33 = vadd.f32 %v1630_v27, %v7970_v23  ;;  %v7417_v27 = vld [vmem:[#allocation6 + $0xcbc] sm:$0xf0] }
 0x161   :  { %3079 = vmatpush.bf16.msra.mxu3 %v6008_v48  ;;  %v6060_v19 = vor.u32 %v7366_v9, %v6057_v10  ;;  %v6223_v48 = vld [vmem:[#allocation6 + $0xb58] sm:$0xf]  ;;  %v6263_v9 = vld [vmem:[#allocation6 + $0xce8] sm:$0xf]  ;;  %v7419_v10 = vld [vmem:[#allocation6 + $0xd0c] sm:$0xf0] }
 0x162   :  { %3092 = vmatpush.bf16.msrb.mxu0 %v6072_v16  ;;  %v6224_v28 = vor.u32 %v7409_v20, %v6223_v48  ;;  %v7342_v16 = vld [vmem:[#allocation6 + $0x10c] sm:$0xf]  ;;  %v5945_v48 = vld [vmem:[#allocation6 + $0x90] sm:$0xf0]  ;;  %v6191_v20 = vld [vmem:[#allocation6 + $0xa18] sm:$0xf]  ;;  %v6264_v22 = vor.u32 %v7419_v10, %v6263_v9 }
 0x163   :  { %3067 = vmatpush.bf16.msra.mxu1 %v5936_v37  ;;  %v6215_v37 = vld [vmem:[#allocation6 + $0xb08] sm:$0xf]  ;;  %v7394_v9 = vld [vmem:[#allocation6 + $0x92c] sm:$0xf]  ;;  %v6169_v10 = vld [vmem:[#allocation6 + $0x950] sm:$0xf0] }
 0x164   :  { %3105 = vmatpush.bf16.msrb.mxu2 %v6136_v29  ;;  %v7344_v29 = vld [vmem:[#allocation6 + $0x15c] sm:$0xf] }
 0x165   :  { %3080 = vmatpush.bf16.msra.mxu3 %v6000_v7  ;;  %v7423_v7 = vld [vmem:[#allocation6 + $0xdac] sm:$0xf0]  ;;  %v5972_v42 = vor.u32 %v7344_v29, %v5969_v30  ;;  %v6121_v29 = vld [vmem:[#allocation6 + $0x770] sm:$0xf0]  ;;  %v7398_v30 = vld [vmem:[#allocation6 + $0x9cc] sm:$0xf] }
 0x166   :  { %3068 = vmatmul.bf16.vlgmr.msra.gmra.mxu1 %v7882_v61  ;;  %3093 = vmatpush.bf16.msrb.mxu0 %v6064_v63  ;;  %v6280_v45 = vor.u32 %v7423_v7, %v6279_v39  ;;  %v1669_v1 = vpop.f32.mrf.mxu0  ;;  %v6192_v7 = vor.u32 %v7401_v25, %v6191_v20  ;;  %v7410_v20 = vld [vmem:[#allocation6 + $0xbac] sm:$0xf]  ;;  %v7376_v25 = vld [vmem:[#allocation6 + $0x65c] sm:$0xf] }
 0x167   :  { %3112 = vmatpush.bf16.msrb.mxu1 %v6248_v40  ;;  %v7362_v40 = vld [vmem:[#allocation6 + $0x42c] sm:$0xf]  ;;  %v1632_v56 = vpop.f32.mrf.mxu1 }
 0x168   :  { %3106 = vmatpush.bf16.msrb.mxu2 %v6128_v50  ;;  %3081 = vmatmul.bf16.vlgmr.msra.gmra.mxu3 %v7887_v8  ;;  %v6044_v23 = vor.u32 %v7362_v40, %v6041_v41  ;;  %v6271_v50 = vld [vmem:[#allocation6 + $0xd38] sm:$0xf]  ;;  %v7336_v40 = vld [vmem:[#allocation6 + $0x1c] sm:$0xf]  ;;  %v5937_v41 = vld [vmem:[#allocation6 + $0x40] sm:$0xf0] }
 0x169   :  { %3125 = vmatpush.bf16.msrb.mxu3 %v6312_v43  ;;  %3094 = vmatmul.bf16.vlgmr.msrb.gmra.mxu0 %v7880_v54  ;;  %v6216_v43 = vor.u32 %v7407_v38, %v6215_v37  ;;  %v6272_v4 = vor.u32 %v7421_v51, %v6271_v50  ;;  %v6017_v37 = vld [vmem:[#allocation6 + $0x360] sm:$0xf0]  ;;  %v7380_v51 = vld [vmem:[#allocation6 + $0x6fc] sm:$0xf] }
 0x16a   :  { %3145 = vmatpush.bf16.msra.mxu0 %v6320_v6  ;;  %v1656_v0 = vpop.f32.mrf.mxu2  ;;  %v7403_v6 = vld [vmem:[#allocation6 + $0xa8c] sm:$0xf0]  ;;  %v6177_v56 = vld [vmem:[#allocation6 + $0x9a0] sm:$0xf0] }
 0x16b   :  { %3113 = vmatpush.bf16.msrb.mxu1 %v6240_v57  ;;  %3107 = vmatmul.bf16.vlgmr.msrb.gmra.mxu2 %v7884_v62  ;;  %v1643_v57 = vpop.f32.mrf.mxu3 }
 0x16c   :  { %3151 = vmatpush.bf16.msra.mxu2 %v5996_v55  ;;  %v5964_v55 = vor.u32 %v7342_v16, %v5961_v44  ;;  %v1644_v63 = vadd.f32 %v1643_v57, %v1631_v33  ;;  %v7354_v57 = vld [vmem:[#allocation6 + $0x2ec] sm:$0xf] }
 0x16d   :  { %3126 = vmatpush.bf16.msrb.mxu3 %v6304_v60  ;;  %v5953_v60 = vld [vmem:[#allocation6 + $0xe0] sm:$0xf0] }
 0x16e   :  { %3164 = vmatpush.bf16.msrb.mxu0 %v6060_v19  ;;  %v1657_v15 = vadd.f32 %v1656_v0, %v1644_v63  ;;  %v5956_v17 = vor.u32 %v7340_v59, %v5953_v60  ;;  %v7338_v19 = vld [vmem:[#allocation6 + $0x6c] sm:$0xf]  ;;  %v1671_v38 = vpop.f32.mrf.mxu0  ;;  %v6116_v60 = vor.u32 %v7380_v51, %v6113_v52  ;;  %v7412_v63 = vld [vmem:[#allocation6 + $0xbfc] sm:$0xf]  ;;  %v6241_v0 = vld [vmem:[#allocation6 + $0xc20] sm:$0xf0] }
 0x16f   :  { %3114 = vmatpush.bf16.msrb.mxu1 %v6232_v12  ;;  %v6025_v12 = vld [vmem:[#allocation6 + $0x3b0] sm:$0xf0]  ;;  %v5948_v33 = vor.u32 %v7338_v19, %v5945_v48  ;;  %v1682_v39 = vpop.f32.mrf.mxu1  ;;  %v6225_v38 = vld [vmem:[#allocation6 + $0xb80] sm:$0xf0] }
 0x170   :  { %3152 = vmatpush.bf16.msra.mxu2 %v5988_v11  ;;  %v7358_v11 = vld [vmem:[#allocation6 + $0x38c] sm:$0xf]  ;;  %v1670_v21 = vadd.f32 %v1669_v1, %v1657_v15  ;;  %v5940_v1 = vor.u32 %v7336_v40, %v5937_v41  ;;  %v6244_v15 = vor.u32 %v7412_v63, %v6241_v0  ;;  %v6089_v40 = vld [vmem:[#allocation6 + $0x630] sm:$0xf0]  ;;  %v7424_v0 = vld [vmem:[#allocation6 + $0xddc] sm:$0xf] }
 0x171   :  { %3127 = vmatpush.bf16.msrb.mxu3 %v6296_v18  ;;  %v6200_v18 = vor.u32 %v7403_v6, %v6199_v14  ;;  %v6028_v24 = vor.u32 %v7358_v11, %v6025_v12  ;;  %v7378_v14 = vld [vmem:[#allocation6 + $0x6ac] sm:$0xf]  ;;  %v6105_v6 = vld [vmem:[#allocation6 + $0x6d0] sm:$0xf0]  ;;  %v7352_v11 = vld [vmem:[#allocation6 + $0x29c] sm:$0xf] }
 0x172   :  { %3165 = vmatpush.bf16.msrb.mxu0 %v6052_v35  ;;  %v7356_v35 = vld [vmem:[#allocation6 + $0x33c] sm:$0xf]  ;;  %v1658_v47 = vpop.f32.mrf.mxu2  ;;  %v6001_v12 = vld [vmem:[#allocation6 + $0x2c0] sm:$0xf0]  ;;  %v6108_v48 = vor.u32 %v7378_v14, %v6105_v6  ;;  %v6217_v51 = vld [vmem:[#allocation6 + $0xb30] sm:$0xf0] }
 0x173   :  { %3115 = vmatpush.bf16.msrb.mxu1 %v6224_v28  ;;  %v7382_v28 = vld [vmem:[#allocation6 + $0x74c] sm:$0xf]  ;;  %v6020_v50 = vor.u32 %v7356_v35, %v6017_v37  ;;  %v7408_v37 = vld [vmem:[#allocation6 + $0xb5c] sm:$0xf]  ;;  %v6297_v47 = vld [vmem:[#allocation6 + $0xe50] sm:$0xf0] }
 0x174   :  { %3153 = vmatpush.bf16.msra.mxu2 %v5980_v26  ;;  %v6255_v26 = vld [vmem:[#allocation6 + $0xc98] sm:$0xf]  ;;  %v6124_v44 = vor.u32 %v7382_v28, %v6121_v29  ;;  %v7392_v28 = vld [vmem:[#allocation6 + $0x8dc] sm:$0xf]  ;;  %v6161_v29 = vld [vmem:[#allocation6 + $0x900] sm:$0xf0] }
 0x175   :  { %3128 = vmatpush.bf16.msrb.mxu3 %v6288_v34  ;;  %v6185_v34 = vld [vmem:[#allocation6 + $0x9f0] sm:$0xf0]  ;;  %v6256_v16 = vor.u32 %v7417_v27, %v6255_v26  ;;  %v6097_v26 = vld [vmem:[#allocation6 + $0x680] sm:$0xf0]  ;;  %v7404_v6 = vld [vmem:[#allocation6 + $0xabc] sm:$0xf] }
 0x176   :  { %3166 = vmatpush.bf16.msrb.mxu0 %v6044_v23  ;;  %v6249_v23 = vld [vmem:[#allocation6 + $0xc70] sm:$0xf0]  ;;  %v6188_v49 = vor.u32 %v7398_v30, %v6185_v34  ;;  %v6305_v34 = vld [vmem:[#allocation6 + $0xea0] sm:$0xf0]  ;;  %v6100_v35 = vor.u32 %v7376_v25, %v6097_v26 }
 0x177   :  { %3116 = vmatpush.bf16.msrb.mxu1 %v6216_v43  ;;  %v7979_v43 = vadd.f32 %v1682_v39, %v1670_v21  ;;  %v1684_v19 = vpop.f32.mrf.mxu1  ;;  %v6233_v21 = vld [vmem:[#allocation6 + $0xbd0] sm:$0xf0]  ;;  %v6164_v39 = vor.u32 %v7392_v28, %v6161_v29  ;;  %v7368_v29 = vld [vmem:[#allocation6 + $0x51c] sm:$0xf] }
 0x178   :  { %3154 = vmatpush.bf16.msra.mxu2 %v5972_v42  ;;  %v1645_v42 = vpop.f32.mrf.mxu3  ;;  %v6236_v30 = vor.u32 %v7410_v20, %v6233_v21  ;;  %v6137_v20 = vld [vmem:[#allocation6 + $0x810] sm:$0xf0] }
 0x179   :  { %3129 = vmatpush.bf16.msrb.mxu3 %v6280_v45  ;;  %6325 = vmatmul.msk.bf16.vlgmr.msra.gmra.mxu0 %vm724_vm0, %v7892_v46  ;;  %v7414_v45 = vld [vmem:[#allocation6 + $0xc4c] sm:$0xf]  ;;  %v6281_v25 = vld [vmem:[#allocation6 + $0xdb0] sm:$0xf0] }
 0x17a   :  { %3167 = vmatpush.bf16.msrb.mxu0 %v6036_v5  ;;  %v6252_v59 = vor.u32 %v7414_v45, %v6249_v23  ;;  %v7390_v42 = vld [vmem:[#allocation6 + $0x88c] sm:$0xf]  ;;  %v6228_v45 = vor.u32 %v7408_v37, %v6225_v38  ;;  %v6201_v28 = vld [vmem:[#allocation6 + $0xa90] sm:$0xf0]  ;;  %v7384_v37 = vld [vmem:[#allocation6 + $0x79c] sm:$0xf] }
 0x17b   :  { %3117 = vmatpush.bf16.msrb.mxu1 %v6208_v58  ;;  %v6009_v58 = vld [vmem:[#allocation6 + $0x310] sm:$0xf0]  ;;  %v7426_v23 = vld [vmem:[#allocation6 + $0xe2c] sm:$0xf]  ;;  %v6129_v38 = vld [vmem:[#allocation6 + $0x7c0] sm:$0xf0] }
 0x17c   :  { %3155 = vmatpush.bf16.msra.mxu2 %v5964_v55  ;;  %v1687_v55 = vmax.f32 %v7944_v32, %v7979_v43  ;;  %v6012_v5 = vor.u32 %v7354_v57, %v6009_v58  ;;  %v6300_v58 = vor.u32 %v7426_v23, %v6297_v47  ;;  %v6273_v23 = vld [vmem:[#allocation6 + $0xd60] sm:$0xf0]  ;;  %v7524_v32 = vld [vmem:[#allocation6 + $0xe34] sm:$0xf]  ;;  %v6691_v43 = vld [vmem:[#allocation6 + $0xe58] sm:$0xf0] }
 0x17d   :  { %3130 = vmatpush.bf16.msrb.mxu3 %v6272_v4  ;;  %v6180_v4 = vor.u32 %v7396_v53, %v6177_v56  ;;  %v6081_v56 = vld [vmem:[#allocation6 + $0x5e0] sm:$0xf0] }
 0x17e   :  { %3168 = vmatpush.bf16.msrb.mxu0 %v6028_v24  ;;  %v6004_v24 = vor.u32 %v7352_v11, %v6001_v12 }
 0x17f   :  { %3118 = vmatpush.bf16.msrb.mxu1 %v6200_v18  ;;  %v6313_v18 = vld [vmem:[#allocation6 + $0xef0] sm:$0xf0] }
 0x180   :  { %3156 = vmatpush.bf16.msra.mxu2 %v5956_v17  ;;  %v7430_v17 = vld [vmem:[#allocation6 + $0xecc] sm:$0xf] }
 0x181   :  { %3131 = vmatpush.bf16.msrb.mxu3 %v6264_v22  ;;  %v6172_v22 = vor.u32 %v7394_v9, %v6169_v10  ;;  %v6316_v27 = vor.u32 %v7430_v17, %v6313_v18  ;;  %v6209_v9 = vld [vmem:[#allocation6 + $0xae0] sm:$0xf0]  ;;  %v7370_v17 = vld [vmem:[#allocation6 + $0x56c] sm:$0xf]  ;;  %v6073_v18 = vld [vmem:[#allocation6 + $0x590] sm:$0xf0] }
 0x182   :  { %3169 = vmatpush.bf16.msrb.mxu0 %v6020_v50  ;;  %v7406_v50 = vld [vmem:[#allocation6 + $0xb0c] sm:$0xf]  ;;  %v6212_v21 = vor.u32 %v7404_v6, %v6209_v9  ;;  %v6076_v26 = vor.u32 %v7370_v17, %v6073_v18  ;;  %v6265_v9 = vld [vmem:[#allocation6 + $0xd10] sm:$0xf0] }
 0x183   :  { %3119 = vmatpush.bf16.msrb.mxu1 %v6192_v7  ;;  %v7374_v7 = vld [vmem:[#allocation6 + $0x60c] sm:$0xf]  ;;  %v2304_v52 = vpop.f32.mrf.mxu1  ;;  %v6220_v63 = vor.u32 %v7406_v50, %v6217_v51  ;;  %v6193_v50 = vld [vmem:[#allocation6 + $0xa40] sm:$0xf0] }
 0x184   :  { %3157 = vmatpush.bf16.msra.mxu2 %v5948_v33  ;;  %v7428_v33 = vld [vmem:[#allocation6 + $0xe7c] sm:$0xf]  ;;  %v7418_v6 = vld [vmem:[#allocation6 + $0xcec] sm:$0xf] }
 0x185   :  { %3132 = vmatpush.bf16.msrb.mxu3 %v6256_v16  ;;  %v6308_v41 = vor.u32 %v7428_v33, %v6305_v34  ;;  %v6153_v16 = vld [vmem:[#allocation6 + $0x8b0] sm:$0xf0] }
 0x186   :  { %3120 = vmatmul.bf16.vlgmr.msrb.gmra.mxu1 %v7896_v31  ;;  %3170 = vmatpush.bf16.msrb.mxu0 %v6012_v5  ;;  %v6156_v53 = vor.u32 %v7390_v42, %v6153_v16  ;;  %v7990_v10 = vpop.f32.mrf.mxu0  ;;  %v7449_v16 = vld [vmem:[#allocation6 + $0x274] sm:$0xf0] }
 0x187   :  { %3177 = vmatpush.bf16.msra.mxu1 %v6124_v44  ;;  %v7986_v44 = vld [vmem:[#allocation8 + $0x4] sm:$0x3]  ;;  %v2291_v14 = vpop.f32.mrf.mxu3 }
 0x188   :  { %3158 = vmatpush.bf16.msra.mxu2 %v5940_v1  ;;  %3133 = vmatmul.bf16.vlgmr.msrb.gmra.mxu3 %v7898_v36  ;;  %v7372_v1 = vld [vmem:[#allocation6 + $0x5bc] sm:$0xf]  ;;  %v1788_v57 = vperm.slane %v7986_v44, 0 }
 0x189   :  { %3190 = vmatpush.bf16.msra.mxu3 %v6188_v49  ;;  %v6092_v49 = vor.u32 %v7374_v7, %v6089_v40  ;;  %v6084_v5 = vor.u32 %v7372_v1, %v6081_v56  ;;  %v6385_v7 = vld [vmem:[#allocation6 + $0x250] sm:$0xf]  ;;  %v7432_v40 = vld [vmem:[#allocation6 + $0xf1c] sm:$0xf]  ;;  %v6132_v1 = vor.u32 %v7384_v37, %v6129_v38 }
 0x18a   :  { %3171 = vmatpush.bf16.msrb.mxu0 %v6004_v24  ;;  %v2317_v11 = vpop.f32.mrf.mxu2  ;;  %v7422_v24 = vld [vmem:[#allocation6 + $0xd8c] sm:$0xf]  ;;  %v6513_v56 = vld [vmem:[#allocation6 + $0x750] sm:$0xf] }
 0x18b   :  { %3178 = vmatpush.bf16.msra.mxu1 %v6116_v60  ;;  %3159 = vmatmul.bf16.vlgmr.msra.gmra.mxu2 %v7882_v61  ;;  %v6145_v60 = vld [vmem:[#allocation6 + $0x860] sm:$0xf0] }
 0x18c   :  { %3203 = vmatpush.bf16.msrb.mxu2 %v6252_v59  ;;  %v7388_v59 = vld [vmem:[#allocation6 + $0x83c] sm:$0xf] }
 0x18d   :  { %3191 = vmatpush.bf16.msra.mxu3 %v6180_v4  ;;  %3172 = vmatmul.bf16.vlgmr.msrb.gmra.mxu0 %v7887_v8  ;;  %v6289_v4 = vld [vmem:[#allocation6 + $0xe00] sm:$0xf0]  ;;  %v6148_v12 = vor.u32 %v7388_v59, %v6145_v60  ;;  %v6386_v59 = vor.u32 %v7449_v16, %v6385_v7  ;;  %v7461_v7 = vld [vmem:[#allocation6 + $0x454] sm:$0xf0] }
 0x18e   :  { %3216 = vmatpush.bf16.msra.mxu0 %v6316_v27  ;;  %v6292_v19 = vor.u32 %v7424_v0, %v6289_v4  ;;  %v7402_v27 = vld [vmem:[#allocation6 + $0xa6c] sm:$0xf]  ;;  %v6449_v0 = vld [vmem:[#allocation6 + $0x4d0] sm:$0xf]  ;;  %v7465_v4 = vld [vmem:[#allocation6 + $0x4f4] sm:$0xf0] }
 0x18f   :  { %3179 = vmatpush.bf16.msra.mxu1 %v6108_v48  ;;  %v7386_v48 = vld [vmem:[#allocation6 + $0x7ec] sm:$0xf]  ;;  %v6204_v42 = vor.u32 %v7402_v27, %v6201_v28  ;;  %v2293_v51 = vpop.f32.mrf.mxu3  ;;  %v6450_v17 = vor.u32 %v7465_v4, %v6449_v0  ;;  %v6577_v27 = vld [vmem:[#allocation6 + $0x9d0] sm:$0xf]  ;;  %v7497_v28 = vld [vmem:[#allocation6 + $0x9f4] sm:$0xf0] }
 0x190   :  { %3204 = vmatpush.bf16.msrb.mxu2 %v6244_v15  ;;  %v2292_v15 = vadd.f32 %v2291_v14, %v1788_v57  ;;  %v6140_v34 = vor.u32 %v7386_v48, %v6137_v20  ;;  %v7481_v57 = vld [vmem:[#allocation6 + $0x774] sm:$0xf0]  ;;  %v7447_v14 = vld [vmem:[#allocation6 + $0x224] sm:$0xf0]  ;;  %v6369_v48 = vld [vmem:[#allocation6 + $0x1b0] sm:$0xf] }
 0x191   :  { %3192 = vmatpush.bf16.msra.mxu3 %v6172_v22  ;;  %v6441_v20 = vld [vmem:[#allocation6 + $0x480] sm:$0xf]  ;;  %v6481_v0 = vld [vmem:[#allocation6 + $0x610] sm:$0xf]  ;;  %v7473_v4 = vld [vmem:[#allocation6 + $0x634] sm:$0xf0] }
 0x192   :  { %3217 = vmatpush.bf16.msra.mxu0 %v6308_v41  ;;  %v2305_v22 = vadd.f32 %v2304_v52, %v2292_v15  ;;  %v6321_v41 = vld [vmem:[#allocation6 + $0xf40] sm:$0xf0]  ;;  %v2332_v52 = vpop.f32.mrf.mxu0  ;;  %v7479_v15 = vld [vmem:[#allocation6 + $0x724] sm:$0xf0] }
 0x193   :  { %3180 = vmatpush.bf16.msra.mxu1 %v6100_v35  ;;  %v6065_v35 = vld [vmem:[#allocation6 + $0x540] sm:$0xf0]  ;;  %v6425_v52 = vld [vmem:[#allocation6 + $0x3e0] sm:$0xf] }
 0x194   :  { %3205 = vmatpush.bf16.msrb.mxu2 %v6236_v30  ;;  %v2306_v30 = vpop.f32.mrf.mxu1  ;;  %v7992_v33 = vadd.f32 %v2317_v11, %v2305_v22  ;;  %v6068_v47 = vor.u32 %v7368_v29, %v6065_v35  ;;  %v6514_v11 = vor.u32 %v7481_v57, %v6513_v56  ;;  %v7445_v22 = vld [vmem:[#allocation6 + $0x1d4] sm:$0xf0]  ;;  %v6497_v29 = vld [vmem:[#allocation6 + $0x6b0] sm:$0xf] }
 0x195   :  { %3193 = vmatpush.bf16.msra.mxu3 %v6164_v39  ;;  %v6284_v39 = vor.u32 %v7422_v24, %v6281_v25  ;;  %v7416_v24 = vld [vmem:[#allocation6 + $0xc9c] sm:$0xf]  ;;  %v6257_v25 = vld [vmem:[#allocation6 + $0xcc0] sm:$0xf0]  ;;  %v7477_v30 = vld [vmem:[#allocation6 + $0x6d4] sm:$0xf0]  ;;  %v6370_v37 = vor.u32 %v7445_v22, %v6369_v48 }
 0x196   :  { %3218 = vmatpush.bf16.msra.mxu0 %v6300_v58  ;;  %v6324_v58 = vor.u32 %v7432_v40, %v6321_v41  ;;  %v6260_v38 = vor.u32 %v7416_v24, %v6257_v25  ;;  %v6578_v40 = vor.u32 %v7497_v28, %v6577_v27  ;;  %v6361_v41 = vld [vmem:[#allocation6 + $0x160] sm:$0xf]  ;;  %v6498_v16 = vor.u32 %v7477_v30, %v6497_v29  ;;  %v6353_v56 = vld [vmem:[#allocation6 + $0x110] sm:$0xf]  ;;  %v7441_v57 = vld [vmem:[#allocation6 + $0x134] sm:$0xf0] }
 0x197   :  { %3181 = vmatpush.bf16.msra.mxu1 %v6092_v49  ;;  %v7400_v49 = vld [vmem:[#allocation6 + $0xa1c] sm:$0xf]  ;;  %v7491_v22 = vld [vmem:[#allocation6 + $0x904] sm:$0xf0]  ;;  %v6473_v25 = vld [vmem:[#allocation6 + $0x5c0] sm:$0xf] }
 0x198   :  { %3206 = vmatpush.bf16.msrb.mxu2 %v6228_v45  ;;  %v7420_v45 = vld [vmem:[#allocation6 + $0xd3c] sm:$0xf]  ;;  %v6409_v29 = vld [vmem:[#allocation6 + $0x340] sm:$0xf] }
 0x199   :  { %3194 = vmatpush.bf16.msra.mxu3 %v6156_v53  ;;  %v2319_v53 = vpop.f32.mrf.mxu2  ;;  %v6276_v60 = vor.u32 %v7420_v45, %v6273_v23  ;;  %v6569_v45 = vld [vmem:[#allocation6 + $0x980] sm:$0xf]  ;;  %v7495_v23 = vld [vmem:[#allocation6 + $0x9a4] sm:$0xf0] }
 0x19a   :  { %3219 = vmatpush.bf16.msra.mxu0 %v6292_v19  ;;  %v6268_v19 = vor.u32 %v7418_v6, %v6265_v9  ;;  %v7459_v53 = vld [vmem:[#allocation6 + $0x404] sm:$0xf0]  ;;  %v6354_v6 = vor.u32 %v7441_v57, %v6353_v56  ;;  %v6417_v9 = vld [vmem:[#allocation6 + $0x390] sm:$0xf] }
 0x19b   :  { %3182 = vmatpush.bf16.msra.mxu1 %v6084_v5  ;;  %v6196_v5 = vor.u32 %v7400_v49, %v6193_v50  ;;  %v7475_v49 = vld [vmem:[#allocation6 + $0x684] sm:$0xf0]  ;;  %v6641_v57 = vld [vmem:[#allocation6 + $0xc50] sm:$0xf] }
 0x19c   :  { %3207 = vmatpush.bf16.msrb.mxu2 %v6220_v63  ;;  %v6377_v63 = vld [vmem:[#allocation6 + $0x200] sm:$0xf]  ;;  %v7435_v56 = vld [vmem:[#allocation6 + $0x44] sm:$0xf0] }
 0x19d   :  { %3195 = vmatpush.bf16.msra.mxu3 %v6148_v12  ;;  %v6505_v12 = vld [vmem:[#allocation6 + $0x700] sm:$0xf]  ;;  %v6378_v18 = vor.u32 %v7447_v14, %v6377_v63 }
 0x19e   :  { %3220 = vmatpush.bf16.msra.mxu0 %v6284_v39  ;;  %v6433_v39 = vld [vmem:[#allocation6 + $0x430] sm:$0xf] }
 0x19f   :  { %3183 = vmatpush.bf16.msra.mxu1 %v6076_v26  ;;  %v6506_v26 = vor.u32 %v7479_v15, %v6505_v12  ;;  %v6434_v50 = vor.u32 %v7461_v7, %v6433_v39  ;;  %v2331_v12 = vadd.f32 %v7990_v10, %v7992_v33  ;;  %v7455_v10 = vld [vmem:[#allocation6 + $0x364] sm:$0xf0]  ;;  %v6545_v7 = vld [vmem:[#allocation6 + $0x890] sm:$0xf] }
 0x1a0   :  { %3208 = vmatpush.bf16.msrb.mxu2 %v6212_v21  ;;  %v7463_v21 = vld [vmem:[#allocation6 + $0x4a4] sm:$0xf0] }
 0x1a1   :  { %3196 = vmatpush.bf16.msra.mxu3 %v6140_v34  ;;  %v6442_v34 = vor.u32 %v7463_v21, %v6441_v20  ;;  %v7996_v35 = vpop.f32.mrf.mxu2  ;;  %v6482_v20 = vor.u32 %v7473_v4, %v6481_v0  ;;  %v6553_v21 = vld [vmem:[#allocation6 + $0x8e0] sm:$0xf]  ;;  %v7487_v0 = vld [vmem:[#allocation6 + $0x864] sm:$0xf0] }
 0x1a2   :  { %3221 = vmatpush.bf16.msra.mxu0 %v6276_v60  ;;  %v7493_v60 = vld [vmem:[#allocation6 + $0x954] sm:$0xf0]  ;;  %v6457_v4 = vld [vmem:[#allocation6 + $0x520] sm:$0xf] }
 0x1a3   :  { %3184 = vmatpush.bf16.msra.mxu1 %v6068_v47  ;;  %v6489_v47 = vld [vmem:[#allocation6 + $0x660] sm:$0xf]  ;;  %v2356_v63 = vpop.f32.mrf.mxu1 }
 0x1a4   :  { %3209 = vmatpush.bf16.msrb.mxu2 %v6204_v42  ;;  %v7443_v42 = vld [vmem:[#allocation6 + $0x184] sm:$0xf0] }
 0x1a5   :  { %3197 = vmatpush.bf16.msra.mxu3 %v6132_v1  ;;  %v6362_v51 = vor.u32 %v7443_v42, %v6361_v41  ;;  %v6570_v1 = vor.u32 %v7495_v23, %v6569_v45  ;;  %v6465_v42 = vld [vmem:[#allocation6 + $0x570] sm:$0xf]  ;;  %v6410_v45 = vor.u32 %v7455_v10, %v6409_v29 }
 0x1a6   :  { %3185 = vmatmul.bf16.vlgmr.msra.gmra.mxu1 %v7880_v54  ;;  %3222 = vmatpush.bf16.msra.mxu0 %v6268_v19  ;;  %v1789_v19 = vperm.slane %v7986_v44, 1  ;;  %v2382_v33 = vpop.f32.mrf.mxu0  ;;  %v6554_v44 = vor.u32 %v7491_v22, %v6553_v21  ;;  %v6529_v21 = vld [vmem:[#allocation6 + $0x7f0] sm:$0xf]  ;;  %v7485_v22 = vld [vmem:[#allocation6 + $0x814] sm:$0xf0] }
 0x1a7   :  { %3236 = vmatpush.bf16.msrb.mxu1 %v6324_v58  ;;  %v6490_v58 = vor.u32 %v7475_v49, %v6489_v47  ;;  %v2343_v48 = vpop.f32.mrf.mxu3 }
 0x1a8   :  { %3210 = vmatpush.bf16.msrb.mxu2 %v6196_v5  ;;  %3198 = vmatmul.bf16.vlgmr.msra.gmra.mxu3 %v7884_v62  ;;  %v6426_v5 = vor.u32 %v7459_v53, %v6425_v52  ;;  %v2344_v24 = vadd.f32 %v2343_v48, %v2331_v12 }
 0x1a9   :  { %3838 = vmatpush.bf16.msrb.mxu3 %v6386_v59  ;;  %v6561_v59 = vld [vmem:[#allocation6 + $0x930] sm:$0xf]  ;;  %v2371_v14 = vpop.f32.mrf.mxu2 }
 0x1aa   :  { %3223 = vmatpush.bf16.msra.mxu0 %v6260_v38  ;;  %v6562_v15 = vor.u32 %v7493_v60, %v6561_v59  ;;  %v2357_v30 = vadd.f32 %v2356_v63, %v2344_v24  ;;  %v2383_v38 = vadd.f32 %v2382_v33, %v1789_v19  ;;  %v7513_v60 = vld [vmem:[#allocation6 + $0xc74] sm:$0xf0]  ;;  %v6537_v63 = vld [vmem:[#allocation6 + $0x840] sm:$0xf]  ;;  %v6530_v33 = vor.u32 %v7485_v22, %v6529_v21  ;;  %v7503_v22 = vld [vmem:[#allocation6 + $0xae4] sm:$0xf0] }
 0x1ab   :  { %3851 = vmatpush.bf16.msra.mxu1 %v6450_v17  ;;  %3211 = vmatmul.bf16.vlgmr.msrb.gmra.mxu2 %v7896_v31  ;;  %v6345_v17 = vld [vmem:[#allocation6 + $0xc0] sm:$0xf]  ;;  %v2358_v47 = vpop.f32.mrf.mxu1  ;;  %v6642_v12 = vor.u32 %v7513_v60, %v6641_v57  ;;  %v7529_v19 = vld [vmem:[#allocation6 + $0xef4] sm:$0xf0]  ;;  %v7446_v57 = vld [vmem:[#allocation6 + $0x204] sm:$0xf] }
 0x1ac   :  { %3864 = vmatpush.bf16.msra.mxu2 %v6514_v11  ;;  %v7457_v11 = vld [vmem:[#allocation6 + $0x3b4] sm:$0xf0]  ;;  %v2370_v41 = vadd.f32 %v7996_v35, %v2357_v30  ;;  %v6329_v35 = vld [vmem:[#allocation6 + $0x20] sm:$0xf]  ;;  %v6625_v30 = vld [vmem:[#allocation6 + $0xbb0] sm:$0xf] }
 0x1ad   :  { %3839 = vmatpush.bf16.msrb.mxu3 %v6378_v18  ;;  %3224 = vmatmul.bf16.vlgmr.msra.gmra.mxu0 %v7898_v36  ;;  %v7439_v18 = vld [vmem:[#allocation6 + $0xe4] sm:$0xf0]  ;;  %v6418_v27 = vor.u32 %v7457_v11, %v6417_v9  ;;  %v6330_v3 = vor.u32 %v7435_v56, %v6329_v35  ;;  %v6435_v60 = vld [vmem:[#allocation6 + $0x458] sm:$0xf0]  ;;  %v6601_v21 = vld [vmem:[#allocation6 + $0xac0] sm:$0xf] }
 0x1ae   :  { %3877 = vmatpush.bf16.msrb.mxu0 %v6578_v40  ;;  %v6346_v28 = vor.u32 %v7439_v18, %v6345_v17  ;;  %v7489_v40 = vld [vmem:[#allocation6 + $0x8b4] sm:$0xf0]  ;;  %v8011_v53 = vmax.f32 %v1686_v13, %v2370_v41  ;;  %v6393_v13 = vld [vmem:[#allocation6 + $0x2a0] sm:$0xf]  ;;  %v7451_v9 = vld [vmem:[#allocation6 + $0x2c4] sm:$0xf0]  ;;  %v2384_v11 = vpop.f32.mrf.mxu0 }
 0x1af   :  { %3852 = vmatpush.bf16.msra.mxu1 %v6442_v34  ;;  %v6337_v34 = vld [vmem:[#allocation6 + $0x70] sm:$0xf]  ;;  %v2345_v59 = vpop.f32.mrf.mxu3  ;;  %v6633_v17 = vld [vmem:[#allocation6 + $0xc00] sm:$0xf]  ;;  %v6387_v41 = vld [vmem:[#allocation6 + $0x278] sm:$0xf0] }
 0x1b0   :  { %3865 = vmatpush.bf16.msra.mxu2 %v6506_v26  ;;  %v7471_v26 = vld [vmem:[#allocation6 + $0x5e4] sm:$0xf0]  ;;  %v6705_v18 = vld [vmem:[#allocation6 + $0xed0] sm:$0xf]  ;;  %v7460_v59 = vld [vmem:[#allocation6 + $0x434] sm:$0xf] }
 0x1b1   :  { %3840 = vmatpush.bf16.msrb.mxu3 %v6370_v37  ;;  %v7437_v37 = vld [vmem:[#allocation6 + $0x94] sm:$0xf0]  ;;  %v6474_v39 = vor.u32 %v7471_v26, %v6473_v25  ;;  %v2395_v23 = vpop.f32.mrf.mxu2  ;;  %v6394_v25 = vor.u32 %v7451_v9, %v6393_v13  ;;  %v6706_v29 = vor.u32 %v7529_v19, %v6705_v18  ;;  %v7507_v35 = vld [vmem:[#allocation6 + $0xb84] sm:$0xf0]  ;;  %v7444_v9 = vld [vmem:[#allocation6 + $0x1b4] sm:$0xf] }
 0x1b2   :  { %3878 = vmatpush.bf16.msrb.mxu0 %v6570_v1  ;;  %v6338_v49 = vor.u32 %v7437_v37, %v6337_v34  ;;  %v8006_v52 = vadd.f32 %v2395_v23, %v2383_v38  ;;  %v6546_v1 = vor.u32 %v7489_v40, %v6545_v7  ;;  %v7527_v34 = vld [vmem:[#allocation6 + $0xea4] sm:$0xf0]  ;;  %v7509_v37 = vld [vmem:[#allocation6 + $0xbd4] sm:$0xf0]  ;;  %v6521_v38 = vld [vmem:[#allocation6 + $0x7a0] sm:$0xf] }
 0x1b3   :  { %3853 = vmatpush.bf16.msra.mxu1 %v6434_v50  ;;  %v6401_v50 = vld [vmem:[#allocation6 + $0x2f0] sm:$0xf]  ;;  %v7448_v40 = vld [vmem:[#allocation6 + $0x254] sm:$0xf]  ;;  %v6626_v23 = vor.u32 %v7509_v37, %v6625_v30  ;;  %v6371_v11 = vld [vmem:[#allocation6 + $0x1d8] sm:$0xf0] }
 0x1b4   :  { %3866 = vmatpush.bf16.msra.mxu2 %v6498_v16  ;;  %v7469_v16 = vld [vmem:[#allocation6 + $0x594] sm:$0xf0]  ;;  %v6673_v19 = vld [vmem:[#allocation6 + $0xd90] sm:$0xf]  ;;  %v7519_v37 = vld [vmem:[#allocation6 + $0xd64] sm:$0xf0] }
 0x1b5   :  { %3841 = vmatpush.bf16.msrb.mxu3 %v6362_v51  ;;  %v7453_v51 = vld [vmem:[#allocation6 + $0x314] sm:$0xf0] }
 0x1b6   :  { %6326 = vmatmul.msk.bf16.vlgmr.msrb.gmra.mxu1 %vm724_vm0, %v7892_v46  ;;  %3879 = vmatpush.bf16.msrb.mxu0 %v6562_v15  ;;  %v6402_v14 = vor.u32 %v7453_v51, %v6401_v50  ;;  %v6538_v15 = vor.u32 %v7487_v0, %v6537_v63  ;;  %v7525_v50 = vld [vmem:[#allocation6 + $0xe54] sm:$0xf0]  ;;  %v6390_v51 = vor.u32 %v7448_v40, %v6387_v41 }
 0x1b7   :  { %3854 = vmatpush.bf16.msra.mxu1 %v6426_v5  ;;  %v7467_v5 = vld [vmem:[#allocation6 + $0x544] sm:$0xf0]  ;;  %v7501_v40 = vld [vmem:[#allocation6 + $0xa94] sm:$0xf0] }
 0x1b8   :  { %3867 = vmatpush.bf16.msra.mxu2 %v6490_v58  ;;  %v6466_v58 = vor.u32 %v7469_v16, %v6465_v42  ;;  %v6458_v48 = vor.u32 %v7467_v5, %v6457_v4  ;;  %v7462_v42 = vld [vmem:[#allocation6 + $0x484] sm:$0xf]  ;;  %v6443_v16 = vld [vmem:[#allocation6 + $0x4a8] sm:$0xf0]  ;;  %v6681_v4 = vld [vmem:[#allocation6 + $0xde0] sm:$0xf] }
 0x1b9   :  { %3842 = vmatpush.bf16.msrb.mxu3 %v6354_v6  ;;  %v6713_v6 = vld [vmem:[#allocation6 + $0xf20] sm:$0xf]  ;;  %v2397_v26 = vpop.f32.mrf.mxu2  ;;  %v6446_v56 = vor.u32 %v7462_v42, %v6443_v16  ;;  %v7523_v5 = vld [vmem:[#allocation6 + $0xe04] sm:$0xf0]  ;;  %v7440_v42 = vld [vmem:[#allocation6 + $0x114] sm:$0xf] }
 0x1ba   :  { %3880 = vmatpush.bf16.msrb.mxu0 %v6554_v44  ;;  %v6714_v24 = vor.u32 %v7531_v2, %v6713_v6  ;;  %v6697_v44 = vld [vmem:[#allocation6 + $0xe80] sm:$0xf]  ;;  %v6609_v6 = vld [vmem:[#allocation6 + $0xb10] sm:$0xf]  ;;  %v6438_v2 = vor.u32 %v7460_v59, %v6435_v60  ;;  %v7442_v26 = vld [vmem:[#allocation6 + $0x164] sm:$0xf] }
 0x1bb   :  { %3855 = vmatpush.bf16.msra.mxu1 %v6418_v27  ;;  %v7464_v27 = vld [vmem:[#allocation6 + $0x4d4] sm:$0xf]  ;;  %v6355_v16 = vld [vmem:[#allocation6 + $0x138] sm:$0xf0]  ;;  %v7499_v59 = vld [vmem:[#allocation6 + $0xa44] sm:$0xf0] }
 0x1bc   :  { %3868 = vmatpush.bf16.msra.mxu2 %v6482_v20  ;;  %v7511_v20 = vld [vmem:[#allocation6 + $0xc24] sm:$0xf0]  ;;  %v7480_v60 = vld [vmem:[#allocation6 + $0x754] sm:$0xf] }
 0x1bd   :  { %3843 = vmatpush.bf16.msrb.mxu3 %v6346_v28  ;;  %v6451_v28 = vld [vmem:[#allocation6 + $0x4f8] sm:$0xf0]  ;;  %v6634_v10 = vor.u32 %v7511_v20, %v6633_v17  ;;  %v6682_v17 = vor.u32 %v7523_v5, %v6681_v4  ;;  %v6374_v20 = vor.u32 %v7444_v9, %v6371_v11  ;;  %v7438_v5 = vld [vmem:[#allocation6 + $0xc4] sm:$0xf]  ;;  %v6649_v9 = vld [vmem:[#allocation6 + $0xca0] sm:$0xf] }
 0x1be   :  { %3881 = vmatpush.bf16.msrb.mxu0 %v6546_v1  ;;  %v6454_v7 = vor.u32 %v7464_v27, %v6451_v28  ;;  %v6617_v1 = vld [vmem:[#allocation6 + $0xb60] sm:$0xf]  ;;  %v6363_v27 = vld [vmem:[#allocation6 + $0x188] sm:$0xf0]  ;;  %v6515_v4 = vld [vmem:[#allocation6 + $0x778] sm:$0xf0] }
 0x1bf   :  { %3856 = vmatpush.bf16.msra.mxu1 %v6410_v45  ;;  %v6698_v45 = vor.u32 %v7527_v34, %v6697_v44  ;;  %v6618_v0 = vor.u32 %v7507_v35, %v6617_v1  ;;  %v6602_v44 = vor.u32 %v7503_v22, %v6601_v21  ;;  %v6665_v34 = vld [vmem:[#allocation6 + $0xd40] sm:$0xf]  ;;  %v6657_v1 = vld [vmem:[#allocation6 + $0xcf0] sm:$0xf]  ;;  %v7517_v35 = vld [vmem:[#allocation6 + $0xd14] sm:$0xf0] }
 0x1c0   :  { %3869 = vmatpush.bf16.msra.mxu2 %v6474_v39  ;;  %v7483_v39 = vld [vmem:[#allocation6 + $0x7c4] sm:$0xf0]  ;;  %v6507_v21 = vld [vmem:[#allocation6 + $0x728] sm:$0xf0]  ;;  %v7436_v22 = vld [vmem:[#allocation6 + $0x74] sm:$0xf] }
 0x1c1   :  { %3844 = vmatpush.bf16.msrb.mxu3 %v6338_v49  ;;  %v6522_v47 = vor.u32 %v7483_v39, %v6521_v38  ;;  %v6689_v49 = vld [vmem:[#allocation6 + $0xe30] sm:$0xf]  ;;  %v6366_v39 = vor.u32 %v7442_v26, %v6363_v27  ;;  %v7515_v11 = vld [vmem:[#allocation6 + $0xcc4] sm:$0xf0]  ;;  %v6395_v26 = vld [vmem:[#allocation6 + $0x2c8] sm:$0xf0] }
 0x1c2   :  { %3882 = vmatpush.bf16.msrb.mxu0 %v6538_v15  ;;  %v6690_v63 = vor.u32 %v7525_v50, %v6689_v49  ;;  %v6427_v15 = vld [vmem:[#allocation6 + $0x408] sm:$0xf0]  ;;  %v6666_v49 = vor.u32 %v7519_v37, %v6665_v34  ;;  %v6650_v27 = vor.u32 %v7515_v11, %v6649_v9  ;;  %v7476_v34 = vld [vmem:[#allocation6 + $0x6b4] sm:$0xf]  ;;  %v7494_v37 = vld [vmem:[#allocation6 + $0x984] sm:$0xf] }
 0x1c3   :  { %3857 = vmatpush.bf16.msra.mxu1 %v6402_v14  ;;  %v2421_v13 = vpop.f32.mrf.mxu1  ;;  %v7472_v9 = vld [vmem:[#allocation6 + $0x614] sm:$0xf]  ;;  %v6483_v11 = vld [vmem:[#allocation6 + $0x638] sm:$0xf0] }
 0x1c4   :  { %3870 = vmatpush.bf16.msra.mxu2 %v6466_v58  ;;  %v6379_v58 = vld [vmem:[#allocation6 + $0x228] sm:$0xf0] }
 0x1c5   :  { %3845 = vmatpush.bf16.msrb.mxu3 %v6330_v3  ;;  %v6382_v14 = vor.u32 %v7446_v57, %v6379_v58  ;;  %v7505_v3 = vld [vmem:[#allocation6 + $0xb34] sm:$0xf0]  ;;  %v6358_v57 = vor.u32 %v7440_v42, %v6355_v16  ;;  %v6585_v58 = vld [vmem:[#allocation6 + $0xa20] sm:$0xf]  ;;  %v6331_v42 = vld [vmem:[#allocation6 + $0x48] sm:$0xf0] }
 0x1c6   :  { %3883 = vmatpush.bf16.msrb.mxu0 %v6530_v33  ;;  %v6610_v18 = vor.u32 %v7505_v3, %v6609_v6  ;;  %v2434_v30 = vpop.f32.mrf.mxu0  ;;  %v7452_v6 = vld [vmem:[#allocation6 + $0x2f4] sm:$0xf]  ;;  %v6403_v3 = vld [vmem:[#allocation6 + $0x318] sm:$0xf0] }
 0x1c7   :  { %3858 = vmatpush.bf16.msra.mxu1 %v6394_v25 }
 0x1c8   :  { %3871 = vmatpush.bf16.msra.mxu2 %v6458_v48  ;;  %3846 = vmatmul.bf16.vlgmr.msrb.gmra.mxu3 %v7882_v61  ;;  %v7521_v48 = vld [vmem:[#allocation6 + $0xdb4] sm:$0xf0] }
 0x1c9   :  { %3890 = vmatpush.bf16.msra.mxu3 %v6642_v12  ;;  %v7458_v12 = vld [vmem:[#allocation6 + $0x3e4] sm:$0xf]  ;;  %v6674_v33 = vor.u32 %v7521_v48, %v6673_v19  ;;  %v7496_v19 = vld [vmem:[#allocation6 + $0x9d4] sm:$0xf]  ;;  %v6579_v48 = vld [vmem:[#allocation6 + $0x9f8] sm:$0xf0] }
 0x1ca   :  { %3859 = vmatmul.bf16.vlgmr.msra.gmra.mxu1 %v7887_v8  ;;  %3884 = vmatpush.bf16.msrb.mxu0 %v6522_v47  ;;  %v6430_v25 = vor.u32 %v7458_v12, %v6427_v15  ;;  %v6411_v47 = vld [vmem:[#allocation6 + $0x368] sm:$0xf0]  ;;  %v6518_v15 = vor.u32 %v7480_v60, %v6515_v4 }
 0x1cb   :  { %3903 = vmatpush.bf16.msrb.mxu1 %v6706_v29  ;;  %3872 = vmatmul.bf16.vlgmr.msra.gmra.mxu2 %v7880_v54  ;;  %v7456_v29 = vld [vmem:[#allocation6 + $0x394] sm:$0xf]  ;;  %v6491_v60 = vld [vmem:[#allocation6 + $0x688] sm:$0xf0] }
 0x1cc   :  { %3923 = vmatpush.bf16.msrb.mxu2 %v6714_v24  ;;  %v2408_v24 = vpop.f32.mrf.mxu3  ;;  %v6635_v4 = vld [vmem:[#allocation6 + $0xc28] sm:$0xf0] }
 0x1cd   :  { %3891 = vmatpush.bf16.msra.mxu3 %v6634_v10  ;;  %3885 = vmatmul.bf16.vlgmr.msrb.gmra.mxu0 %v7884_v62  ;;  %v2409_v28 = vadd.f32 %v2408_v24, %v8006_v52  ;;  %v6419_v10 = vld [vmem:[#allocation6 + $0x3b8] sm:$0xf0] }
 0x1ce   :  { %3929 = vmatpush.bf16.msra.mxu0 %v6390_v51  ;;  %v6422_v41 = vor.u32 %v7456_v29, %v6419_v10  ;;  %v2447_v50 = vpop.f32.mrf.mxu2  ;;  %v2436_v12 = vpop.f32.mrf.mxu0  ;;  %v6339_v24 = vld [vmem:[#allocation6 + $0x98] sm:$0xf0]  ;;  %v6582_v10 = vor.u32 %v7496_v19, %v6579_v48  ;;  %v7522_v48 = vld [vmem:[#allocation6 + $0xde4] sm:$0xf] }
 0x1cf   :  { %3904 = vmatpush.bf16.msrb.mxu1 %v6698_v45  ;;  %v2422_v38 = vadd.f32 %v2421_v13, %v2409_v28  ;;  %v2423_v45 = vpop.f32.mrf.mxu1  ;;  %v6586_v13 = vor.u32 %v7499_v59, %v6585_v58  ;;  %v7528_v28 = vld [vmem:[#allocation6 + $0xed4] sm:$0xf]  ;;  %v6707_v29 = vld [vmem:[#allocation6 + $0xef8] sm:$0xf0]  ;;  %v7474_v59 = vld [vmem:[#allocation6 + $0x664] sm:$0xf]  ;;  %v6694_v12 = vor.u32 %v7524_v32, %v6691_v43 }
 0x1d0   :  { %3942 = vmatpush.bf16.msra.mxu2 %v6454_v7  ;;  %v6593_v7 = vld [vmem:[#allocation6 + $0xa70] sm:$0xf]  ;;  %v6710_v45 = vor.u32 %v7528_v28, %v6707_v29  ;;  %v7506_v29 = vld [vmem:[#allocation6 + $0xb64] sm:$0xf] }
 0x1d1   :  { %3892 = vmatpush.bf16.msra.mxu3 %v6626_v23  ;;  %v2435_v52 = vadd.f32 %v2434_v30, %v2422_v38  ;;  %v7454_v23 = vld [vmem:[#allocation6 + $0x344] sm:$0xf]  ;;  %v6594_v51 = vor.u32 %v7501_v40, %v6593_v7  ;;  %v6571_v38 = vld [vmem:[#allocation6 + $0x9a8] sm:$0xf0]  ;;  %v6499_v40 = vld [vmem:[#allocation6 + $0x6d8] sm:$0xf0] }
 0x1d2   :  { %3930 = vmatpush.bf16.msra.mxu0 %v6382_v14  ;;  %v6347_v14 = vld [vmem:[#allocation6 + $0xe8] sm:$0xf0] }
 0x1d3   :  { %3905 = vmatpush.bf16.msrb.mxu1 %v6690_v63 }
 0x1d4   :  { %3943 = vmatpush.bf16.msra.mxu2 %v6446_v56  ;;  %v2448_v56 = vadd.f32 %v2447_v50, %v2435_v52  ;;  %v2410_v63 = vpop.f32.mrf.mxu3  ;;  %v7512_v52 = vld [vmem:[#allocation6 + $0xc54] sm:$0xf]  ;;  %v6574_v50 = vor.u32 %v7494_v37, %v6571_v38  ;;  %v7486_v38 = vld [vmem:[#allocation6 + $0x844] sm:$0xf] }
 0x1d5   :  { %3893 = vmatpush.bf16.msra.mxu3 %v6618_v0  ;;  %v6414_v0 = vor.u32 %v7454_v23, %v6411_v47  ;;  %v6643_v23 = vld [vmem:[#allocation6 + $0xc78] sm:$0xf0]  ;;  %v7526_v47 = vld [vmem:[#allocation6 + $0xe84] sm:$0xf] }
 0x1d6   :  { %3931 = vmatpush.bf16.msra.mxu0 %v6374_v20  ;;  %v6406_v20 = vor.u32 %v7452_v6, %v6403_v3  ;;  %v6646_v58 = vor.u32 %v7512_v52, %v6643_v23  ;;  %v7490_v6 = vld [vmem:[#allocation6 + $0x8e4] sm:$0xf]  ;;  %v6555_v3 = vld [vmem:[#allocation6 + $0x908] sm:$0xf0]  ;;  %v7504_v52 = vld [vmem:[#allocation6 + $0xb14] sm:$0xf] }
 0x1d7   :  { %3906 = vmatpush.bf16.msrb.mxu1 %v6682_v17  ;;  %v6350_v17 = vor.u32 %v7438_v5, %v6347_v14  ;;  %v8027_v5 = vld [vmem:[#allocation8 + $0x6] sm:$0x3]  ;;  %v6494_v14 = vor.u32 %v7474_v59, %v6491_v60  ;;  %v6611_v23 = vld [vmem:[#allocation6 + $0xb38] sm:$0xf0] }
 0x1d8   :  { %3944 = vmatpush.bf16.msra.mxu2 %v6438_v2  ;;  %v6658_v2 = vor.u32 %v7517_v35, %v6657_v1  ;;  %v6502_v1 = vor.u32 %v7476_v34, %v6499_v40  ;;  %v7468_v40 = vld [vmem:[#allocation6 + $0x574] sm:$0xf]  ;;  %v6531_v59 = vld [vmem:[#allocation6 + $0x818] sm:$0xf0]  ;;  %v6614_v60 = vor.u32 %v7504_v52, %v6611_v23 }
 0x1d9   :  { %3894 = vmatpush.bf16.msra.mxu3 %v6610_v18  ;;  %v7478_v18 = vld [vmem:[#allocation6 + $0x704] sm:$0xf]  ;;  %v7564_v52 = vld [vmem:[#allocation9 + $0x100] sm:$0xf0] }
 0x1da   :  { %3932 = vmatpush.bf16.msra.mxu0 %v6366_v39  ;;  %v6510_v30 = vor.u32 %v7478_v18, %v6507_v21  ;;  %v2566_v18 = vperm.slane %v8027_v5, 0  ;;  %v6558_v21 = vor.u32 %v7490_v6, %v6555_v3  ;;  %v6715_v6 = vld [vmem:[#allocation6 + $0xf48] sm:$0xf0]  ;;  %v7516_v3 = vld [vmem:[#allocation6 + $0xcf4] sm:$0xf] }
 0x1db   :  { %3907 = vmatpush.bf16.msrb.mxu1 %v6674_v33  ;;  %6719 = vmatmul.msk.bf16.vlgmr.msrb.gmra.mxu2 %vm724_vm0, %v7892_v46  ;;  %v2449_v33 = vpop.f32.mrf.mxu2 }
 0x1dc   :  { %3945 = vmatpush.bf16.msra.mxu2 %v6430_v25  ;;  %v7450_v25 = vld [vmem:[#allocation6 + $0x2a4] sm:$0xf]  ;;  %v2460_v39 = vpop.f32.mrf.mxu3 }
 0x1dd   :  { %3895 = vmatpush.bf16.msra.mxu3 %v6602_v44  ;;  %v6342_v44 = vor.u32 %v7436_v22, %v6339_v24  ;;  %v6398_v7 = vor.u32 %v7450_v25, %v6395_v26  ;;  %v2461_v16 = vadd.f32 %v2460_v39, %v2448_v56  ;;  %v7492_v56 = vld [vmem:[#allocation6 + $0x934] sm:$0xf]  ;;  %v6486_v22 = vor.u32 %v7472_v9, %v6483_v11  ;;  %v6547_v25 = vld [vmem:[#allocation6 + $0x8b8] sm:$0xf0]  ;;  %v6539_v39 = vld [vmem:[#allocation6 + $0x868] sm:$0xf0] }
 0x1de   :  { %3933 = vmatpush.bf16.msra.mxu0 %v6358_v57  ;;  %v6563_v57 = vld [vmem:[#allocation6 + $0x958] sm:$0xf0]  ;;  %v7488_v24 = vld [vmem:[#allocation6 + $0x894] sm:$0xf] }
 0x1df   :  { %3908 = vmatpush.bf16.msrb.mxu1 %v6666_v49  ;;  %v6699_v49 = vld [vmem:[#allocation6 + $0xea8] sm:$0xf0]  ;;  %v6550_v34 = vor.u32 %v7488_v24, %v6547_v25 }
 0x1e0   :  { %3946 = vmatpush.bf16.msra.mxu2 %v6422_v41  ;;  %v7434_v41 = vld [vmem:[#allocation6 + $0x24] sm:$0xf]  ;;  %v6702_v63 = vor.u32 %v7526_v47, %v6699_v49  ;;  %v6651_v24 = vld [vmem:[#allocation6 + $0xcc8] sm:$0xf0] }
 0x1e1   :  { %3896 = vmatpush.bf16.msra.mxu3 %v6594_v51  ;;  %v8024_v51 = vmax.f32 %v1687_v55, %v2461_v16  ;;  %v6334_v35 = vor.u32 %v7434_v41, %v6331_v42  ;;  %v6566_v55 = vor.u32 %v7492_v56, %v6563_v57  ;;  %v6467_v41 = vld [vmem:[#allocation6 + $0x598] sm:$0xf0]  ;;  %v7518_v49 = vld [vmem:[#allocation6 + $0xd44] sm:$0xf] }
 0x1e2   :  { %3934 = vmatpush.bf16.msra.mxu0 %v6350_v17  ;;  %v6627_v17 = vld [vmem:[#allocation6 + $0xbd8] sm:$0xf0] }
 0x1e3   :  { %3909 = vmatpush.bf16.msrb.mxu1 %v6658_v2  ;;  %v3069_v19 = vpop.f32.mrf.mxu1 }
 0x1e4   :  { %3947 = vmatpush.bf16.msra.mxu2 %v6414_v0  ;;  %v7510_v0 = vld [vmem:[#allocation6 + $0xc04] sm:$0xf]  ;;  %v3070_v33 = vadd.f32 %v3069_v19, %v2566_v18 }
 0x1e5   :  { %3897 = vmatpush.bf16.msra.mxu3 %v6586_v13  ;;  %v6638_v2 = vor.u32 %v7510_v0, %v6635_v4  ;;  %v2462_v13 = vpop.f32.mrf.mxu3  ;;  %v6459_v0 = vld [vmem:[#allocation6 + $0x548] sm:$0xf0]  ;;  %v7502_v4 = vld [vmem:[#allocation6 + $0xac4] sm:$0xf] }
 0x1e6   :  { %3935 = vmatpush.bf16.msra.mxu0 %v6342_v44  ;;  %v6675_v44 = vld [vmem:[#allocation6 + $0xdb8] sm:$0xf0]  ;;  %v3095_v37 = vpop.f32.mrf.mxu0 }
 0x1e7   :  { %3910 = vmatpush.bf16.msrb.mxu1 %v6650_v27  ;;  %v6475_v27 = vld [vmem:[#allocation6 + $0x5e8] sm:$0xf0] }
 0x1e8   :  { %3948 = vmatpush.bf16.msra.mxu2 %v6406_v20  ;;  %3898 = vmatmul.bf16.vlgmr.msra.gmra.mxu3 %v7896_v31  ;;  %v6683_v20 = vld [vmem:[#allocation6 + $0xe08] sm:$0xf0] }
 0x1e9   :  { %3955 = vmatpush.bf16.msrb.mxu3 %v6518_v15  ;;  %v7508_v15 = vld [vmem:[#allocation6 + $0xbb4] sm:$0xf]  ;;  %v6686_v28 = vor.u32 %v7522_v48, %v6683_v20 }
 0x1ea   :  { %3911 = vmatmul.bf16.vlgmr.msrb.gmra.mxu1 %v7898_v36  ;;  %3936 = vmatpush.bf16.msra.mxu0 %v6334_v35  ;;  %v6630_v26 = vor.u32 %v7508_v15, %v6627_v17  ;;  %v6470_v35 = vor.u32 %v7468_v40, %v6467_v41  ;;  %v6523_v15 = vld [vmem:[#allocation6 + $0x7c8] sm:$0xf0]  ;;  %v7500_v20 = vld [vmem:[#allocation6 + $0xa74] sm:$0xf] }
 0x1eb   :  { %3968 = vmatpush.bf16.msra.mxu1 %v6582_v10  ;;  %v6619_v10 = vld [vmem:[#allocation6 + $0xb88] sm:$0xf0]  ;;  %v3071_v47 = vpop.f32.mrf.mxu1 }
 0x1ec   :  { %3949 = vmatpush.bf16.msra.mxu2 %v6398_v7  ;;  %v6622_v7 = vor.u32 %v7506_v29, %v6619_v10  ;;  %v6587_v29 = vld [vmem:[#allocation6 + $0xa48] sm:$0xf0]  ;;  %v6823_v47 = vld [vmem:[#allocation9 + $0xc8] sm:$0xf] }
 0x1ed   :  { %3956 = vmatpush.bf16.msrb.mxu3 %v6510_v30  ;;  %3937 = vmatmul.bf16.vlgmr.msra.gmra.mxu0 %v7882_v61  ;;  %v7520_v30 = vld [vmem:[#allocation6 + $0xd94] sm:$0xf]  ;;  %v3082_v42 = vpop.f32.mrf.mxu3 }
 0x1ee   :  { %3981 = vmatpush.bf16.msrb.mxu0 %v6646_v58  ;;  %v6678_v16 = vor.u32 %v7520_v30, %v6675_v44  ;;  %v3108_v57 = vpop.f32.mrf.mxu2  ;;  %v7484_v58 = vld [vmem:[#allocation6 + $0x7f4] sm:$0xf]  ;;  %v3097_v9 = vpop.f32.mrf.mxu0 }
 0x1ef   :  { %3969 = vmatpush.bf16.msra.mxu1 %v6574_v50  ;;  %3950 = vmatmul.bf16.vlgmr.msra.gmra.mxu2 %v7887_v8  ;;  %v7470_v8 = vld [vmem:[#allocation6 + $0x5c4] sm:$0xf]  ;;  %v6667_v50 = vld [vmem:[#allocation6 + $0xd68] sm:$0xf0]  ;;  %v6534_v13 = vor.u32 %v7484_v58, %v6531_v59 }
 0x1f0   :  { %3994 = vmatpush.bf16.msrb.mxu2 %v6710_v45  ;;  %v6478_v61 = vor.u32 %v7470_v8, %v6475_v27  ;;  %v3083_v45 = vadd.f32 %v3082_v42, %v3070_v33  ;;  %v6670_v32 = vor.u32 %v7518_v49, %v6667_v50  ;;  %v6863_v42 = vld [vmem:[#allocation9 + $0x118] sm:$0xf]  ;;  %v6845_v58 = vld [vmem:[#allocation9 + $0x104] sm:$0xf0]  ;;  %v7557_v9 = vld [vmem:[#allocation9 + $0xcc] sm:$0xf] }
 0x1f1   :  { %3957 = vmatpush.bf16.msrb.mxu3 %v6502_v1  ;;  %v6542_v1 = vor.u32 %v7486_v38, %v6539_v39 }
 0x1f2   :  { %3982 = vmatpush.bf16.msrb.mxu0 %v6638_v2  ;;  %v3096_v56 = vadd.f32 %v3095_v37, %v3083_v45  ;;  %v6659_v2 = vld [vmem:[#allocation6 + $0xd18] sm:$0xf0] }
 0x1f3   :  { %3970 = vmatpush.bf16.msra.mxu1 %v6566_v55  ;;  %v6603_v55 = vld [vmem:[#allocation6 + $0xae8] sm:$0xf0]  ;;  %v6662_v48 = vor.u32 %v7516_v3, %v6659_v2  ;;  %v7544_v3 = vld [vmem:[#allocation9 + $0x60] sm:$0xf0] }
 0x1f4   :  { %3995 = vmatpush.bf16.msrb.mxu2 %v6702_v63  ;;  %v7466_v63 = vld [vmem:[#allocation6 + $0x524] sm:$0xf]  ;;  %v3109_v43 = vadd.f32 %v3108_v57, %v3096_v56  ;;  %v6606_v17 = vor.u32 %v7502_v4, %v6603_v55  ;;  %v7562_v57 = vld [vmem:[#allocation9 + $0xf4] sm:$0xf] }
 0x1f5   :  { %3958 = vmatpush.bf16.msrb.mxu3 %v6494_v14  ;;  %v7530_v14 = vld [vmem:[#allocation6 + $0xf24] sm:$0xf]  ;;  %v6462_v11 = vor.u32 %v7466_v63, %v6459_v0  ;;  %v3084_v18 = vpop.f32.mrf.mxu3  ;;  %v7554_v63 = vld [vmem:[#allocation9 + $0xb0] sm:$0xf0]  ;;  %v6848_v0 = vor.u32 %v7562_v57, %v6845_v58  ;;  %v7003_v57 = vld [vmem:[#allocation9 + $0x230] sm:$0xf] }
 0x1f6   :  { %3983 = vmatpush.bf16.msrb.mxu0 %v6630_v26  ;;  %v6718_v19 = vor.u32 %v7530_v14, %v6715_v6  ;;  %v3110_v26 = vpop.f32.mrf.mxu2  ;;  %v3147_v10 = vpop.f32.mrf.mxu0  ;;  %v6763_v6 = vld [vmem:[#allocation9 + $0x50] sm:$0xf]  ;;  %v7539_v18 = vld [vmem:[#allocation9 + $0x38] sm:$0xf0]  ;;  %v7604_v58 = vld [vmem:[#allocation9 + $0x240] sm:$0xf0] }
 0x1f7   :  { %3971 = vmatpush.bf16.msra.mxu1 %v6558_v21  ;;  %v6595_v21 = vld [vmem:[#allocation6 + $0xa98] sm:$0xf0]  ;;  %v7534_v26 = vld [vmem:[#allocation9 + $0x10] sm:$0xf0] }
 0x1f8   :  { %3996 = vmatpush.bf16.msrb.mxu2 %v6694_v12  ;;  %v7482_v12 = vld [vmem:[#allocation6 + $0x7a4] sm:$0xf]  ;;  %v6598_v8 = vor.u32 %v7500_v20, %v6595_v21  ;;  %v7552_v21 = vld [vmem:[#allocation9 + $0xa4] sm:$0xf] }
 0x1f9   :  { %3959 = vmatpush.bf16.msrb.mxu3 %v6486_v22  ;;  %v7514_v22 = vld [vmem:[#allocation6 + $0xca4] sm:$0xf]  ;;  %v6526_v25 = vor.u32 %v7482_v12, %v6523_v15 }
 0x1fa   :  { %3984 = vmatpush.bf16.msrb.mxu0 %v6622_v7  ;;  %v6654_v27 = vor.u32 %v7514_v22, %v6651_v24  ;;  %v6805_v22 = vld [vmem:[#allocation9 + $0xb4] sm:$0xf0] }
 0x1fb   :  { %3972 = vmatpush.bf16.msra.mxu1 %v6550_v34  ;;  %v6808_v24 = vor.u32 %v7552_v21, %v6805_v22  ;;  %v7545_v22 = vld [vmem:[#allocation9 + $0x68] sm:$0xf0] }
 0x1fc   :  { %3997 = vmatpush.bf16.msrb.mxu2 %v6686_v28  ;;  %v7498_v28 = vld [vmem:[#allocation6 + $0xa24] sm:$0xf] }
 0x1fd   :  { %3960 = vmatpush.bf16.msrb.mxu3 %v6478_v61  ;;  %v6590_v33 = vor.u32 %v7498_v28, %v6587_v29  ;;  %v2567_v61 = vperm.slane %v8027_v5, 1  ;;  %v6843_v5 = vld [vmem:[#allocation9 + $0xf0] sm:$0xf] }
 0x1fe   :  { %3985 = vmatpush.bf16.msrb.mxu0 %v6614_v60  ;;  %v3149_v34 = vpop.f32.mrf.mxu0  ;;  %v6844_v23 = vor.u32 %v7564_v52, %v6843_v5  ;;  %v6803_v60 = vld [vmem:[#allocation9 + $0xa0] sm:$0xf]  ;;  %v7023_v52 = vld [vmem:[#allocation9 + $0x258] sm:$0xf] }
 0x1ff   :  { %3973 = vmatpush.bf16.msra.mxu1 %v6542_v1  ;;  %v7567_v1 = vld [vmem:[#allocation9 + $0x11c] sm:$0xf]  ;;  %v6804_v4 = vor.u32 %v7554_v63, %v6803_v60  ;;  %v6745_v5 = vld [vmem:[#allocation9 + $0x3c] sm:$0xf0]  ;;  %v7532_v60 = vld [vmem:[#allocation9 + $0x4] sm:$0xf] }
 0x200   :  { %3998 = vmatpush.bf16.msrb.mxu2 %v6678_v16  ;;  %v6725_v63 = vld [vmem:[#allocation9 + $0x14] sm:$0xf0] }
 0x201   :  { %3961 = vmatpush.bf16.msrb.mxu3 %v6470_v35  ;;  %v6865_v35 = vld [vmem:[#allocation9 + $0x12c] sm:$0xf0] }
 0x202   :  { %3986 = vmatpush.bf16.msrb.mxu0 %v6606_v17  ;;  %v6868_v56 = vor.u32 %v7567_v1, %v6865_v35  ;;  %v6743_v17 = vld [vmem:[#allocation9 + $0x28] sm:$0xf] }
 0x203   :  { %3974 = vmatpush.bf16.msra.mxu1 %v6534_v13  ;;  %v3121_v30 = vpop.f32.mrf.mxu1  ;;  %v6764_v13 = vor.u32 %v7544_v3, %v6763_v6  ;;  %v6744_v20 = vor.u32 %v7539_v18, %v6743_v17  ;;  %v6728_v6 = vor.u32 %v7532_v60, %v6725_v63  ;;  %v7584_v60 = vld [vmem:[#allocation9 + $0x1a0] sm:$0xf0]  ;;  %v7597_v63 = vld [vmem:[#allocation9 + $0x20c] sm:$0xf] }
 0x204   :  { %3999 = vmatpush.bf16.msrb.mxu2 %v6670_v32  ;;  %v3122_v44 = vadd.f32 %v3121_v30, %v3109_v43  ;;  %v6783_v32 = vld [vmem:[#allocation9 + $0x78] sm:$0xf]  ;;  %v7549_v43 = vld [vmem:[#allocation9 + $0x88] sm:$0xf0]  ;;  %v6785_v30 = vld [vmem:[#allocation9 + $0x8c] sm:$0xf0] }
 0x205   :  { %3962 = vmatpush.bf16.msrb.mxu3 %v6462_v11  ;;  %v6784_v55 = vor.u32 %v7549_v43, %v6783_v32  ;;  %v6825_v11 = vld [vmem:[#allocation9 + $0xdc] sm:$0xf0]  ;;  %v7555_v32 = vld [vmem:[#allocation9 + $0xb8] sm:$0xf0]  ;;  %v7568_v43 = vld [vmem:[#allocation9 + $0x124] sm:$0xf] }
 0x206   :  { %3987 = vmatpush.bf16.msrb.mxu0 %v6598_v8  ;;  %v6828_v12 = vor.u32 %v7557_v9, %v6825_v11  ;;  %v7550_v9 = vld [vmem:[#allocation9 + $0x90] sm:$0xf0] }
 0x207   :  { %3975 = vmatpush.bf16.msra.mxu1 %v6526_v25  ;;  %v6723_v25 = vld [vmem:[#allocation9] sm:$0xf] }
 0x208   :  { %4000 = vmatpush.bf16.msrb.mxu2 %v6662_v48  ;;  %3963 = vmatmul.bf16.vlgmr.msrb.gmra.mxu3 %v7880_v54  ;;  %v6724_v29 = vor.u32 %v7534_v26, %v6723_v25  ;;  %v6833_v25 = vld [vmem:[#allocation9 + $0xe4] sm:$0xf0] }
 0x209   :  { %4014 = vmatpush.bf16.msra.mxu3 %v6718_v19 }
 0x20a   :  { %3976 = vmatmul.bf16.vlgmr.msra.gmra.mxu1 %v7884_v62  ;;  %3988 = vmatpush.bf16.msrb.mxu0 %v6590_v33  ;;  %v3173_v62 = vpop.f32.mrf.mxu0  ;;  %v7547_v33 = vld [vmem:[#allocation9 + $0x7c] sm:$0xf] }
 0x20b   :  { %v3134_v37 = vpop.f32.mrf.mxu3  ;;  %v3123_v54 = vpop.f32.mrf.mxu1  ;;  %v6788_v34 = vor.u32 %v7547_v33, %v6785_v30  ;;  %v7540_v30 = vld [vmem:[#allocation9 + $0x40] sm:$0xf0] }
 0x20c   :  { %4001 = vmatpush.bf16.msrb.mxu2 %v6654_v27  ;;  %v3135_v38 = vadd.f32 %v3134_v37, %v3122_v44  ;;  %v6871_v44 = vld [vmem:[#allocation9 + $0x120] sm:$0xf]  ;;  %v7570_v37 = vld [vmem:[#allocation9 + $0x130] sm:$0xf0] }
 0x20d   :  { %3989 = vmatmul.bf16.vlgmr.msrb.gmra.mxu0 %v7896_v31  ;;  %v7569_v31 = vld [vmem:[#allocation9 + $0x128] sm:$0xf0]  ;;  %v7542_v54 = vld [vmem:[#allocation9 + $0x54] sm:$0xf] }
 0x20e   :  { %v8039_v39 = vadd.f32 %v3147_v10, %v3135_v38  ;;  %v3160_v7 = vpop.f32.mrf.mxu2  ;;  %v6864_v16 = vor.u32 %v7569_v31, %v6863_v42  ;;  %4574 = vmatpush.bf16.msra.mxu0 %v6868_v56  ;;  %v6872_v38 = vor.u32 %v7570_v37, %v6871_v44  ;;  %v7565_v42 = vld [vmem:[#allocation9 + $0x108] sm:$0xf0]  ;;  %v7607_v44 = vld [vmem:[#allocation9 + $0x25c] sm:$0xf] }
 0x20f   :  { %4002 = vmatmul.bf16.vlgmr.msrb.gmra.mxu2 %v7898_v36  ;;  %v3161_v40 = vadd.f32 %v3160_v7, %v2567_v61  ;;  %v6765_v7 = vld [vmem:[#allocation9 + $0x64] sm:$0xf0] }
 0x210   :  { %v3242_v36 = vmax.f32 %v8011_v53, %v8039_v39  ;;  %4548 = vmatpush.bf16.msrb.mxu1 %v6864_v16 }
 0x211   :  { %v3174_v41 = vadd.f32 %v3173_v62, %v3161_v40  ;;  %v6851_v62 = vld [vmem:[#allocation9 + $0xf8] sm:$0xf] }
 0x212   :  { %v3175_v50 = vpop.f32.mrf.mxu0  ;;  %4575 = vmatpush.bf16.msra.mxu0 %v6848_v0  ;;  %v6852_v16 = vor.u32 %v7565_v42, %v6851_v62  ;;  %v6811_v0 = vld [vmem:[#allocation9 + $0xa8] sm:$0xf]  ;;  %v6813_v62 = vld [vmem:[#allocation9 + $0xbc] sm:$0xf0]  ;;  %v6943_v42 = vld [vmem:[#allocation9 + $0x1b8] sm:$0xf] }
 0x213   :  { %v3136_v45 = vpop.f32.mrf.mxu3  ;;  %v7609_v50 = vld [vmem:[#allocation9 + $0x268] sm:$0xf0]  ;;  %v6812_v3 = vor.u32 %v7555_v32, %v6811_v0  ;;  %v7543_v32 = vld [vmem:[#allocation9 + $0x5c] sm:$0xf] }
 0x214   :  { %4549 = vmatpush.bf16.msrb.mxu1 %v6844_v23  ;;  %v7537_v45 = vld [vmem:[#allocation9 + $0x2c] sm:$0xf]  ;;  %v7024_v35 = vor.u32 %v7609_v50, %v7023_v52  ;;  %v7535_v52 = vld [vmem:[#allocation9 + $0x18] sm:$0xf0]  ;;  %v7548_v50 = vld [vmem:[#allocation9 + $0x84] sm:$0xf] }
 0x215   :  { %v6748_v56 = vor.u32 %v7537_v45, %v6745_v5  ;;  %v6731_v45 = vld [vmem:[#allocation9 + $0x8] sm:$0xf] }
 0x216   :  { %v3162_v49 = vpop.f32.mrf.mxu2  ;;  %4576 = vmatpush.bf16.msra.mxu0 %v6828_v12  ;;  %4561 = vmatpush.bf16.msrb.mxu3 %v7024_v35  ;;  %v7563_v12 = vld [vmem:[#allocation9 + $0xfc] sm:$0xf]  ;;  %v6793_v35 = vld [vmem:[#allocation9 + $0x94] sm:$0xf0] }
 0x217   :  { %v7560_v49 = vld [vmem:[#allocation9 + $0xe0] sm:$0xf0] }
 0x218   :  { %6720 = vmatmul.msk.bf16.vlgmr.msra.gmra.mxu3 %vm724_vm0, %v7892_v46  ;;  %v7559_v46 = vld [vmem:[#allocation9 + $0xd8] sm:$0xf0] }
 0x219   :  { %v6824_v59 = vor.u32 %v7559_v46, %v6823_v47  ;;  %v6831_v46 = vld [vmem:[#allocation9 + $0xd0] sm:$0xf] }
 0x21a   :  { %4577 = vmatpush.bf16.msra.mxu0 %v6808_v24  ;;  %v7558_v24 = vld [vmem:[#allocation9 + $0xd4] sm:$0xf] }
 0x21b   :  { %4550 = vmatpush.bf16.msrb.mxu1 %v6824_v59  ;;  %v6832_v59 = vor.u32 %v7560_v49, %v6831_v46  ;;  %v6732_v46 = vor.u32 %v7535_v52, %v6731_v45  ;;  %v6905_v52 = vld [vmem:[#allocation9 + $0x17c] sm:$0xf0] }
 0x21e   :  { %4578 = vmatpush.bf16.msra.mxu0 %v6788_v34  ;;  %v7025_v34 = vld [vmem:[#allocation9 + $0x26c] sm:$0xf0] }
 0x21f   :  { %4551 = vmatpush.bf16.msrb.mxu1 %v6804_v4  ;;  %v7004_v4 = vor.u32 %v7604_v58, %v7003_v57  ;;  %v6796_v57 = vor.u32 %v7548_v50, %v6793_v35 }
 0x221   :  { %4562 = vmatpush.bf16.msrb.mxu3 %v7004_v4  ;;  %v6985_v4 = vld [vmem:[#allocation9 + $0x21c] sm:$0xf0] }
 0x223   :  { %v3186_v14 = vpop.f32.mrf.mxu1  ;;  %4552 = vmatpush.bf16.msrb.mxu1 %v6784_v55  ;;  %v6873_v55 = vld [vmem:[#allocation9 + $0x134] sm:$0xf0] }
 0x224   :  { %v3187_v2 = vadd.f32 %v3186_v14, %v3174_v41  ;;  %v6768_v41 = vor.u32 %v7542_v54, %v6765_v7  ;;  %v7028_v54 = vor.u32 %v7607_v44, %v7025_v34  ;;  %v7553_v7 = vld [vmem:[#allocation9 + $0xac] sm:$0xf]  ;;  %v6733_v34 = vld [vmem:[#allocation9 + $0x1c] sm:$0xf0] }
 0x225   :  { %v7533_v44 = vld [vmem:[#allocation9 + $0xc] sm:$0xf] }
 0x226   :  { %4579 = vmatpush.bf16.msra.mxu0 %v6768_v41  ;;  %4587 = vmatpush.bf16.msra.mxu2 %v7028_v54  ;;  %v7582_v54 = vld [vmem:[#allocation9 + $0x194] sm:$0xf] }
 0x227   :  { %4553 = vmatpush.bf16.msrb.mxu1 %v6764_v13  ;;  %v6791_v13 = vld [vmem:[#allocation9 + $0x80] sm:$0xf] }
 0x228   :  { %v6792_v11 = vor.u32 %v7550_v9, %v6791_v13  ;;  %v6903_v13 = vld [vmem:[#allocation9 + $0x168] sm:$0xf]  ;;  %v7579_v9 = vld [vmem:[#allocation9 + $0x178] sm:$0xf0] }
 0x22a   :  { %v3225_v27 = vpop.f32.mrf.mxu0  ;;  %4580 = vmatpush.bf16.msra.mxu0 %v6748_v56  ;;  %v8055_v56 = vld [vmem:[#allocation8 + $0x8] sm:$0x3] }
 0x22b   :  { %v3199_v15 = vpop.f32.mrf.mxu3  ;;  %v3188_v19 = vpop.f32.mrf.mxu1  ;;  %4554 = vmatpush.bf16.msrb.mxu1 %v6744_v20  ;;  %v6771_v20 = vld [vmem:[#allocation9 + $0x58] sm:$0xf] }
 0x22c   :  { %v3200_v48 = vadd.f32 %v3199_v15, %v3187_v2  ;;  %v6876_v2 = vor.u32 %v7568_v43, %v6873_v55  ;;  %v6853_v15 = vld [vmem:[#allocation9 + $0x10c] sm:$0xf0]  ;;  %v6983_v19 = vld [vmem:[#allocation9 + $0x208] sm:$0xf]  ;;  %v6772_v26 = vor.u32 %v7545_v22, %v6771_v20  ;;  %v6883_v22 = vld [vmem:[#allocation9 + $0x140] sm:$0xf] }
 0x22d   :  { %v6856_v17 = vor.u32 %v7563_v12, %v6853_v15  ;;  %v6773_v43 = vld [vmem:[#allocation9 + $0x6c] sm:$0xf0]  ;;  %v7592_v12 = vld [vmem:[#allocation9 + $0x1e4] sm:$0xf]  ;;  %v6965_v15 = vld [vmem:[#allocation9 + $0x1f4] sm:$0xf0] }
 0x22e   :  { %v3212_v8 = vpop.f32.mrf.mxu2  ;;  %4581 = vmatpush.bf16.msra.mxu0 %v6728_v6  ;;  %v6988_v6 = vor.u32 %v7597_v63, %v6985_v4  ;;  %v7595_v63 = vld [vmem:[#allocation9 + $0x1f8] sm:$0xf0] }
 0x22f   :  { %v3213_v28 = vadd.f32 %v3212_v8, %v3200_v48  ;;  %4555 = vmatpush.bf16.msrb.mxu1 %v6724_v29  ;;  %v7599_v48 = vld [vmem:[#allocation9 + $0x218] sm:$0xf0]  ;;  %v6836_v8 = vor.u32 %v7558_v24, %v6833_v25  ;;  %v7594_v29 = vld [vmem:[#allocation9 + $0x1f0] sm:$0xf0] }
 0x230   :  { %v6984_v21 = vor.u32 %v7599_v48, %v6983_v19  ;;  %v6968_v19 = vor.u32 %v7592_v12, %v6965_v15  ;;  %v6753_v48 = vld [vmem:[#allocation9 + $0x44] sm:$0xf0]  ;;  %v7574_v24 = vld [vmem:[#allocation9 + $0x150] sm:$0xf0]  ;;  %v7587_v25 = vld [vmem:[#allocation9 + $0x1bc] sm:$0xf] }
 0x231   :  { %v3226_v10 = vadd.f32 %v3225_v27, %v3213_v28  ;;  %v6963_v28 = vld [vmem:[#allocation9 + $0x1e0] sm:$0xf]  ;;  %v7603_v12 = vld [vmem:[#allocation9 + $0x23c] sm:$0xf]  ;;  %v7013_v15 = vld [vmem:[#allocation9 + $0x24c] sm:$0xf0] }
 0x232   :  { %v3227_v47 = vpop.f32.mrf.mxu0  ;;  %4626 = vmatpush.bf16.msrb.mxu0 %v6876_v2  ;;  %4563 = vmatpush.bf16.msrb.mxu3 %v6984_v21  ;;  %v6964_v33 = vor.u32 %v7594_v29, %v6963_v28  ;;  %v3344_v2 = vperm.slane %v8055_v56, 0  ;;  %v7031_v28 = vld [vmem:[#allocation9 + $0x260] sm:$0xf]  ;;  %v7610_v29 = vld [vmem:[#allocation9 + $0x270] sm:$0xf0] }
 0x233   :  { %v3201_v61 = vpop.f32.mrf.mxu3  ;;  %v3238_v40 = vpop.f32.mrf.mxu1  ;;  %4600 = vmatpush.bf16.msra.mxu1 %v6872_v38  ;;  %v7005_v47 = vld [vmem:[#allocation9 + $0x244] sm:$0xf0] }
 0x234   :  { %v8043_v31 = vadd.f32 %v3238_v40, %v3226_v10  ;;  %v6751_v10 = vld [vmem:[#allocation9 + $0x30] sm:$0xf]  ;;  %v6816_v40 = vor.u32 %v7553_v7, %v6813_v62  ;;  %v6925_v7 = vld [vmem:[#allocation9 + $0x1a4] sm:$0xf0]  ;;  %v7011_v62 = vld [vmem:[#allocation9 + $0x238] sm:$0xf] }
 0x235   :  { %v6752_v38 = vor.u32 %v7540_v30, %v6751_v10  ;;  %v7032_v30 = vor.u32 %v7610_v29, %v7031_v28  ;;  %v7598_v29 = vld [vmem:[#allocation9 + $0x214] sm:$0xf] }
 0x236   :  { %v3214_v23 = vpop.f32.mrf.mxu2  ;;  %v3243_v1 = vmax.f32 %v8024_v51, %v8043_v31  ;;  %4627 = vmatpush.bf16.msrb.mxu0 %v6856_v17  ;;  %4564 = vmatpush.bf16.msrb.mxu3 %v6964_v33  ;;  %v7538_v17 = vld [vmem:[#allocation9 + $0x34] sm:$0xf]  ;;  %v7591_v51 = vld [vmem:[#allocation9 + $0x1d8] sm:$0xf0] }
 0x237   :  { %4601 = vmatpush.bf16.msra.mxu1 %v6852_v16  ;;  %v7589_v16 = vld [vmem:[#allocation9 + $0x1c8] sm:$0xf0]  ;;  %v7602_v23 = vld [vmem:[#allocation9 + $0x234] sm:$0xf]  ;;  %v6756_v21 = vor.u32 %v7538_v17, %v6753_v48  ;;  %v7016_v48 = vor.u32 %v7603_v12, %v7013_v15  ;;  %v6739_v15 = vld [vmem:[#allocation9 + $0x10] sm:$0xf] }
 0x238   :  { %v6944_v5 = vor.u32 %v7589_v16, %v6943_v42  ;;  %v7008_v49 = vor.u32 %v7602_v23, %v7005_v47  ;;  %v6991_v23 = vld [vmem:[#allocation9 + $0x210] sm:$0xf] }
 0x23a   :  { %4628 = vmatpush.bf16.msrb.mxu0 %v6836_v8  ;;  %4565 = vmatpush.bf16.msrb.mxu3 %v6944_v5  ;;  %v6945_v8 = vld [vmem:[#allocation9 + $0x1cc] sm:$0xf0]  ;;  %v7577_v5 = vld [vmem:[#allocation9 + $0x16c] sm:$0xf] }
 0x23b   :  { %v3240_v14 = vpop.f32.mrf.mxu1  ;;  %4602 = vmatpush.bf16.msra.mxu1 %v6832_v59  ;;  %4588 = vmatpush.bf16.msra.mxu2 %v7008_v49  ;;  %v6923_v59 = vld [vmem:[#allocation9 + $0x190] sm:$0xf]  ;;  %v6948_v33 = vor.u32 %v7587_v25, %v6945_v8  ;;  %v6908_v47 = vor.u32 %v7577_v5, %v6905_v52  ;;  %v7566_v25 = vld [vmem:[#allocation9 + $0x110] sm:$0xf0]  ;;  %v7585_v8 = vld [vmem:[#allocation9 + $0x1a8] sm:$0xf0] }
 0x23c   :  { %v6924_v0 = vor.u32 %v7584_v60, %v6923_v59  ;;  %v6885_v59 = vld [vmem:[#allocation9 + $0x154] sm:$0xf0]  ;;  %v7588_v52 = vld [vmem:[#allocation9 + $0x1c4] sm:$0xf] }
 0x23e   :  { %4629 = vmatpush.bf16.msrb.mxu0 %v6816_v40  ;;  %4566 = vmatpush.bf16.msrb.mxu3 %v6924_v0  ;;  %v6928_v40 = vor.u32 %v7582_v54, %v6925_v7  ;;  %v6973_v54 = vld [vmem:[#allocation9 + $0x1fc] sm:$0xf0] }
 0x23f   :  { %4603 = vmatpush.bf16.msra.mxu1 %v6812_v3  ;;  %v6776_v3 = vor.u32 %v7543_v32, %v6773_v43  ;;  %4589 = vmatpush.bf16.msra.mxu2 %v6988_v6  ;;  %v7608_v43 = vld [vmem:[#allocation9 + $0x264] sm:$0xf] }
 0x242   :  { %4630 = vmatpush.bf16.msrb.mxu0 %v6796_v57 }
 0x243   :  { %4604 = vmatpush.bf16.msra.mxu1 %v6792_v11  ;;  %v6904_v11 = vor.u32 %v7579_v9, %v6903_v13  ;;  %4590 = vmatpush.bf16.msra.mxu2 %v6968_v19  ;;  %v6951_v13 = vld [vmem:[#allocation9 + $0x1c0] sm:$0xf]  ;;  %v7590_v9 = vld [vmem:[#allocation9 + $0x1d0] sm:$0xf0] }
 0x245   :  { %4567 = vmatpush.bf16.msrb.mxu3 %v6904_v11  ;;  %v6952_v11 = vor.u32 %v7590_v9, %v6951_v13 }
 0x246   :  { %4631 = vmatpush.bf16.msrb.mxu0 %v6776_v3  ;;  %v7571_v3 = vld [vmem:[#allocation9 + $0x138] sm:$0xf0] }
 0x247   :  { %v8047_v18 = vpop.f32.mrf.mxu1  ;;  %4605 = vmatpush.bf16.msra.mxu1 %v6772_v26  ;;  %v6884_v26 = vor.u32 %v7574_v24, %v6883_v22  ;;  %4591 = vmatpush.bf16.msra.mxu2 %v6948_v33  ;;  %v6859_v22 = vld [vmem:[#allocation9 + $0x100] sm:$0xf]  ;;  %v6839_v33 = vld [vmem:[#allocation9 + $0xd8] sm:$0xf] }
 0x249   :  { %4568 = vmatpush.bf16.msrb.mxu3 %v6884_v26  ;;  %v6931_v26 = vld [vmem:[#allocation9 + $0x198] sm:$0xf] }
 0x24a   :  { %v8053_v61 = vpop.f32.mrf.mxu0  ;;  %4632 = vmatpush.bf16.msrb.mxu0 %v6756_v21  ;;  %v6932_v28 = vor.u32 %v7585_v8, %v6931_v26 }
 0x24b   :  { %v8049_v27 = vpop.f32.mrf.mxu3  ;;  %4606 = vmatpush.bf16.msra.mxu1 %v6752_v38  ;;  %4592 = vmatpush.bf16.msra.mxu2 %v6928_v40 }
 0x24c   :  { %v3848_v20 = vadd.f32 %v8049_v27, %v3344_v2  ;;  %v6736_v27 = vor.u32 %v7533_v44, %v6733_v34  ;;  %v6911_v44 = vld [vmem:[#allocation9 + $0x170] sm:$0xf]  ;;  %v7580_v34 = vld [vmem:[#allocation9 + $0x180] sm:$0xf0] }
 0x24d   :  { %4613 = vmatpush.bf16.msra.mxu3 %v7032_v30  ;;  %v7561_v30 = vld [vmem:[#allocation9 + $0xe8] sm:$0xf0] }
 0x24e   :  { %v8051_v37 = vpop.f32.mrf.mxu2  ;;  %v3861_v38 = vadd.f32 %v8047_v18, %v3848_v20  ;;  %4633 = vmatpush.bf16.msrb.mxu0 %v6736_v27  ;;  %v7593_v27 = vld [vmem:[#allocation9 + $0x1ec] sm:$0xf]  ;;  %v6840_v40 = vor.u32 %v7561_v30, %v6839_v33 }
 0x24f   :  { %v3862_v41 = vpop.f32.mrf.mxu1  ;;  %4607 = vmatpush.bf16.msra.mxu1 %v6732_v46  ;;  %v7600_v46 = vld [vmem:[#allocation9 + $0x220] sm:$0xf0]  ;;  %4593 = vmatpush.bf16.msra.mxu2 %v6908_v47  ;;  %v3345_v47 = vperm.slane %v8055_v56, 1 }
 0x250   :  { %v7605_v41 = vld [vmem:[#allocation9 + $0x248] sm:$0xf0]  ;;  %v3874_v42 = vadd.f32 %v8051_v37, %v3861_v38  ;;  %v6992_v50 = vor.u32 %v7600_v46, %v6991_v23  ;;  %v6971_v37 = vld [vmem:[#allocation9 + $0x1e8] sm:$0xf]  ;;  %v6912_v38 = vor.u32 %v7580_v34, %v6911_v44  ;;  %v6953_v23 = vld [vmem:[#allocation9 + $0x1d4] sm:$0xf0] }
 0x251   :  { %v7012_v16 = vor.u32 %v7605_v41, %v7011_v62  ;;  %v6972_v32 = vor.u32 %v7595_v63, %v6971_v37  ;;  %v6976_v62 = vor.u32 %v7593_v27, %v6973_v54  ;;  %v6819_v41 = vld [vmem:[#allocation9 + $0xb0] sm:$0xf]  ;;  %v7546_v63 = vld [vmem:[#allocation9 + $0x70] sm:$0xf0]  ;;  %v7019_v44 = vld [vmem:[#allocation9 + $0x240] sm:$0xf] }
 0x252   :  { %v3888_v14 = vpop.f32.mrf.mxu0  ;;  %v3887_v49 = vadd.f32 %v8053_v61, %v3874_v42  ;;  %v7556_v42 = vld [vmem:[#allocation9 + $0xc0] sm:$0xf0]  ;;  %v7606_v34 = vld [vmem:[#allocation9 + $0x250] sm:$0xf0]  ;;  %v6999_v54 = vld [vmem:[#allocation9 + $0x218] sm:$0xf] }
 0x253   :  { %v3849_v58 = vpop.f32.mrf.mxu3  ;;  %4614 = vmatpush.bf16.msra.mxu3 %v7012_v16  ;;  %v6879_v14 = vld [vmem:[#allocation9 + $0x128] sm:$0xf]  ;;  %v6820_v46 = vor.u32 %v7556_v42, %v6819_v41  ;;  %v7020_v27 = vor.u32 %v7606_v34, %v7019_v44 }
 0x254   :  { %v7572_v58 = vld [vmem:[#allocation9 + $0x144] sm:$0xf]  ;;  %v6880_v20 = vor.u32 %v7571_v3, %v6879_v14  ;;  %v6891_v16 = vld [vmem:[#allocation9 + $0x148] sm:$0xf]  ;;  %v7573_v3 = vld [vmem:[#allocation9 + $0x14c] sm:$0xf] }
 0x255   :  { %v6888_v60 = vor.u32 %v7572_v58, %v6885_v59  ;;  %v6959_v42 = vld [vmem:[#allocation9 + $0x1c8] sm:$0xf] }
 0x256   :  { %v3875_v55 = vpop.f32.mrf.mxu2  ;;  %v6960_v31 = vor.u32 %v7591_v51, %v6959_v42 }
 0x257   :  { %4615 = vmatpush.bf16.msra.mxu3 %v6992_v50  ;;  %v7033_v55 = vld [vmem:[#allocation9 + $0x274] sm:$0xf0]  ;;  %4594 = vmatpush.bf16.msra.mxu2 %v6888_v60  ;;  %v7551_v50 = vld [vmem:[#allocation9 + $0x98] sm:$0xf0]  ;;  %v6779_v60 = vld [vmem:[#allocation9 + $0x60] sm:$0xf] }
 0x258   :  { %v7036_v6 = vor.u32 %v7608_v43, %v7033_v55  ;;  %v6780_v14 = vor.u32 %v7546_v63, %v6779_v60 }
 0x25b   :  { %4616 = vmatpush.bf16.msra.mxu3 %v6972_v32  ;;  %4639 = vmatpush.bf16.msrb.mxu2 %v7036_v6  ;;  %v6913_v32 = vld [vmem:[#allocation9 + $0x184] sm:$0xf0]  ;;  %v6759_v6 = vld [vmem:[#allocation9 + $0x38] sm:$0xf] }
 0x25e   :  { %v3925_v10 = vpop.f32.mrf.mxu2 }
 0x25f   :  { %4617 = vmatpush.bf16.msra.mxu3 %v6952_v11  ;;  %4640 = vmatpush.bf16.msrb.mxu2 %v7016_v48 }
 0x263   :  { %4618 = vmatpush.bf16.msra.mxu3 %v6932_v28 }
 0x266   :  { %v3927_v18 = vpop.f32.mrf.mxu2 }
 0x267   :  { %v3912_v45 = vpop.f32.mrf.mxu1  ;;  %4619 = vmatpush.bf16.msra.mxu3 %v6912_v38  ;;  %v6956_v18 = vor.u32 %v7588_v52, %v6953_v23  ;;  %v7581_v52 = vld [vmem:[#allocation9 + $0x188] sm:$0xf0] }
 0x26a   :  { %v8062_v4 = vpop.f32.mrf.mxu0 }
 0x26b   :  { %v3899_v35 = vpop.f32.mrf.mxu3  ;;  %v3939_v59 = vadd.f32 %v8062_v4, %v3345_v47  ;;  %v7541_v4 = vld [vmem:[#allocation9 + $0x48] sm:$0xf0]  ;;  %v7576_v47 = vld [vmem:[#allocation9 + $0x160] sm:$0xf0] }
 0x26c   :  { %v3900_v57 = vadd.f32 %v3899_v35, %v3887_v49  ;;  %v6799_v49 = vld [vmem:[#allocation9 + $0x88] sm:$0xf]  ;;  %v7583_v35 = vld [vmem:[#allocation9 + $0x19c] sm:$0xf]  ;;  %v6760_v12 = vor.u32 %v7541_v4, %v6759_v6 }
 0x26d   :  { %v6800_v37 = vor.u32 %v7551_v50, %v6799_v49 }
 0x26e   :  { %v3913_v0 = vadd.f32 %v3912_v45, %v3900_v57  ;;  %v7575_v45 = vld [vmem:[#allocation9 + $0x158] sm:$0xf0]  ;;  %v6933_v57 = vld [vmem:[#allocation9 + $0x1ac] sm:$0xf0] }
 0x26f   :  { %v3914_v2 = vpop.f32.mrf.mxu1  ;;  %v6892_v5 = vor.u32 %v7575_v45, %v6891_v16  ;;  %v6936_v58 = vor.u32 %v7583_v35, %v6933_v57  ;;  %v7586_v16 = vld [vmem:[#allocation9 + $0x1b0] sm:$0xf0] }
 0x270   :  { %v3926_v61 = vadd.f32 %v3925_v10, %v3913_v0  ;;  %v6993_v10 = vld [vmem:[#allocation9 + $0x224] sm:$0xf0]  ;;  %v7578_v0 = vld [vmem:[#allocation9 + $0x174] sm:$0xf]  ;;  %v6893_v2 = vld [vmem:[#allocation9 + $0x15c] sm:$0xf0] }
 0x271   :  { %v6996_v39 = vor.u32 %v7598_v29, %v6993_v10  ;;  %4620 = vmatpush.bf16.msra.mxu3 %v6892_v5  ;;  %v6916_v56 = vor.u32 %v7578_v0, %v6913_v32  ;;  %v6896_v13 = vor.u32 %v7573_v3, %v6893_v2  ;;  %v6919_v5 = vld [vmem:[#allocation9 + $0x178] sm:$0xf]  ;;  %v4120_v0 = vld [vmem:[#allocation11] sm:$0x1f] }
 0x272   :  { %v4020_v17 = vmax.f32 %v3242_v36, %v3926_v61  ;;  %v8067_v19 = vpop.f32.mrf.mxu2  ;;  %v3940_v53 = vpop.f32.mrf.mxu0  ;;  %v6860_v36 = vor.u32 %v7566_v25, %v6859_v22  ;;  %v6920_v23 = vor.u32 %v7581_v52, %v6919_v5 }
 0x273   :  { %v3901_v21 = vpop.f32.mrf.mxu3  ;;  %4641 = vmatpush.bf16.msrb.mxu2 %v6996_v39  ;;  %v3952_v55 = vadd.f32 %v8067_v19, %v3939_v59  ;;  %v7039_v53 = vld [vmem:[#allocation9 + $0x268] sm:$0xf]  ;;  %v7611_v39 = vld [vmem:[#allocation9 + $0x278] sm:$0xf0] }
 0x274   :  { %v8069_v24 = vpack.c.bf16 %v4020_v17, %v4020_v17  ;;  %v7536_v17 = vld [vmem:[#allocation9 + $0x20] sm:$0xf0]  ;;  %v7040_v33 = vor.u32 %v7611_v39, %v7039_v53 }
 0x275   :  { %v6740_v19 = vor.u32 %v7536_v17, %v6739_v15 }
 0x276   :  { %4556 = vmatmul.bf16.vlgmr.msrb.gmra.mxu1 %v8069_v24  ;;  %4582 = vmatmul.bf16.vlgmr.msra.gmra.mxu0 %v8069_v24 }
 0x277   :  { %4652 = vmatpush.bf16.msrb.mxu1 %v6880_v20  ;;  %4642 = vmatpush.bf16.msrb.mxu2 %v6976_v62  ;;  %v6979_v62 = vld [vmem:[#allocation9 + $0x1f0] sm:$0xf] }
 0x27a   :  { %v3953_v7 = vpop.f32.mrf.mxu2 }
 0x27b   :  { %4653 = vmatpush.bf16.msrb.mxu1 %v6860_v36  ;;  %4643 = vmatpush.bf16.msrb.mxu2 %v6956_v18  ;;  %v6899_v18 = vld [vmem:[#allocation9 + $0x150] sm:$0xf] }
 0x27f   :  { %4654 = vmatpush.bf16.msrb.mxu1 %v6840_v40  ;;  %4644 = vmatpush.bf16.msrb.mxu2 %v6936_v58  ;;  %v7596_v40 = vld [vmem:[#allocation9 + $0x200] sm:$0xf0] }
 0x280   :  { %v6980_v41 = vor.u32 %v7596_v40, %v6979_v62 }
 0x283   :  { %4655 = vmatpush.bf16.msrb.mxu1 %v6820_v46  ;;  %4645 = vmatpush.bf16.msrb.mxu2 %v6916_v56  ;;  %v6900_v46 = vor.u32 %v7576_v47, %v6899_v18  ;;  %v4123_v56 = vperm.slane %v4120_v0, 1 }
 0x286   :  { %4608 = vmatmul.bf16.vlgmr.msra.gmra.mxu1 %v8069_v24  ;;  %4634 = vmatmul.bf16.vlgmr.msrb.gmra.mxu0 %v8069_v24 }
 0x287   :  { %v3977_v43 = vpop.f32.mrf.mxu1  ;;  %4656 = vmatpush.bf16.msrb.mxu1 %v6800_v37  ;;  %4646 = vmatpush.bf16.msrb.mxu2 %v6896_v13 }
 0x28a   :  { %v3990_v11 = vpop.f32.mrf.mxu0 }
 0x28b   :  { %v3964_v61 = vpop.f32.mrf.mxu3  ;;  %4657 = vmatpush.bf16.msrb.mxu1 %v6780_v14 }
 0x28c   :  { %v3965_v9 = vadd.f32 %v3964_v61, %v3952_v55 }
 0x28e   :  { %v3978_v21 = vadd.f32 %v3977_v43, %v3965_v9  ;;  %v4122_v43 = vperm.slane %v4120_v0, 0 }
 0x28f   :  { %v3979_v48 = vpop.f32.mrf.mxu1  ;;  %4658 = vmatpush.bf16.msrb.mxu1 %v6760_v12  ;;  %v7817_v12 = vmov 0  }
 0x290   :  { %v3991_v25 = vadd.f32 %v3990_v11, %v3978_v21  ;;  %v4683_v11 = vld [vmem:[#allocation2] sm:$0x1]  ;;  %7624 = vset.pattern.permute.xlu0 %v7817_v12  ;;  %v4124_v48 = vperm.slane %v4120_v0, 2 }
 0x291   :  { %4686 = vperm.xlu0 %7624, %v4683_v11  }
 0x292   :  { %v4003_v20 = vpop.f32.mrf.mxu2  ;;  %v3992_v26 = vpop.f32.mrf.mxu0 }
 0x293   :  { %v3966_v22 = vpop.f32.mrf.mxu3  ;;  %4659 = vmatpush.bf16.msrb.mxu1 %v6740_v19  ;;  %v4004_v28 = vadd.f32 %v4003_v20, %v3991_v25  ;;  %v4126_v26 = vperm.slane %v4120_v0, 4 }
 0x294   :  { %v4125_v22 = vperm.slane %v4120_v0, 3 }
 0x296   :  { %4660 = vmatmul.bf16.vlgmr.msrb.gmra.mxu1 %v8069_v24  ;;  %v7601_v24 = vld [vmem:[#allocation9 + $0x228] sm:$0xf0] }
 0x297   :  { %v7000_v7 = vor.u32 %v7601_v24, %v6999_v54 }
 0x29a   :  { %v4005_v8 = vpop.f32.mrf.mxu2 }
 0x29b   :  { %v4016_v29 = vpop.f32.mrf.mxu3 }
 0x29c   :  { %v4017_v10 = vadd.f32 %v4016_v29, %v4004_v28 }
 0x29e   :  { %v4021_v36 = vmax.f32 %v3243_v1, %v4017_v10  ;;  %v6939_v1 = vld [vmem:[#allocation9 + $0x1a0] sm:$0xf] }
 0x29f   :  { %v6940_v45 = vor.u32 %v7586_v16, %v6939_v1 }
 0x2a0   :  { %v4023_v30 = vpack.c.bf16 %v4021_v36, %v4021_v36 }
 0x2a2   :  { %4569 = vmatmul.bf16.vlgmr.msrb.gmra.mxu3 %v4023_v30  ;;  %4595 = vmatmul.bf16.vlgmr.msra.gmra.mxu2 %v4023_v30 }
 0x2a3   :  { %v4018_v38 = vpop.f32.mrf.mxu3  ;;  %4665 = vmatpush.bf16.msrb.mxu3 %v7040_v33 }
 0x2a7   :  { %4666 = vmatpush.bf16.msrb.mxu3 %v7020_v27 }
 0x2ab   :  { %4667 = vmatpush.bf16.msrb.mxu3 %v7000_v7 }
 0x2af   :  { %4668 = vmatpush.bf16.msrb.mxu3 %v6980_v41 }
 0x2b2   :  { %4621 = vmatmul.bf16.vlgmr.msra.gmra.mxu3 %v4023_v30  ;;  %4647 = vmatmul.bf16.vlgmr.msrb.gmra.mxu2 %v4023_v30 }
 0x2b3   :  { %4669 = vmatpush.bf16.msrb.mxu3 %v6960_v31 }
 0x2b7   :  { %4670 = vmatpush.bf16.msrb.mxu3 %v6940_v45 }
 0x2bb   :  { %4671 = vmatpush.bf16.msrb.mxu3 %v6920_v23 }
 0x2bf   :  { %4672 = vmatpush.bf16.msrb.mxu3 %v6900_v46 }
 0x2c2   :  { %4673 = vmatmul.bf16.vlgmr.msrb.gmra.mxu3 %v4023_v30  ;;  %v4682_v30 = vld [vmem:[#allocation12] sm:$0x1] }
 0x2f3   :  { %v4557_v49 = vpop.f32.mrf.mxu1  ;;  %v4583_v50 = vpop.f32.mrf.mxu0 }
 0x2f4   :  { %v4558_v55 = vadd.f32 %v4557_v49, %v4122_v43  ;;  %v4584_v14 = vadd.f32 %v4583_v50, %v4123_v56 }
 0x2fb   :  { %v4559_v35 = vpop.f32.mrf.mxu1  ;;  %v4585_v57 = vpop.f32.mrf.mxu0 }
 0x303   :  { %v4609_v58 = vpop.f32.mrf.mxu1  ;;  %v4635_v59 = vpop.f32.mrf.mxu0 }
 0x304   :  { %v4610_v20 = vadd.f32 %v4609_v58, %v4124_v48  ;;  %v4636_v8 = vadd.f32 %v4635_v59, %v4125_v22  ;;  %v4687_v34 = vpop.permute.xlu0 %4686 }
 0x305   :  { %v4689_v38 = vperm.slane %v4687_v34, 0 }
 0x30b   :  { %v4611_v37 = vpop.f32.mrf.mxu1  ;;  %v4637_v60 = vpop.f32.mrf.mxu0 }
 0x313   :  { %v4661_v63 = vpop.f32.mrf.mxu1 }
 0x314   :  { %v4662_v29 = vadd.f32 %v4661_v63, %v4126_v26 }
 0x31b   :  { %v4663_v32 = vpop.f32.mrf.mxu1 }
 0x325   :  { %v4570_v6 = vpop.f32.mrf.mxu3  ;;  %v4596_v61 = vpop.f32.mrf.mxu2 }
 0x326   :  { %v4571_v4 = vadd.f32 %v4570_v6, %v4558_v55  ;;  %v4597_v3 = vadd.f32 %v4596_v61, %v4584_v14 }
 0x328   :  { %v4678_v2 = vmax.f32 %v4571_v4, %v4597_v3 }
 0x32d   :  { %v4572_v13 = vpop.f32.mrf.mxu3  ;;  %v4598_v9 = vpop.f32.mrf.mxu2 }
 0x335   :  { %v4622_v15 = vpop.f32.mrf.mxu3  ;;  %v4648_v17 = vpop.f32.mrf.mxu2 }
 0x336   :  { %v4623_v25 = vadd.f32 %v4622_v15, %v4610_v20  ;;  %v4649_v10 = vadd.f32 %v4648_v17, %v4636_v8 }
 0x338   :  { %v4679_v28 = vmax.f32 %v4678_v2, %v4623_v25 }
 0x33a   :  { %v4680_v39 = vmax.f32 %v4679_v28, %v4649_v10 }
 0x33d   :  { %v4624_v21 = vpop.f32.mrf.mxu3  ;;  %v4650_v19 = vpop.f32.mrf.mxu2 }
 0x345   :  { %v4674_v53 = vpop.f32.mrf.mxu3 }
 0x346   :  { %v4675_v36 = vadd.f32 %v4674_v53, %v4662_v29 }
 0x348   :  { %v4681_v33 = vmax.f32 %v4680_v39, %v4675_v36 }
 0x34a   :  { %4705 = vmatpush.xpose.msra.mxu0 %v4681_v33 }
 0x34d   :  { %v4676_v44 = vpop.f32.mrf.mxu3  ;;  %4706 = vmatmul.f32.vlgmr.msra.gmra.mxu0 %v4682_v30 }
 0x3ca   :  { %v4707_v27 = vpop.f32.mrf.mxu0 }
 0x3cb   :  { %v4708_v54 = vadd.f32 %v4707_v27, %v4689_v38 }
 0x3cd   :  { %v7041_v24 = vmul.f32 -1.442695, %v4708_v54 }
 0x3cf   :  { %7625 = vpow2.f32 %v7041_v24 }
 0x3d5   :  { %v7626_v7 = vpop.eup %7625 }
 0x3d6   :  { %v4713_v62 = vadd.f32 1.0, %v7626_v7 }
 0x3d8   :  { %7627 = vrcp.f32 %v4713_v62  ;;  %v4725_v51 = vand.u32 2147483648, %v4713_v62  ;;  %v4723_v1 = vand.u32 2147483647, %v4713_v62  ;;  %vm4719_vm2 = vweird.f32 %v4713_v62 }
 0x3da   :  { %v4726_v45 = vor.u32 1.1754944e-38, %v4725_v51  ;;  %vm4724_vm5 = vcmp.eq.f32.partialorder %v4723_v1, 8.507059e+37 }
 0x3de   :  { %v7628_v40 = vpop.eup %7627 }
 0x3df   :  { %v4715_v41 = vmul.f32 %v7628_v40, %v4713_v62  ;;  %vm4720_vm1 = vweird.f32 %v7628_v40 }
 0x3e0   :  { %vm4721_vm3 = vmor %vm4719_vm2, %vm4720_vm1 }
 0x3e1   :  { %v4716_v42 = vsub.f32 1.0, %v4715_v41 }
 0x3e3   :  { %v4717_v31 = vmul.f32 %v7628_v40, %v4716_v42 }
 0x3e5   :  { %v4718_v16 = vadd.f32 %v7628_v40, %v4717_v31 }
 0x3e7   :  { %v4722_v5 = vsel %vm4721_vm3, %v7628_v40, %v4718_v16 }
 0x3e8   :  { %v4727_v52 = vsel %vm4724_vm5, %v4726_v45, %v4722_v5 }
 0x3e9   :  { %4730 = vst.msk [vmem:[#allocation14] sm:$0x1] %vm4729_vm4, %v4727_v52 }
 0x3ea   :  { %4741 = dma.vmem_to_hbm [thread:$0]  %s4737_s5, 16, %s4739_s11, [#allocation5]  }
 0x3eb   :  { %7805 = dma.done.wait [#allocation5], 16  }
 0x3ec   :  { %7806 = vsyncadd [#allocation5], 4294967280 }
 0x3ed   :  { %4746 = vsyncpa [#allocation4], 1 }
 0x3ee   :  { %4747 = vsyncpa [#allocation7], 1 }
 0x3ef   :  { %4748 = vsyncpa [#allocation10], 1 }
 0x3f0   :  { %4749 = vsyncpa [#allocation13], 1 }
 0x3f1   :  { %4750 = vsyncpa [#allocation5], 1 }

</bundles_post_ra>
